<compile_context>
chip_gen: v5e
topology: v5e:2x2
jax: 0.10.0
libtpu: 0.0.40
codegen_flags: <defaults>
</compile_context>

<pallas_src>
import functools

import jax
import jax.numpy as jnp
from jax.experimental import pallas as pl
from jax.experimental.pallas import tpu as pltpu


def _pair(v):
    return (v, v) if isinstance(v, int) else tuple(v)


def _round_up(x, m):
    return (x + m - 1) // m * m


def _mdcn_kernel(x_ref, off_ref, msk_ref, w_ref, b_ref, by_ref, bx_ref, o_ref,
                 cols_ref, *, kh, kw, dil_h, dil_w, H, W):
    """One (batch, spatial-tile) step of the modulated deformable conv forward."""
    C_in = x_ref.shape[1]
    TILE_P = o_ref.shape[2]

    x = x_ref[0]                               # (C_in, HW_in) bf16 (cast in wrapper)
    offs = off_ref[0].astype(jnp.float32)      # (2K, TILE_P)
    msk = msk_ref[0].astype(jnp.float32)       # (K, TILE_P)
    base_y = by_ref[...]                       # (1, TILE_P) f32: h_out*stride - pad
    base_x = bx_ref[...]                       # (1, TILE_P) f32: w_out*stride - pad

    # Hoisted iotas for the separable sampling-matrix build.
    row_iota = jax.lax.broadcasted_iota(jnp.int32, (H, TILE_P), 0)
    col_iota = jax.lax.broadcasted_iota(jnp.int32, (W, TILE_P), 0)

    for t in range(kh * kw):                   # static, unrolled (K is small)
        i, j = divmod(t, kw)
        off_y = offs[2 * t:2 * t + 1, :]       # (1, TILE_P)
        off_x = offs[2 * t + 1:2 * t + 2, :]   # (1, TILE_P)
        m_t = msk[t:t + 1, :]                  # (1, TILE_P)

        # Fractional sampling coordinates (mmcv semantics).
        y = base_y + float(i * dil_h) + off_y
        xx = base_x + float(j * dil_w) + off_x

        h_low = jnp.floor(y)
        w_low = jnp.floor(xx)
        lh = y - h_low
        lw = xx - w_low
        h_lo = h_low.astype(jnp.int32)
        w_lo = w_low.astype(jnp.int32)

        # Whole-point in-bounds predicate (mmcv: strict > -1, < H/W); modulation
        # mask and predicate are folded into Sx in f32 before the bf16 rounding.
        in_b = (y > -1.0) & (xx > -1.0) & (y < float(H)) & (xx < float(W))
        m_eff = jnp.where(in_b, m_t, 0.0)

        # Separable bilinear weights.  Corners with h_lo == -1 / h_hi == H (etc.)
        # never match an iota row/col, so per-corner validity is implicit.
        sy = (jnp.where(row_iota == h_lo, 1.0 - lh, 0.0)
              + jnp.where(row_iota == h_lo + 1, lh, 0.0))        # (H, TILE_P)
        sx = (jnp.where(col_iota == w_lo, 1.0 - lw, 0.0)
              + jnp.where(col_iota == w_lo + 1, lw, 0.0))        # (W, TILE_P)
        sx = sx * m_eff

        s = (sy[:, None, :] * sx[None, :, :]).reshape(H * W, TILE_P)
        s = s.astype(jnp.bfloat16)

        # Deformable im2col column for this tap (MXU: bf16 in, f32 accumulate).
        cols = jnp.dot(x, s, preferred_element_type=jnp.float32)   # (C_in, TILE_P)
        cols_ref[t * C_in:(t + 1) * C_in, :] = cols

    # Single fused output GEMM over the K*C_in contraction, plus bias.
    acc = jnp.dot(w_ref[...], cols_ref[...], preferred_element_type=jnp.float32)
    acc = acc + b_ref[...]
    o_ref[0] = acc.astype(o_ref.dtype)


def modulated_deform_conv2d(x, offset, mask, weight, bias=None,
                            stride=1, padding=1, dilation=1,
                            groups=1, deform_groups=1, tile_p=None):
    """Forward of mmcv ModulatedDeformConv2d. x: (B, C_in, H, W) NCHW."""
    assert groups == 1, "TODO(synk): groups > 1 not implemented"
    assert deform_groups == 1, "TODO(synk): deform_groups > 1 not implemented"

    B, C_in, H, W = x.shape
    C_out, C_in_w, kh, kw = weight.shape
    assert C_in_w == C_in
    sh, sw = _pair(stride)
    ph, pw = _pair(padding)
    dh, dw = _pair(dilation)
    K = kh * kw
    H_out = (H + 2 * ph - (dh * (kh - 1) + 1)) // sh + 1
    W_out = (W + 2 * pw - (dw * (kw - 1) + 1)) // sw + 1
    HW_in, HW_out = H * W, H_out * W_out

    assert offset.shape == (B, 2 * K, H_out, W_out)
    assert mask.shape == (B, K, H_out, W_out)

    # Spatial output tile (lane-dense multiple of 128; bounded for v7x VMEM).
    if tile_p is None:
        tile_p = min(512, _round_up(HW_out, 128))
    tile_p = _round_up(tile_p, 128)
    HW_pad = _round_up(HW_out, tile_p)
    n_p = HW_pad // tile_p

    # NCHW-native flattening: pure reshapes (merge H, W), no transposes.
    x_f = x.reshape(B, C_in, HW_in).astype(jnp.bfloat16)       # bf16 feed to MXU
    off_f = offset.reshape(B, 2 * K, HW_out).astype(jnp.float32)
    msk_f = mask.reshape(B, K, HW_out).astype(jnp.float32)

    # Base (un-offset) sampling coordinates per output position.
    hs = jnp.arange(H_out, dtype=jnp.float32) * sh - ph
    ws = jnp.arange(W_out, dtype=jnp.float32) * sw - pw
    base_y = jnp.broadcast_to(hs[:, None], (H_out, W_out)).reshape(1, HW_out)
    base_x = jnp.broadcast_to(ws[None, :], (H_out, W_out)).reshape(1, HW_out)

    pad = HW_pad - HW_out
    if pad:
        # Zero mask in padded columns => zero contribution; sliced off at the end.
        off_f = jnp.pad(off_f, ((0, 0), (0, 0), (0, pad)))
        msk_f = jnp.pad(msk_f, ((0, 0), (0, 0), (0, pad)))
        base_y = jnp.pad(base_y, ((0, 0), (0, pad)))
        base_x = jnp.pad(base_x, ((0, 0), (0, pad)))

    # (C_out, K*C_in) weight slab matching the cols row order [tap-major, ci-minor].
    w_mat = jnp.transpose(weight, (0, 2, 3, 1)).reshape(C_out, K * C_in)
    w_mat = w_mat.astype(jnp.float32)
    b_col = (bias if bias is not None
             else jnp.zeros((C_out,), jnp.float32)).astype(jnp.float32).reshape(C_out, 1)

    kernel = functools.partial(_mdcn_kernel, kh=kh, kw=kw,
                               dil_h=dh, dil_w=dw, H=H, W=W)

    out = pl.pallas_call(
        kernel,
        out_shape=jax.ShapeDtypeStruct((B, C_out, HW_pad), x.dtype),
        grid=(B, n_p),                                           # p innermost
        in_specs=[
            pl.BlockSpec((1, C_in, HW_in), lambda b, p: (b, 0, 0)),   # resident over p
            pl.BlockSpec((1, 2 * K, tile_p), lambda b, p: (b, 0, p)),
            pl.BlockSpec((1, K, tile_p), lambda b, p: (b, 0, p)),
            pl.BlockSpec((C_out, K * C_in), lambda b, p: (0, 0)),
            pl.BlockSpec((C_out, 1), lambda b, p: (0, 0)),
            pl.BlockSpec((1, tile_p), lambda b, p: (0, p)),
            pl.BlockSpec((1, tile_p), lambda b, p: (0, p)),
        ],
        out_specs=pl.BlockSpec((1, C_out, tile_p), lambda b, p: (b, 0, p)),
        scratch_shapes=[pltpu.VMEM((K * C_in, tile_p), jnp.float32)],
        compiler_params=pltpu.CompilerParams(
            dimension_semantics=("parallel", "parallel"),
            vmem_limit_bytes=48 * 1024 * 1024),
    )(x_f, off_f, msk_f, w_mat, b_col, base_y, base_x)

    return out[:, :, :HW_out].reshape(B, C_out, H_out, W_out)


def _mdcn_reference(x, offset, mask, weight, bias, stride, padding, dilation):
    """Pure-JAX (XLA) reference implementing the same mmcv forward semantics."""
    B, C_in, H, W = x.shape
    C_out, _, kh, kw = weight.shape
    sh, sw = stride
    ph, pw = padding
    dh, dw = dilation
    K = kh * kw
    H_out = (H + 2 * ph - (dh * (kh - 1) + 1)) // sh + 1
    W_out = (W + 2 * pw - (dw * (kw - 1) + 1)) // sw + 1

    off = offset.reshape(B, K, 2, H_out, W_out)
    msk = mask.reshape(B, K, H_out, W_out)
    x_flat = x.reshape(B, C_in, H * W)

    hs = jnp.arange(H_out, dtype=jnp.float32) * sh - ph
    ws = jnp.arange(W_out, dtype=jnp.float32) * sw - pw

    cols = []
    for t in range(K):
        i, j = divmod(t, kw)
        y = hs[None, :, None] + i * dh + off[:, t, 0]      # (B, H_out, W_out)
        xx = ws[None, None, :] + j * dw + off[:, t, 1]
        m = msk[:, t]

        h_low = jnp.floor(y)
        w_low = jnp.floor(xx)
        lh = y - h_low
        lw = xx - w_low
        h_lo = h_low.astype(jnp.int32)
        w_lo = w_low.astype(jnp.int32)
        h_hi = h_lo + 1
        w_hi = w_lo + 1
        in_b = (y > -1) & (xx > -1) & (y < H) & (xx < W)

        def g(hi, wi, valid):
            idx = jnp.clip(hi, 0, H - 1) * W + jnp.clip(wi, 0, W - 1)
            gathered = jnp.take_along_axis(x_flat, idx.reshape(B, 1, -1), axis=2)
            gathered = gathered.reshape(B, C_in, H_out, W_out)
            return jnp.where((valid & in_b)[:, None], gathered, 0.0)

        v1 = g(h_lo, w_lo, (h_lo >= 0) & (w_lo >= 0))
        v2 = g(h_lo, w_hi, (h_lo >= 0) & (w_hi <= W - 1))
        v3 = g(h_hi, w_lo, (h_hi <= H - 1) & (w_lo >= 0))
        v4 = g(h_hi, w_hi, (h_hi <= H - 1) & (w_hi <= W - 1))
        val = (((1 - lh) * (1 - lw))[:, None] * v1 + ((1 - lh) * lw)[:, None] * v2
               + (lh * (1 - lw))[:, None] * v3 + (lh * lw)[:, None] * v4)
        cols.append(val * m[:, None])

    cols = jnp.stack(cols, axis=2).reshape(B, C_in * K, H_out * W_out)
    out = jnp.einsum('ok,bkp->bop',
                     jnp.transpose(weight, (0, 2, 3, 1)).reshape(C_out, kh * kw * C_in),
                     jnp.transpose(cols.reshape(B, C_in, K, -1), (0, 2, 1, 3))
                        .reshape(B, K * C_in, -1))
    out = out.reshape(B, C_out, H_out, W_out)
    if bias is not None:
        out = out + bias[None, :, None, None]
    return out


if __name__ == "__main__":
    B, C_in, C_out = 2, 4, 8
    H = W = 16
    kh = kw = 3
    stride, padding, dilation = 1, 1, 1
    K = kh * kw
    H_out = (H + 2 * padding - (dilation * (kh - 1) + 1)) // stride + 1
    W_out = (W + 2 * padding - (dilation * (kw - 1) + 1)) // stride + 1

    key = jax.random.PRNGKey(0)
    kx, ko, km, kwt, kb = jax.random.split(key, 5)
    x = jax.random.normal(kx, (B, C_in, H, W), dtype=jnp.float32)
    offset = 0.5 * jax.random.normal(ko, (B, 2 * K, H_out, W_out), dtype=jnp.float32)
    mask = jax.nn.sigmoid(jax.random.normal(km, (B, K, H_out, W_out), dtype=jnp.float32))
    weight = 0.1 * jax.random.normal(kwt, (C_out, C_in, kh, kw), dtype=jnp.float32)
    bias = 0.1 * jax.random.normal(kb, (C_out,), dtype=jnp.float32)

    # tile_p=128 -> 2 spatial tiles at this size, exercising the tiled grid path.
    out = modulated_deform_conv2d(x, offset, mask, weight, bias,
                                  stride=stride, padding=padding, dilation=dilation,
                                  tile_p=128)
    jax.block_until_ready(out)
    assert out.shape == (B, C_out, H_out, W_out)

    ref = _mdcn_reference(x, offset, mask, weight, bias,
                          (stride, stride), (padding, padding), (dilation, dilation))
    assert jnp.allclose(out, ref, atol=2e-2, rtol=2e-2), \
        float(jnp.max(jnp.abs(out - ref)))

    print("KERNEL_OK")
</pallas_src>

<mosaic_0001>
module attributes {stable_mosaic.version = 11 : i64} {
  func.func @_mdcn_kernel(%arg0: i32, %arg1: i32, %arg2: memref<1x4x256xbf16, #tpu.memory_space<vmem>>, %arg3: memref<1x18x128xf32, #tpu.memory_space<vmem>>, %arg4: memref<1x9x128xf32, #tpu.memory_space<vmem>>, %arg5: memref<8x36xf32, #tpu.memory_space<vmem>>, %arg6: memref<8x1xf32, #tpu.memory_space<vmem>>, %arg7: memref<1x128xf32, #tpu.memory_space<vmem>>, %arg8: memref<1x128xf32, #tpu.memory_space<vmem>>, %arg9: memref<1x8x128xf32, #tpu.memory_space<vmem>>, %arg10: memref<36x128xf32, #tpu.memory_space<vmem>>) attributes {dimension_semantics = [#tpu.dimension_semantics<parallel>, #tpu.dimension_semantics<parallel>], iteration_bounds = array<i64: 2, 2>, scalar_prefetch = 0 : i64, scratch_operands = 1 : i64, tpu.core_type = #tpu.core_type<tc>, window_params = [{transform_indices = @transform_0, window_bounds = array<i64: 1, 4, 256>}, {transform_indices = @transform_1, window_bounds = array<i64: 1, 18, 128>}, {transform_indices = @transform_2, window_bounds = array<i64: 1, 9, 128>}, {pipeline_mode = #tpu.pipeline_mode<synchronous>, transform_indices = @transform_3, window_bounds = array<i64: 8, 36>}, {pipeline_mode = #tpu.pipeline_mode<synchronous>, transform_indices = @transform_4, window_bounds = array<i64: 8, 1>}, {transform_indices = @transform_5, window_bounds = array<i64: 1, 128>}, {transform_indices = @transform_6, window_bounds = array<i64: 1, 128>}, {transform_indices = @transform_7, window_bounds = array<i64: 1, 8, 128>}]} {
    %c0 = arith.constant 0 : index
    %c0_0 = arith.constant 0 : index
    %c0_1 = arith.constant 0 : index
    %0 = vector.load %arg2[%c0, %c0_0, %c0_1] : memref<1x4x256xbf16, #tpu.memory_space<vmem>>, vector<1x4x256xbf16>
    %1 = vector.shape_cast %0 : vector<1x4x256xbf16> to vector<4x256xbf16>
    %c0_2 = arith.constant 0 : index
    %c0_3 = arith.constant 0 : index
    %c0_4 = arith.constant 0 : index
    %2 = vector.load %arg3[%c0_2, %c0_3, %c0_4] : memref<1x18x128xf32, #tpu.memory_space<vmem>>, vector<1x18x128xf32>
    %3 = vector.shape_cast %2 : vector<1x18x128xf32> to vector<18x128xf32>
    %c0_5 = arith.constant 0 : index
    %c0_6 = arith.constant 0 : index
    %c0_7 = arith.constant 0 : index
    %4 = vector.load %arg4[%c0_5, %c0_6, %c0_7] : memref<1x9x128xf32, #tpu.memory_space<vmem>>, vector<1x9x128xf32>
    %5 = vector.shape_cast %4 : vector<1x9x128xf32> to vector<9x128xf32>
    %c0_8 = arith.constant 0 : index
    %c0_9 = arith.constant 0 : index
    %6 = vector.load %arg7[%c0_8, %c0_9] : memref<1x128xf32, #tpu.memory_space<vmem>>, vector<1x128xf32>
    %c0_10 = arith.constant 0 : index
    %c0_11 = arith.constant 0 : index
    %7 = vector.load %arg8[%c0_10, %c0_11] : memref<1x128xf32, #tpu.memory_space<vmem>>, vector<1x128xf32>
    %8 = tpu.iota {dimensions = array<i32: 0>} : vector<16x128xi32>
    %9 = tpu.iota {dimensions = array<i32: 0>} : vector<16x128xi32>
    %10 = vector.extract_strided_slice %3 {offsets = [0, 0], sizes = [1, 128], strides = [1, 1]} : vector<18x128xf32> to vector<1x128xf32>
    %11 = vector.extract_strided_slice %3 {offsets = [1, 0], sizes = [1, 128], strides = [1, 1]} : vector<18x128xf32> to vector<1x128xf32>
    %12 = vector.extract_strided_slice %5 {offsets = [0, 0], sizes = [1, 128], strides = [1, 1]} : vector<9x128xf32> to vector<1x128xf32>
    %cst = arith.constant 0.000000e+00 : f32
    %13 = vector.broadcast %cst : f32 to vector<1x128xf32>
    %14 = arith.addf %6, %13 : vector<1x128xf32>
    %15 = arith.addf %14, %10 : vector<1x128xf32>
    %cst_12 = arith.constant 0.000000e+00 : f32
    %16 = vector.broadcast %cst_12 : f32 to vector<1x128xf32>
    %17 = arith.addf %7, %16 : vector<1x128xf32>
    %18 = arith.addf %17, %11 : vector<1x128xf32>
    %19 = math.floor %15 : vector<1x128xf32>
    %20 = math.floor %18 : vector<1x128xf32>
    %21 = arith.subf %15, %19 : vector<1x128xf32>
    %22 = arith.subf %18, %20 : vector<1x128xf32>
    %23 = arith.fptosi %19 : vector<1x128xf32> to vector<1x128xi32>
    %24 = arith.fptosi %20 : vector<1x128xf32> to vector<1x128xi32>
    %cst_13 = arith.constant -1.000000e+00 : f32
    %25 = vector.broadcast %cst_13 : f32 to vector<1x128xf32>
    %26 = arith.cmpf ogt, %15, %25 : vector<1x128xf32>
    %cst_14 = arith.constant -1.000000e+00 : f32
    %27 = vector.broadcast %cst_14 : f32 to vector<1x128xf32>
    %28 = arith.cmpf ogt, %18, %27 : vector<1x128xf32>
    %29 = arith.andi %26, %28 : vector<1x128xi1>
    %cst_15 = arith.constant 1.600000e+01 : f32
    %30 = vector.broadcast %cst_15 : f32 to vector<1x128xf32>
    %31 = arith.cmpf olt, %15, %30 : vector<1x128xf32>
    %32 = arith.andi %29, %31 : vector<1x128xi1>
    %cst_16 = arith.constant 1.600000e+01 : f32
    %33 = vector.broadcast %cst_16 : f32 to vector<1x128xf32>
    %34 = arith.cmpf olt, %18, %33 : vector<1x128xf32>
    %35 = arith.andi %32, %34 : vector<1x128xi1>
    %cst_17 = arith.constant 0.000000e+00 : f32
    %36 = vector.broadcast %cst_17 : f32 to vector<1x128xf32>
    %37 = arith.select %35, %12, %36 : vector<1x128xi1>, vector<1x128xf32>
    %38 = vector.broadcast %23 : vector<1x128xi32> to vector<16x128xi32>
    %39 = arith.cmpi eq, %8, %38 : vector<16x128xi32>
    %cst_18 = arith.constant 1.000000e+00 : f32
    %40 = vector.broadcast %cst_18 : f32 to vector<1x128xf32>
    %41 = arith.subf %40, %21 : vector<1x128xf32>
    %cst_19 = arith.constant 0.000000e+00 : f32
    %42 = vector.shape_cast %41 : vector<1x128xf32> to vector<1x128xf32>
    %43 = vector.broadcast %42 : vector<1x128xf32> to vector<16x128xf32>
    %44 = vector.broadcast %cst_19 : f32 to vector<16x128xf32>
    %45 = arith.select %39, %43, %44 : vector<16x128xi1>, vector<16x128xf32>
    %c1_i32 = arith.constant 1 : i32
    %46 = vector.broadcast %c1_i32 : i32 to vector<1x128xi32>
    %47 = arith.addi %23, %46 : vector<1x128xi32>
    %48 = vector.broadcast %47 : vector<1x128xi32> to vector<16x128xi32>
    %49 = arith.cmpi eq, %8, %48 : vector<16x128xi32>
    %cst_20 = arith.constant 0.000000e+00 : f32
    %50 = vector.shape_cast %21 : vector<1x128xf32> to vector<1x128xf32>
    %51 = vector.broadcast %50 : vector<1x128xf32> to vector<16x128xf32>
    %52 = vector.broadcast %cst_20 : f32 to vector<16x128xf32>
    %53 = arith.select %49, %51, %52 : vector<16x128xi1>, vector<16x128xf32>
    %54 = arith.addf %45, %53 : vector<16x128xf32>
    %55 = vector.broadcast %24 : vector<1x128xi32> to vector<16x128xi32>
    %56 = arith.cmpi eq, %9, %55 : vector<16x128xi32>
    %cst_21 = arith.constant 1.000000e+00 : f32
    %57 = vector.broadcast %cst_21 : f32 to vector<1x128xf32>
    %58 = arith.subf %57, %22 : vector<1x128xf32>
    %cst_22 = arith.constant 0.000000e+00 : f32
    %59 = vector.shape_cast %58 : vector<1x128xf32> to vector<1x128xf32>
    %60 = vector.broadcast %59 : vector<1x128xf32> to vector<16x128xf32>
    %61 = vector.broadcast %cst_22 : f32 to vector<16x128xf32>
    %62 = arith.select %56, %60, %61 : vector<16x128xi1>, vector<16x128xf32>
    %c1_i32_23 = arith.constant 1 : i32
    %63 = vector.broadcast %c1_i32_23 : i32 to vector<1x128xi32>
    %64 = arith.addi %24, %63 : vector<1x128xi32>
    %65 = vector.broadcast %64 : vector<1x128xi32> to vector<16x128xi32>
    %66 = arith.cmpi eq, %9, %65 : vector<16x128xi32>
    %cst_24 = arith.constant 0.000000e+00 : f32
    %67 = vector.shape_cast %22 : vector<1x128xf32> to vector<1x128xf32>
    %68 = vector.broadcast %67 : vector<1x128xf32> to vector<16x128xf32>
    %69 = vector.broadcast %cst_24 : f32 to vector<16x128xf32>
    %70 = arith.select %66, %68, %69 : vector<16x128xi1>, vector<16x128xf32>
    %71 = arith.addf %62, %70 : vector<16x128xf32>
    %72 = vector.broadcast %37 : vector<1x128xf32> to vector<16x128xf32>
    %73 = arith.mulf %71, %72 : vector<16x128xf32>
    %74 = vector.shape_cast %54 : vector<16x128xf32> to vector<16x1x128xf32>
    %75 = vector.shape_cast %73 : vector<16x128xf32> to vector<1x16x128xf32>
    %76 = vector.broadcast %74 : vector<16x1x128xf32> to vector<16x16x128xf32>
    %77 = vector.broadcast %75 : vector<1x16x128xf32> to vector<16x16x128xf32>
    %78 = arith.mulf %76, %77 : vector<16x16x128xf32>
    %79 = vector.shape_cast %78 : vector<16x16x128xf32> to vector<256x128xf32>
    %80 = arith.truncf %79 : vector<256x128xf32> to vector<256x128xbf16>
    %cst_25 = arith.constant dense<0.000000e+00> : vector<4x128xf32>
    %81 = tpu.matmul %1, %80, %cst_25 {dimension_numbers = #tpu.dot_dimension_numbers<[1], [0], [0], [1], [0, 0, 1, 1], [], []>} : vector<4x256xbf16>, vector<256x128xbf16>, vector<4x128xf32> -> vector<4x128xf32>
    %c0_26 = arith.constant 0 : index
    %c0_27 = arith.constant 0 : index
    %82 = vector.load %arg10[%c0_26, %c0_27] : memref<36x128xf32, #tpu.memory_space<vmem>>, vector<4x128xf32>
    tpu.vector_store %arg10[%c0_26, %c0_27], %81 {strides = array<i32>} : memref<36x128xf32, #tpu.memory_space<vmem>>, vector<4x128xf32>,
    %83 = vector.extract_strided_slice %3 {offsets = [2, 0], sizes = [1, 128], strides = [1, 1]} : vector<18x128xf32> to vector<1x128xf32>
    %84 = vector.extract_strided_slice %3 {offsets = [3, 0], sizes = [1, 128], strides = [1, 1]} : vector<18x128xf32> to vector<1x128xf32>
    %85 = vector.extract_strided_slice %5 {offsets = [1, 0], sizes = [1, 128], strides = [1, 1]} : vector<9x128xf32> to vector<1x128xf32>
    %cst_28 = arith.constant 0.000000e+00 : f32
    %86 = vector.broadcast %cst_28 : f32 to vector<1x128xf32>
    %87 = arith.addf %6, %86 : vector<1x128xf32>
    %88 = arith.addf %87, %83 : vector<1x128xf32>
    %cst_29 = arith.constant 1.000000e+00 : f32
    %89 = vector.broadcast %cst_29 : f32 to vector<1x128xf32>
    %90 = arith.addf %7, %89 : vector<1x128xf32>
    %91 = arith.addf %90, %84 : vector<1x128xf32>
    %92 = math.floor %88 : vector<1x128xf32>
    %93 = math.floor %91 : vector<1x128xf32>
    %94 = arith.subf %88, %92 : vector<1x128xf32>
    %95 = arith.subf %91, %93 : vector<1x128xf32>
    %96 = arith.fptosi %92 : vector<1x128xf32> to vector<1x128xi32>
    %97 = arith.fptosi %93 : vector<1x128xf32> to vector<1x128xi32>
    %cst_30 = arith.constant -1.000000e+00 : f32
    %98 = vector.broadcast %cst_30 : f32 to vector<1x128xf32>
    %99 = arith.cmpf ogt, %88, %98 : vector<1x128xf32>
    %cst_31 = arith.constant -1.000000e+00 : f32
    %100 = vector.broadcast %cst_31 : f32 to vector<1x128xf32>
    %101 = arith.cmpf ogt, %91, %100 : vector<1x128xf32>
    %102 = arith.andi %99, %101 : vector<1x128xi1>
    %cst_32 = arith.constant 1.600000e+01 : f32
    %103 = vector.broadcast %cst_32 : f32 to vector<1x128xf32>
    %104 = arith.cmpf olt, %88, %103 : vector<1x128xf32>
    %105 = arith.andi %102, %104 : vector<1x128xi1>
    %cst_33 = arith.constant 1.600000e+01 : f32
    %106 = vector.broadcast %cst_33 : f32 to vector<1x128xf32>
    %107 = arith.cmpf olt, %91, %106 : vector<1x128xf32>
    %108 = arith.andi %105, %107 : vector<1x128xi1>
    %cst_34 = arith.constant 0.000000e+00 : f32
    %109 = vector.broadcast %cst_34 : f32 to vector<1x128xf32>
    %110 = arith.select %108, %85, %109 : vector<1x128xi1>, vector<1x128xf32>
    %111 = vector.broadcast %96 : vector<1x128xi32> to vector<16x128xi32>
    %112 = arith.cmpi eq, %8, %111 : vector<16x128xi32>
    %cst_35 = arith.constant 1.000000e+00 : f32
    %113 = vector.broadcast %cst_35 : f32 to vector<1x128xf32>
    %114 = arith.subf %113, %94 : vector<1x128xf32>
    %cst_36 = arith.constant 0.000000e+00 : f32
    %115 = vector.shape_cast %114 : vector<1x128xf32> to vector<1x128xf32>
    %116 = vector.broadcast %115 : vector<1x128xf32> to vector<16x128xf32>
    %117 = vector.broadcast %cst_36 : f32 to vector<16x128xf32>
    %118 = arith.select %112, %116, %117 : vector<16x128xi1>, vector<16x128xf32>
    %c1_i32_37 = arith.constant 1 : i32
    %119 = vector.broadcast %c1_i32_37 : i32 to vector<1x128xi32>
    %120 = arith.addi %96, %119 : vector<1x128xi32>
    %121 = vector.broadcast %120 : vector<1x128xi32> to vector<16x128xi32>
    %122 = arith.cmpi eq, %8, %121 : vector<16x128xi32>
    %cst_38 = arith.constant 0.000000e+00 : f32
    %123 = vector.shape_cast %94 : vector<1x128xf32> to vector<1x128xf32>
    %124 = vector.broadcast %123 : vector<1x128xf32> to vector<16x128xf32>
    %125 = vector.broadcast %cst_38 : f32 to vector<16x128xf32>
    %126 = arith.select %122, %124, %125 : vector<16x128xi1>, vector<16x128xf32>
    %127 = arith.addf %118, %126 : vector<16x128xf32>
    %128 = vector.broadcast %97 : vector<1x128xi32> to vector<16x128xi32>
    %129 = arith.cmpi eq, %9, %128 : vector<16x128xi32>
    %cst_39 = arith.constant 1.000000e+00 : f32
    %130 = vector.broadcast %cst_39 : f32 to vector<1x128xf32>
    %131 = arith.subf %130, %95 : vector<1x128xf32>
    %cst_40 = arith.constant 0.000000e+00 : f32
    %132 = vector.shape_cast %131 : vector<1x128xf32> to vector<1x128xf32>
    %133 = vector.broadcast %132 : vector<1x128xf32> to vector<16x128xf32>
    %134 = vector.broadcast %cst_40 : f32 to vector<16x128xf32>
    %135 = arith.select %129, %133, %134 : vector<16x128xi1>, vector<16x128xf32>
    %c1_i32_41 = arith.constant 1 : i32
    %136 = vector.broadcast %c1_i32_41 : i32 to vector<1x128xi32>
    %137 = arith.addi %97, %136 : vector<1x128xi32>
    %138 = vector.broadcast %137 : vector<1x128xi32> to vector<16x128xi32>
    %139 = arith.cmpi eq, %9, %138 : vector<16x128xi32>
    %cst_42 = arith.constant 0.000000e+00 : f32
    %140 = vector.shape_cast %95 : vector<1x128xf32> to vector<1x128xf32>
    %141 = vector.broadcast %140 : vector<1x128xf32> to vector<16x128xf32>
    %142 = vector.broadcast %cst_42 : f32 to vector<16x128xf32>
    %143 = arith.select %139, %141, %142 : vector<16x128xi1>, vector<16x128xf32>
    %144 = arith.addf %135, %143 : vector<16x128xf32>
    %145 = vector.broadcast %110 : vector<1x128xf32> to vector<16x128xf32>
    %146 = arith.mulf %144, %145 : vector<16x128xf32>
    %147 = vector.shape_cast %127 : vector<16x128xf32> to vector<16x1x128xf32>
    %148 = vector.shape_cast %146 : vector<16x128xf32> to vector<1x16x128xf32>
    %149 = vector.broadcast %147 : vector<16x1x128xf32> to vector<16x16x128xf32>
    %150 = vector.broadcast %148 : vector<1x16x128xf32> to vector<16x16x128xf32>
    %151 = arith.mulf %149, %150 : vector<16x16x128xf32>
    %152 = vector.shape_cast %151 : vector<16x16x128xf32> to vector<256x128xf32>
    %153 = arith.truncf %152 : vector<256x128xf32> to vector<256x128xbf16>
    %cst_43 = arith.constant dense<0.000000e+00> : vector<4x128xf32>
    %154 = tpu.matmul %1, %153, %cst_43 {dimension_numbers = #tpu.dot_dimension_numbers<[1], [0], [0], [1], [0, 0, 1, 1], [], []>} : vector<4x256xbf16>, vector<256x128xbf16>, vector<4x128xf32> -> vector<4x128xf32>
    %c4 = arith.constant 4 : index
    %c0_44 = arith.constant 0 : index
    %155 = vector.load %arg10[%c4, %c0_44] : memref<36x128xf32, #tpu.memory_space<vmem>>, vector<4x128xf32>
    tpu.vector_store %arg10[%c4, %c0_44], %154 {strides = array<i32>} : memref<36x128xf32, #tpu.memory_space<vmem>>, vector<4x128xf32>,
    %156 = vector.extract_strided_slice %3 {offsets = [4, 0], sizes = [1, 128], strides = [1, 1]} : vector<18x128xf32> to vector<1x128xf32>
    %157 = vector.extract_strided_slice %3 {offsets = [5, 0], sizes = [1, 128], strides = [1, 1]} : vector<18x128xf32> to vector<1x128xf32>
    %158 = vector.extract_strided_slice %5 {offsets = [2, 0], sizes = [1, 128], strides = [1, 1]} : vector<9x128xf32> to vector<1x128xf32>
    %cst_45 = arith.constant 0.000000e+00 : f32
    %159 = vector.broadcast %cst_45 : f32 to vector<1x128xf32>
    %160 = arith.addf %6, %159 : vector<1x128xf32>
    %161 = arith.addf %160, %156 : vector<1x128xf32>
    %cst_46 = arith.constant 2.000000e+00 : f32
    %162 = vector.broadcast %cst_46 : f32 to vector<1x128xf32>
    %163 = arith.addf %7, %162 : vector<1x128xf32>
    %164 = arith.addf %163, %157 : vector<1x128xf32>
    %165 = math.floor %161 : vector<1x128xf32>
    %166 = math.floor %164 : vector<1x128xf32>
    %167 = arith.subf %161, %165 : vector<1x128xf32>
    %168 = arith.subf %164, %166 : vector<1x128xf32>
    %169 = arith.fptosi %165 : vector<1x128xf32> to vector<1x128xi32>
    %170 = arith.fptosi %166 : vector<1x128xf32> to vector<1x128xi32>
    %cst_47 = arith.constant -1.000000e+00 : f32
    %171 = vector.broadcast %cst_47 : f32 to vector<1x128xf32>
    %172 = arith.cmpf ogt, %161, %171 : vector<1x128xf32>
    %cst_48 = arith.constant -1.000000e+00 : f32
    %173 = vector.broadcast %cst_48 : f32 to vector<1x128xf32>
    %174 = arith.cmpf ogt, %164, %173 : vector<1x128xf32>
    %175 = arith.andi %172, %174 : vector<1x128xi1>
    %cst_49 = arith.constant 1.600000e+01 : f32
    %176 = vector.broadcast %cst_49 : f32 to vector<1x128xf32>
    %177 = arith.cmpf olt, %161, %176 : vector<1x128xf32>
    %178 = arith.andi %175, %177 : vector<1x128xi1>
    %cst_50 = arith.constant 1.600000e+01 : f32
    %179 = vector.broadcast %cst_50 : f32 to vector<1x128xf32>
    %180 = arith.cmpf olt, %164, %179 : vector<1x128xf32>
    %181 = arith.andi %178, %180 : vector<1x128xi1>
    %cst_51 = arith.constant 0.000000e+00 : f32
    %182 = vector.broadcast %cst_51 : f32 to vector<1x128xf32>
    %183 = arith.select %181, %158, %182 : vector<1x128xi1>, vector<1x128xf32>
    %184 = vector.broadcast %169 : vector<1x128xi32> to vector<16x128xi32>
    %185 = arith.cmpi eq, %8, %184 : vector<16x128xi32>
    %cst_52 = arith.constant 1.000000e+00 : f32
    %186 = vector.broadcast %cst_52 : f32 to vector<1x128xf32>
    %187 = arith.subf %186, %167 : vector<1x128xf32>
    %cst_53 = arith.constant 0.000000e+00 : f32
    %188 = vector.shape_cast %187 : vector<1x128xf32> to vector<1x128xf32>
    %189 = vector.broadcast %188 : vector<1x128xf32> to vector<16x128xf32>
    %190 = vector.broadcast %cst_53 : f32 to vector<16x128xf32>
    %191 = arith.select %185, %189, %190 : vector<16x128xi1>, vector<16x128xf32>
    %c1_i32_54 = arith.constant 1 : i32
    %192 = vector.broadcast %c1_i32_54 : i32 to vector<1x128xi32>
    %193 = arith.addi %169, %192 : vector<1x128xi32>
    %194 = vector.broadcast %193 : vector<1x128xi32> to vector<16x128xi32>
    %195 = arith.cmpi eq, %8, %194 : vector<16x128xi32>
    %cst_55 = arith.constant 0.000000e+00 : f32
    %196 = vector.shape_cast %167 : vector<1x128xf32> to vector<1x128xf32>
    %197 = vector.broadcast %196 : vector<1x128xf32> to vector<16x128xf32>
    %198 = vector.broadcast %cst_55 : f32 to vector<16x128xf32>
    %199 = arith.select %195, %197, %198 : vector<16x128xi1>, vector<16x128xf32>
    %200 = arith.addf %191, %199 : vector<16x128xf32>
    %201 = vector.broadcast %170 : vector<1x128xi32> to vector<16x128xi32>
    %202 = arith.cmpi eq, %9, %201 : vector<16x128xi32>
    %cst_56 = arith.constant 1.000000e+00 : f32
    %203 = vector.broadcast %cst_56 : f32 to vector<1x128xf32>
    %204 = arith.subf %203, %168 : vector<1x128xf32>
    %cst_57 = arith.constant 0.000000e+00 : f32
    %205 = vector.shape_cast %204 : vector<1x128xf32> to vector<1x128xf32>
    %206 = vector.broadcast %205 : vector<1x128xf32> to vector<16x128xf32>
    %207 = vector.broadcast %cst_57 : f32 to vector<16x128xf32>
    %208 = arith.select %202, %206, %207 : vector<16x128xi1>, vector<16x128xf32>
    %c1_i32_58 = arith.constant 1 : i32
    %209 = vector.broadcast %c1_i32_58 : i32 to vector<1x128xi32>
    %210 = arith.addi %170, %209 : vector<1x128xi32>
    %211 = vector.broadcast %210 : vector<1x128xi32> to vector<16x128xi32>
    %212 = arith.cmpi eq, %9, %211 : vector<16x128xi32>
    %cst_59 = arith.constant 0.000000e+00 : f32
    %213 = vector.shape_cast %168 : vector<1x128xf32> to vector<1x128xf32>
    %214 = vector.broadcast %213 : vector<1x128xf32> to vector<16x128xf32>
    %215 = vector.broadcast %cst_59 : f32 to vector<16x128xf32>
    %216 = arith.select %212, %214, %215 : vector<16x128xi1>, vector<16x128xf32>
    %217 = arith.addf %208, %216 : vector<16x128xf32>
    %218 = vector.broadcast %183 : vector<1x128xf32> to vector<16x128xf32>
    %219 = arith.mulf %217, %218 : vector<16x128xf32>
    %220 = vector.shape_cast %200 : vector<16x128xf32> to vector<16x1x128xf32>
    %221 = vector.shape_cast %219 : vector<16x128xf32> to vector<1x16x128xf32>
    %222 = vector.broadcast %220 : vector<16x1x128xf32> to vector<16x16x128xf32>
    %223 = vector.broadcast %221 : vector<1x16x128xf32> to vector<16x16x128xf32>
    %224 = arith.mulf %222, %223 : vector<16x16x128xf32>
    %225 = vector.shape_cast %224 : vector<16x16x128xf32> to vector<256x128xf32>
    %226 = arith.truncf %225 : vector<256x128xf32> to vector<256x128xbf16>
    %cst_60 = arith.constant dense<0.000000e+00> : vector<4x128xf32>
    %227 = tpu.matmul %1, %226, %cst_60 {dimension_numbers = #tpu.dot_dimension_numbers<[1], [0], [0], [1], [0, 0, 1, 1], [], []>} : vector<4x256xbf16>, vector<256x128xbf16>, vector<4x128xf32> -> vector<4x128xf32>
    %c8 = arith.constant 8 : index
    %c0_61 = arith.constant 0 : index
    %228 = vector.load %arg10[%c8, %c0_61] : memref<36x128xf32, #tpu.memory_space<vmem>>, vector<4x128xf32>
    tpu.vector_store %arg10[%c8, %c0_61], %227 {strides = array<i32>} : memref<36x128xf32, #tpu.memory_space<vmem>>, vector<4x128xf32>,
    %229 = vector.extract_strided_slice %3 {offsets = [6, 0], sizes = [1, 128], strides = [1, 1]} : vector<18x128xf32> to vector<1x128xf32>
    %230 = vector.extract_strided_slice %3 {offsets = [7, 0], sizes = [1, 128], strides = [1, 1]} : vector<18x128xf32> to vector<1x128xf32>
    %231 = vector.extract_strided_slice %5 {offsets = [3, 0], sizes = [1, 128], strides = [1, 1]} : vector<9x128xf32> to vector<1x128xf32>
    %cst_62 = arith.constant 1.000000e+00 : f32
    %232 = vector.broadcast %cst_62 : f32 to vector<1x128xf32>
    %233 = arith.addf %6, %232 : vector<1x128xf32>
    %234 = arith.addf %233, %229 : vector<1x128xf32>
    %cst_63 = arith.constant 0.000000e+00 : f32
    %235 = vector.broadcast %cst_63 : f32 to vector<1x128xf32>
    %236 = arith.addf %7, %235 : vector<1x128xf32>
    %237 = arith.addf %236, %230 : vector<1x128xf32>
    %238 = math.floor %234 : vector<1x128xf32>
    %239 = math.floor %237 : vector<1x128xf32>
    %240 = arith.subf %234, %238 : vector<1x128xf32>
    %241 = arith.subf %237, %239 : vector<1x128xf32>
    %242 = arith.fptosi %238 : vector<1x128xf32> to vector<1x128xi32>
    %243 = arith.fptosi %239 : vector<1x128xf32> to vector<1x128xi32>
    %cst_64 = arith.constant -1.000000e+00 : f32
    %244 = vector.broadcast %cst_64 : f32 to vector<1x128xf32>
    %245 = arith.cmpf ogt, %234, %244 : vector<1x128xf32>
    %cst_65 = arith.constant -1.000000e+00 : f32
    %246 = vector.broadcast %cst_65 : f32 to vector<1x128xf32>
    %247 = arith.cmpf ogt, %237, %246 : vector<1x128xf32>
    %248 = arith.andi %245, %247 : vector<1x128xi1>
    %cst_66 = arith.constant 1.600000e+01 : f32
    %249 = vector.broadcast %cst_66 : f32 to vector<1x128xf32>
    %250 = arith.cmpf olt, %234, %249 : vector<1x128xf32>
    %251 = arith.andi %248, %250 : vector<1x128xi1>
    %cst_67 = arith.constant 1.600000e+01 : f32
    %252 = vector.broadcast %cst_67 : f32 to vector<1x128xf32>
    %253 = arith.cmpf olt, %237, %252 : vector<1x128xf32>
    %254 = arith.andi %251, %253 : vector<1x128xi1>
    %cst_68 = arith.constant 0.000000e+00 : f32
    %255 = vector.broadcast %cst_68 : f32 to vector<1x128xf32>
    %256 = arith.select %254, %231, %255 : vector<1x128xi1>, vector<1x128xf32>
    %257 = vector.broadcast %242 : vector<1x128xi32> to vector<16x128xi32>
    %258 = arith.cmpi eq, %8, %257 : vector<16x128xi32>
    %cst_69 = arith.constant 1.000000e+00 : f32
    %259 = vector.broadcast %cst_69 : f32 to vector<1x128xf32>
    %260 = arith.subf %259, %240 : vector<1x128xf32>
    %cst_70 = arith.constant 0.000000e+00 : f32
    %261 = vector.shape_cast %260 : vector<1x128xf32> to vector<1x128xf32>
    %262 = vector.broadcast %261 : vector<1x128xf32> to vector<16x128xf32>
    %263 = vector.broadcast %cst_70 : f32 to vector<16x128xf32>
    %264 = arith.select %258, %262, %263 : vector<16x128xi1>, vector<16x128xf32>
    %c1_i32_71 = arith.constant 1 : i32
    %265 = vector.broadcast %c1_i32_71 : i32 to vector<1x128xi32>
    %266 = arith.addi %242, %265 : vector<1x128xi32>
    %267 = vector.broadcast %266 : vector<1x128xi32> to vector<16x128xi32>
    %268 = arith.cmpi eq, %8, %267 : vector<16x128xi32>
    %cst_72 = arith.constant 0.000000e+00 : f32
    %269 = vector.shape_cast %240 : vector<1x128xf32> to vector<1x128xf32>
    %270 = vector.broadcast %269 : vector<1x128xf32> to vector<16x128xf32>
    %271 = vector.broadcast %cst_72 : f32 to vector<16x128xf32>
    %272 = arith.select %268, %270, %271 : vector<16x128xi1>, vector<16x128xf32>
    %273 = arith.addf %264, %272 : vector<16x128xf32>
    %274 = vector.broadcast %243 : vector<1x128xi32> to vector<16x128xi32>
    %275 = arith.cmpi eq, %9, %274 : vector<16x128xi32>
    %cst_73 = arith.constant 1.000000e+00 : f32
    %276 = vector.broadcast %cst_73 : f32 to vector<1x128xf32>
    %277 = arith.subf %276, %241 : vector<1x128xf32>
    %cst_74 = arith.constant 0.000000e+00 : f32
    %278 = vector.shape_cast %277 : vector<1x128xf32> to vector<1x128xf32>
    %279 = vector.broadcast %278 : vector<1x128xf32> to vector<16x128xf32>
    %280 = vector.broadcast %cst_74 : f32 to vector<16x128xf32>
    %281 = arith.select %275, %279, %280 : vector<16x128xi1>, vector<16x128xf32>
    %c1_i32_75 = arith.constant 1 : i32
    %282 = vector.broadcast %c1_i32_75 : i32 to vector<1x128xi32>
    %283 = arith.addi %243, %282 : vector<1x128xi32>
    %284 = vector.broadcast %283 : vector<1x128xi32> to vector<16x128xi32>
    %285 = arith.cmpi eq, %9, %284 : vector<16x128xi32>
    %cst_76 = arith.constant 0.000000e+00 : f32
    %286 = vector.shape_cast %241 : vector<1x128xf32> to vector<1x128xf32>
    %287 = vector.broadcast %286 : vector<1x128xf32> to vector<16x128xf32>
    %288 = vector.broadcast %cst_76 : f32 to vector<16x128xf32>
    %289 = arith.select %285, %287, %288 : vector<16x128xi1>, vector<16x128xf32>
    %290 = arith.addf %281, %289 : vector<16x128xf32>
    %291 = vector.broadcast %256 : vector<1x128xf32> to vector<16x128xf32>
    %292 = arith.mulf %290, %291 : vector<16x128xf32>
    %293 = vector.shape_cast %273 : vector<16x128xf32> to vector<16x1x128xf32>
    %294 = vector.shape_cast %292 : vector<16x128xf32> to vector<1x16x128xf32>
    %295 = vector.broadcast %293 : vector<16x1x128xf32> to vector<16x16x128xf32>
    %296 = vector.broadcast %294 : vector<1x16x128xf32> to vector<16x16x128xf32>
    %297 = arith.mulf %295, %296 : vector<16x16x128xf32>
    %298 = vector.shape_cast %297 : vector<16x16x128xf32> to vector<256x128xf32>
    %299 = arith.truncf %298 : vector<256x128xf32> to vector<256x128xbf16>
    %cst_77 = arith.constant dense<0.000000e+00> : vector<4x128xf32>
    %300 = tpu.matmul %1, %299, %cst_77 {dimension_numbers = #tpu.dot_dimension_numbers<[1], [0], [0], [1], [0, 0, 1, 1], [], []>} : vector<4x256xbf16>, vector<256x128xbf16>, vector<4x128xf32> -> vector<4x128xf32>
    %c12 = arith.constant 12 : index
    %c0_78 = arith.constant 0 : index
    %301 = vector.load %arg10[%c12, %c0_78] : memref<36x128xf32, #tpu.memory_space<vmem>>, vector<4x128xf32>
    tpu.vector_store %arg10[%c12, %c0_78], %300 {strides = array<i32>} : memref<36x128xf32, #tpu.memory_space<vmem>>, vector<4x128xf32>,
    %302 = vector.extract_strided_slice %3 {offsets = [8, 0], sizes = [1, 128], strides = [1, 1]} : vector<18x128xf32> to vector<1x128xf32>
    %303 = vector.extract_strided_slice %3 {offsets = [9, 0], sizes = [1, 128], strides = [1, 1]} : vector<18x128xf32> to vector<1x128xf32>
    %304 = vector.extract_strided_slice %5 {offsets = [4, 0], sizes = [1, 128], strides = [1, 1]} : vector<9x128xf32> to vector<1x128xf32>
    %cst_79 = arith.constant 1.000000e+00 : f32
    %305 = vector.broadcast %cst_79 : f32 to vector<1x128xf32>
    %306 = arith.addf %6, %305 : vector<1x128xf32>
    %307 = arith.addf %306, %302 : vector<1x128xf32>
    %cst_80 = arith.constant 1.000000e+00 : f32
    %308 = vector.broadcast %cst_80 : f32 to vector<1x128xf32>
    %309 = arith.addf %7, %308 : vector<1x128xf32>
    %310 = arith.addf %309, %303 : vector<1x128xf32>
    %311 = math.floor %307 : vector<1x128xf32>
    %312 = math.floor %310 : vector<1x128xf32>
    %313 = arith.subf %307, %311 : vector<1x128xf32>
    %314 = arith.subf %310, %312 : vector<1x128xf32>
    %315 = arith.fptosi %311 : vector<1x128xf32> to vector<1x128xi32>
    %316 = arith.fptosi %312 : vector<1x128xf32> to vector<1x128xi32>
    %cst_81 = arith.constant -1.000000e+00 : f32
    %317 = vector.broadcast %cst_81 : f32 to vector<1x128xf32>
    %318 = arith.cmpf ogt, %307, %317 : vector<1x128xf32>
    %cst_82 = arith.constant -1.000000e+00 : f32
    %319 = vector.broadcast %cst_82 : f32 to vector<1x128xf32>
    %320 = arith.cmpf ogt, %310, %319 : vector<1x128xf32>
    %321 = arith.andi %318, %320 : vector<1x128xi1>
    %cst_83 = arith.constant 1.600000e+01 : f32
    %322 = vector.broadcast %cst_83 : f32 to vector<1x128xf32>
    %323 = arith.cmpf olt, %307, %322 : vector<1x128xf32>
    %324 = arith.andi %321, %323 : vector<1x128xi1>
    %cst_84 = arith.constant 1.600000e+01 : f32
    %325 = vector.broadcast %cst_84 : f32 to vector<1x128xf32>
    %326 = arith.cmpf olt, %310, %325 : vector<1x128xf32>
    %327 = arith.andi %324, %326 : vector<1x128xi1>
    %cst_85 = arith.constant 0.000000e+00 : f32
    %328 = vector.broadcast %cst_85 : f32 to vector<1x128xf32>
    %329 = arith.select %327, %304, %328 : vector<1x128xi1>, vector<1x128xf32>
    %330 = vector.broadcast %315 : vector<1x128xi32> to vector<16x128xi32>
    %331 = arith.cmpi eq, %8, %330 : vector<16x128xi32>
    %cst_86 = arith.constant 1.000000e+00 : f32
    %332 = vector.broadcast %cst_86 : f32 to vector<1x128xf32>
    %333 = arith.subf %332, %313 : vector<1x128xf32>
    %cst_87 = arith.constant 0.000000e+00 : f32
    %334 = vector.shape_cast %333 : vector<1x128xf32> to vector<1x128xf32>
    %335 = vector.broadcast %334 : vector<1x128xf32> to vector<16x128xf32>
    %336 = vector.broadcast %cst_87 : f32 to vector<16x128xf32>
    %337 = arith.select %331, %335, %336 : vector<16x128xi1>, vector<16x128xf32>
    %c1_i32_88 = arith.constant 1 : i32
    %338 = vector.broadcast %c1_i32_88 : i32 to vector<1x128xi32>
    %339 = arith.addi %315, %338 : vector<1x128xi32>
    %340 = vector.broadcast %339 : vector<1x128xi32> to vector<16x128xi32>
    %341 = arith.cmpi eq, %8, %340 : vector<16x128xi32>
    %cst_89 = arith.constant 0.000000e+00 : f32
    %342 = vector.shape_cast %313 : vector<1x128xf32> to vector<1x128xf32>
    %343 = vector.broadcast %342 : vector<1x128xf32> to vector<16x128xf32>
    %344 = vector.broadcast %cst_89 : f32 to vector<16x128xf32>
    %345 = arith.select %341, %343, %344 : vector<16x128xi1>, vector<16x128xf32>
    %346 = arith.addf %337, %345 : vector<16x128xf32>
    %347 = vector.broadcast %316 : vector<1x128xi32> to vector<16x128xi32>
    %348 = arith.cmpi eq, %9, %347 : vector<16x128xi32>
    %cst_90 = arith.constant 1.000000e+00 : f32
    %349 = vector.broadcast %cst_90 : f32 to vector<1x128xf32>
    %350 = arith.subf %349, %314 : vector<1x128xf32>
    %cst_91 = arith.constant 0.000000e+00 : f32
    %351 = vector.shape_cast %350 : vector<1x128xf32> to vector<1x128xf32>
    %352 = vector.broadcast %351 : vector<1x128xf32> to vector<16x128xf32>
    %353 = vector.broadcast %cst_91 : f32 to vector<16x128xf32>
    %354 = arith.select %348, %352, %353 : vector<16x128xi1>, vector<16x128xf32>
    %c1_i32_92 = arith.constant 1 : i32
    %355 = vector.broadcast %c1_i32_92 : i32 to vector<1x128xi32>
    %356 = arith.addi %316, %355 : vector<1x128xi32>
    %357 = vector.broadcast %356 : vector<1x128xi32> to vector<16x128xi32>
    %358 = arith.cmpi eq, %9, %357 : vector<16x128xi32>
    %cst_93 = arith.constant 0.000000e+00 : f32
    %359 = vector.shape_cast %314 : vector<1x128xf32> to vector<1x128xf32>
    %360 = vector.broadcast %359 : vector<1x128xf32> to vector<16x128xf32>
    %361 = vector.broadcast %cst_93 : f32 to vector<16x128xf32>
    %362 = arith.select %358, %360, %361 : vector<16x128xi1>, vector<16x128xf32>
    %363 = arith.addf %354, %362 : vector<16x128xf32>
    %364 = vector.broadcast %329 : vector<1x128xf32> to vector<16x128xf32>
    %365 = arith.mulf %363, %364 : vector<16x128xf32>
    %366 = vector.shape_cast %346 : vector<16x128xf32> to vector<16x1x128xf32>
    %367 = vector.shape_cast %365 : vector<16x128xf32> to vector<1x16x128xf32>
    %368 = vector.broadcast %366 : vector<16x1x128xf32> to vector<16x16x128xf32>
    %369 = vector.broadcast %367 : vector<1x16x128xf32> to vector<16x16x128xf32>
    %370 = arith.mulf %368, %369 : vector<16x16x128xf32>
    %371 = vector.shape_cast %370 : vector<16x16x128xf32> to vector<256x128xf32>
    %372 = arith.truncf %371 : vector<256x128xf32> to vector<256x128xbf16>
    %cst_94 = arith.constant dense<0.000000e+00> : vector<4x128xf32>
    %373 = tpu.matmul %1, %372, %cst_94 {dimension_numbers = #tpu.dot_dimension_numbers<[1], [0], [0], [1], [0, 0, 1, 1], [], []>} : vector<4x256xbf16>, vector<256x128xbf16>, vector<4x128xf32> -> vector<4x128xf32>
    %c16 = arith.constant 16 : index
    %c0_95 = arith.constant 0 : index
    %374 = vector.load %arg10[%c16, %c0_95] : memref<36x128xf32, #tpu.memory_space<vmem>>, vector<4x128xf32>
    tpu.vector_store %arg10[%c16, %c0_95], %373 {strides = array<i32>} : memref<36x128xf32, #tpu.memory_space<vmem>>, vector<4x128xf32>,
    %375 = vector.extract_strided_slice %3 {offsets = [10, 0], sizes = [1, 128], strides = [1, 1]} : vector<18x128xf32> to vector<1x128xf32>
    %376 = vector.extract_strided_slice %3 {offsets = [11, 0], sizes = [1, 128], strides = [1, 1]} : vector<18x128xf32> to vector<1x128xf32>
    %377 = vector.extract_strided_slice %5 {offsets = [5, 0], sizes = [1, 128], strides = [1, 1]} : vector<9x128xf32> to vector<1x128xf32>
    %cst_96 = arith.constant 1.000000e+00 : f32
    %378 = vector.broadcast %cst_96 : f32 to vector<1x128xf32>
    %379 = arith.addf %6, %378 : vector<1x128xf32>
    %380 = arith.addf %379, %375 : vector<1x128xf32>
    %cst_97 = arith.constant 2.000000e+00 : f32
    %381 = vector.broadcast %cst_97 : f32 to vector<1x128xf32>
    %382 = arith.addf %7, %381 : vector<1x128xf32>
    %383 = arith.addf %382, %376 : vector<1x128xf32>
    %384 = math.floor %380 : vector<1x128xf32>
    %385 = math.floor %383 : vector<1x128xf32>
    %386 = arith.subf %380, %384 : vector<1x128xf32>
    %387 = arith.subf %383, %385 : vector<1x128xf32>
    %388 = arith.fptosi %384 : vector<1x128xf32> to vector<1x128xi32>
    %389 = arith.fptosi %385 : vector<1x128xf32> to vector<1x128xi32>
    %cst_98 = arith.constant -1.000000e+00 : f32
    %390 = vector.broadcast %cst_98 : f32 to vector<1x128xf32>
    %391 = arith.cmpf ogt, %380, %390 : vector<1x128xf32>
    %cst_99 = arith.constant -1.000000e+00 : f32
    %392 = vector.broadcast %cst_99 : f32 to vector<1x128xf32>
    %393 = arith.cmpf ogt, %383, %392 : vector<1x128xf32>
    %394 = arith.andi %391, %393 : vector<1x128xi1>
    %cst_100 = arith.constant 1.600000e+01 : f32
    %395 = vector.broadcast %cst_100 : f32 to vector<1x128xf32>
    %396 = arith.cmpf olt, %380, %395 : vector<1x128xf32>
    %397 = arith.andi %394, %396 : vector<1x128xi1>
    %cst_101 = arith.constant 1.600000e+01 : f32
    %398 = vector.broadcast %cst_101 : f32 to vector<1x128xf32>
    %399 = arith.cmpf olt, %383, %398 : vector<1x128xf32>
    %400 = arith.andi %397, %399 : vector<1x128xi1>
    %cst_102 = arith.constant 0.000000e+00 : f32
    %401 = vector.broadcast %cst_102 : f32 to vector<1x128xf32>
    %402 = arith.select %400, %377, %401 : vector<1x128xi1>, vector<1x128xf32>
    %403 = vector.broadcast %388 : vector<1x128xi32> to vector<16x128xi32>
    %404 = arith.cmpi eq, %8, %403 : vector<16x128xi32>
    %cst_103 = arith.constant 1.000000e+00 : f32
    %405 = vector.broadcast %cst_103 : f32 to vector<1x128xf32>
    %406 = arith.subf %405, %386 : vector<1x128xf32>
    %cst_104 = arith.constant 0.000000e+00 : f32
    %407 = vector.shape_cast %406 : vector<1x128xf32> to vector<1x128xf32>
    %408 = vector.broadcast %407 : vector<1x128xf32> to vector<16x128xf32>
    %409 = vector.broadcast %cst_104 : f32 to vector<16x128xf32>
    %410 = arith.select %404, %408, %409 : vector<16x128xi1>, vector<16x128xf32>
    %c1_i32_105 = arith.constant 1 : i32
    %411 = vector.broadcast %c1_i32_105 : i32 to vector<1x128xi32>
    %412 = arith.addi %388, %411 : vector<1x128xi32>
    %413 = vector.broadcast %412 : vector<1x128xi32> to vector<16x128xi32>
    %414 = arith.cmpi eq, %8, %413 : vector<16x128xi32>
    %cst_106 = arith.constant 0.000000e+00 : f32
    %415 = vector.shape_cast %386 : vector<1x128xf32> to vector<1x128xf32>
    %416 = vector.broadcast %415 : vector<1x128xf32> to vector<16x128xf32>
    %417 = vector.broadcast %cst_106 : f32 to vector<16x128xf32>
    %418 = arith.select %414, %416, %417 : vector<16x128xi1>, vector<16x128xf32>
    %419 = arith.addf %410, %418 : vector<16x128xf32>
    %420 = vector.broadcast %389 : vector<1x128xi32> to vector<16x128xi32>
    %421 = arith.cmpi eq, %9, %420 : vector<16x128xi32>
    %cst_107 = arith.constant 1.000000e+00 : f32
    %422 = vector.broadcast %cst_107 : f32 to vector<1x128xf32>
    %423 = arith.subf %422, %387 : vector<1x128xf32>
    %cst_108 = arith.constant 0.000000e+00 : f32
    %424 = vector.shape_cast %423 : vector<1x128xf32> to vector<1x128xf32>
    %425 = vector.broadcast %424 : vector<1x128xf32> to vector<16x128xf32>
    %426 = vector.broadcast %cst_108 : f32 to vector<16x128xf32>
    %427 = arith.select %421, %425, %426 : vector<16x128xi1>, vector<16x128xf32>
    %c1_i32_109 = arith.constant 1 : i32
    %428 = vector.broadcast %c1_i32_109 : i32 to vector<1x128xi32>
    %429 = arith.addi %389, %428 : vector<1x128xi32>
    %430 = vector.broadcast %429 : vector<1x128xi32> to vector<16x128xi32>
    %431 = arith.cmpi eq, %9, %430 : vector<16x128xi32>
    %cst_110 = arith.constant 0.000000e+00 : f32
    %432 = vector.shape_cast %387 : vector<1x128xf32> to vector<1x128xf32>
    %433 = vector.broadcast %432 : vector<1x128xf32> to vector<16x128xf32>
    %434 = vector.broadcast %cst_110 : f32 to vector<16x128xf32>
    %435 = arith.select %431, %433, %434 : vector<16x128xi1>, vector<16x128xf32>
    %436 = arith.addf %427, %435 : vector<16x128xf32>
    %437 = vector.broadcast %402 : vector<1x128xf32> to vector<16x128xf32>
    %438 = arith.mulf %436, %437 : vector<16x128xf32>
    %439 = vector.shape_cast %419 : vector<16x128xf32> to vector<16x1x128xf32>
    %440 = vector.shape_cast %438 : vector<16x128xf32> to vector<1x16x128xf32>
    %441 = vector.broadcast %439 : vector<16x1x128xf32> to vector<16x16x128xf32>
    %442 = vector.broadcast %440 : vector<1x16x128xf32> to vector<16x16x128xf32>
    %443 = arith.mulf %441, %442 : vector<16x16x128xf32>
    %444 = vector.shape_cast %443 : vector<16x16x128xf32> to vector<256x128xf32>
    %445 = arith.truncf %444 : vector<256x128xf32> to vector<256x128xbf16>
    %cst_111 = arith.constant dense<0.000000e+00> : vector<4x128xf32>
    %446 = tpu.matmul %1, %445, %cst_111 {dimension_numbers = #tpu.dot_dimension_numbers<[1], [0], [0], [1], [0, 0, 1, 1], [], []>} : vector<4x256xbf16>, vector<256x128xbf16>, vector<4x128xf32> -> vector<4x128xf32>
    %c20 = arith.constant 20 : index
    %c0_112 = arith.constant 0 : index
    %447 = vector.load %arg10[%c20, %c0_112] : memref<36x128xf32, #tpu.memory_space<vmem>>, vector<4x128xf32>
    tpu.vector_store %arg10[%c20, %c0_112], %446 {strides = array<i32>} : memref<36x128xf32, #tpu.memory_space<vmem>>, vector<4x128xf32>,
    %448 = vector.extract_strided_slice %3 {offsets = [12, 0], sizes = [1, 128], strides = [1, 1]} : vector<18x128xf32> to vector<1x128xf32>
    %449 = vector.extract_strided_slice %3 {offsets = [13, 0], sizes = [1, 128], strides = [1, 1]} : vector<18x128xf32> to vector<1x128xf32>
    %450 = vector.extract_strided_slice %5 {offsets = [6, 0], sizes = [1, 128], strides = [1, 1]} : vector<9x128xf32> to vector<1x128xf32>
    %cst_113 = arith.constant 2.000000e+00 : f32
    %451 = vector.broadcast %cst_113 : f32 to vector<1x128xf32>
    %452 = arith.addf %6, %451 : vector<1x128xf32>
    %453 = arith.addf %452, %448 : vector<1x128xf32>
    %cst_114 = arith.constant 0.000000e+00 : f32
    %454 = vector.broadcast %cst_114 : f32 to vector<1x128xf32>
    %455 = arith.addf %7, %454 : vector<1x128xf32>
    %456 = arith.addf %455, %449 : vector<1x128xf32>
    %457 = math.floor %453 : vector<1x128xf32>
    %458 = math.floor %456 : vector<1x128xf32>
    %459 = arith.subf %453, %457 : vector<1x128xf32>
    %460 = arith.subf %456, %458 : vector<1x128xf32>
    %461 = arith.fptosi %457 : vector<1x128xf32> to vector<1x128xi32>
    %462 = arith.fptosi %458 : vector<1x128xf32> to vector<1x128xi32>
    %cst_115 = arith.constant -1.000000e+00 : f32
    %463 = vector.broadcast %cst_115 : f32 to vector<1x128xf32>
    %464 = arith.cmpf ogt, %453, %463 : vector<1x128xf32>
    %cst_116 = arith.constant -1.000000e+00 : f32
    %465 = vector.broadcast %cst_116 : f32 to vector<1x128xf32>
    %466 = arith.cmpf ogt, %456, %465 : vector<1x128xf32>
    %467 = arith.andi %464, %466 : vector<1x128xi1>
    %cst_117 = arith.constant 1.600000e+01 : f32
    %468 = vector.broadcast %cst_117 : f32 to vector<1x128xf32>
    %469 = arith.cmpf olt, %453, %468 : vector<1x128xf32>
    %470 = arith.andi %467, %469 : vector<1x128xi1>
    %cst_118 = arith.constant 1.600000e+01 : f32
    %471 = vector.broadcast %cst_118 : f32 to vector<1x128xf32>
    %472 = arith.cmpf olt, %456, %471 : vector<1x128xf32>
    %473 = arith.andi %470, %472 : vector<1x128xi1>
    %cst_119 = arith.constant 0.000000e+00 : f32
    %474 = vector.broadcast %cst_119 : f32 to vector<1x128xf32>
    %475 = arith.select %473, %450, %474 : vector<1x128xi1>, vector<1x128xf32>
    %476 = vector.broadcast %461 : vector<1x128xi32> to vector<16x128xi32>
    %477 = arith.cmpi eq, %8, %476 : vector<16x128xi32>
    %cst_120 = arith.constant 1.000000e+00 : f32
    %478 = vector.broadcast %cst_120 : f32 to vector<1x128xf32>
    %479 = arith.subf %478, %459 : vector<1x128xf32>
    %cst_121 = arith.constant 0.000000e+00 : f32
    %480 = vector.shape_cast %479 : vector<1x128xf32> to vector<1x128xf32>
    %481 = vector.broadcast %480 : vector<1x128xf32> to vector<16x128xf32>
    %482 = vector.broadcast %cst_121 : f32 to vector<16x128xf32>
    %483 = arith.select %477, %481, %482 : vector<16x128xi1>, vector<16x128xf32>
    %c1_i32_122 = arith.constant 1 : i32
    %484 = vector.broadcast %c1_i32_122 : i32 to vector<1x128xi32>
    %485 = arith.addi %461, %484 : vector<1x128xi32>
    %486 = vector.broadcast %485 : vector<1x128xi32> to vector<16x128xi32>
    %487 = arith.cmpi eq, %8, %486 : vector<16x128xi32>
    %cst_123 = arith.constant 0.000000e+00 : f32
    %488 = vector.shape_cast %459 : vector<1x128xf32> to vector<1x128xf32>
    %489 = vector.broadcast %488 : vector<1x128xf32> to vector<16x128xf32>
    %490 = vector.broadcast %cst_123 : f32 to vector<16x128xf32>
    %491 = arith.select %487, %489, %490 : vector<16x128xi1>, vector<16x128xf32>
    %492 = arith.addf %483, %491 : vector<16x128xf32>
    %493 = vector.broadcast %462 : vector<1x128xi32> to vector<16x128xi32>
    %494 = arith.cmpi eq, %9, %493 : vector<16x128xi32>
    %cst_124 = arith.constant 1.000000e+00 : f32
    %495 = vector.broadcast %cst_124 : f32 to vector<1x128xf32>
    %496 = arith.subf %495, %460 : vector<1x128xf32>
    %cst_125 = arith.constant 0.000000e+00 : f32
    %497 = vector.shape_cast %496 : vector<1x128xf32> to vector<1x128xf32>
    %498 = vector.broadcast %497 : vector<1x128xf32> to vector<16x128xf32>
    %499 = vector.broadcast %cst_125 : f32 to vector<16x128xf32>
    %500 = arith.select %494, %498, %499 : vector<16x128xi1>, vector<16x128xf32>
    %c1_i32_126 = arith.constant 1 : i32
    %501 = vector.broadcast %c1_i32_126 : i32 to vector<1x128xi32>
    %502 = arith.addi %462, %501 : vector<1x128xi32>
    %503 = vector.broadcast %502 : vector<1x128xi32> to vector<16x128xi32>
    %504 = arith.cmpi eq, %9, %503 : vector<16x128xi32>
    %cst_127 = arith.constant 0.000000e+00 : f32
    %505 = vector.shape_cast %460 : vector<1x128xf32> to vector<1x128xf32>
    %506 = vector.broadcast %505 : vector<1x128xf32> to vector<16x128xf32>
    %507 = vector.broadcast %cst_127 : f32 to vector<16x128xf32>
    %508 = arith.select %504, %506, %507 : vector<16x128xi1>, vector<16x128xf32>
    %509 = arith.addf %500, %508 : vector<16x128xf32>
    %510 = vector.broadcast %475 : vector<1x128xf32> to vector<16x128xf32>
    %511 = arith.mulf %509, %510 : vector<16x128xf32>
    %512 = vector.shape_cast %492 : vector<16x128xf32> to vector<16x1x128xf32>
    %513 = vector.shape_cast %511 : vector<16x128xf32> to vector<1x16x128xf32>
    %514 = vector.broadcast %512 : vector<16x1x128xf32> to vector<16x16x128xf32>
    %515 = vector.broadcast %513 : vector<1x16x128xf32> to vector<16x16x128xf32>
    %516 = arith.mulf %514, %515 : vector<16x16x128xf32>
    %517 = vector.shape_cast %516 : vector<16x16x128xf32> to vector<256x128xf32>
    %518 = arith.truncf %517 : vector<256x128xf32> to vector<256x128xbf16>
    %cst_128 = arith.constant dense<0.000000e+00> : vector<4x128xf32>
    %519 = tpu.matmul %1, %518, %cst_128 {dimension_numbers = #tpu.dot_dimension_numbers<[1], [0], [0], [1], [0, 0, 1, 1], [], []>} : vector<4x256xbf16>, vector<256x128xbf16>, vector<4x128xf32> -> vector<4x128xf32>
    %c24 = arith.constant 24 : index
    %c0_129 = arith.constant 0 : index
    %520 = vector.load %arg10[%c24, %c0_129] : memref<36x128xf32, #tpu.memory_space<vmem>>, vector<4x128xf32>
    tpu.vector_store %arg10[%c24, %c0_129], %519 {strides = array<i32>} : memref<36x128xf32, #tpu.memory_space<vmem>>, vector<4x128xf32>,
    %521 = vector.extract_strided_slice %3 {offsets = [14, 0], sizes = [1, 128], strides = [1, 1]} : vector<18x128xf32> to vector<1x128xf32>
    %522 = vector.extract_strided_slice %3 {offsets = [15, 0], sizes = [1, 128], strides = [1, 1]} : vector<18x128xf32> to vector<1x128xf32>
    %523 = vector.extract_strided_slice %5 {offsets = [7, 0], sizes = [1, 128], strides = [1, 1]} : vector<9x128xf32> to vector<1x128xf32>
    %cst_130 = arith.constant 2.000000e+00 : f32
    %524 = vector.broadcast %cst_130 : f32 to vector<1x128xf32>
    %525 = arith.addf %6, %524 : vector<1x128xf32>
    %526 = arith.addf %525, %521 : vector<1x128xf32>
    %cst_131 = arith.constant 1.000000e+00 : f32
    %527 = vector.broadcast %cst_131 : f32 to vector<1x128xf32>
    %528 = arith.addf %7, %527 : vector<1x128xf32>
    %529 = arith.addf %528, %522 : vector<1x128xf32>
    %530 = math.floor %526 : vector<1x128xf32>
    %531 = math.floor %529 : vector<1x128xf32>
    %532 = arith.subf %526, %530 : vector<1x128xf32>
    %533 = arith.subf %529, %531 : vector<1x128xf32>
    %534 = arith.fptosi %530 : vector<1x128xf32> to vector<1x128xi32>
    %535 = arith.fptosi %531 : vector<1x128xf32> to vector<1x128xi32>
    %cst_132 = arith.constant -1.000000e+00 : f32
    %536 = vector.broadcast %cst_132 : f32 to vector<1x128xf32>
    %537 = arith.cmpf ogt, %526, %536 : vector<1x128xf32>
    %cst_133 = arith.constant -1.000000e+00 : f32
    %538 = vector.broadcast %cst_133 : f32 to vector<1x128xf32>
    %539 = arith.cmpf ogt, %529, %538 : vector<1x128xf32>
    %540 = arith.andi %537, %539 : vector<1x128xi1>
    %cst_134 = arith.constant 1.600000e+01 : f32
    %541 = vector.broadcast %cst_134 : f32 to vector<1x128xf32>
    %542 = arith.cmpf olt, %526, %541 : vector<1x128xf32>
    %543 = arith.andi %540, %542 : vector<1x128xi1>
    %cst_135 = arith.constant 1.600000e+01 : f32
    %544 = vector.broadcast %cst_135 : f32 to vector<1x128xf32>
    %545 = arith.cmpf olt, %529, %544 : vector<1x128xf32>
    %546 = arith.andi %543, %545 : vector<1x128xi1>
    %cst_136 = arith.constant 0.000000e+00 : f32
    %547 = vector.broadcast %cst_136 : f32 to vector<1x128xf32>
    %548 = arith.select %546, %523, %547 : vector<1x128xi1>, vector<1x128xf32>
    %549 = vector.broadcast %534 : vector<1x128xi32> to vector<16x128xi32>
    %550 = arith.cmpi eq, %8, %549 : vector<16x128xi32>
    %cst_137 = arith.constant 1.000000e+00 : f32
    %551 = vector.broadcast %cst_137 : f32 to vector<1x128xf32>
    %552 = arith.subf %551, %532 : vector<1x128xf32>
    %cst_138 = arith.constant 0.000000e+00 : f32
    %553 = vector.shape_cast %552 : vector<1x128xf32> to vector<1x128xf32>
    %554 = vector.broadcast %553 : vector<1x128xf32> to vector<16x128xf32>
    %555 = vector.broadcast %cst_138 : f32 to vector<16x128xf32>
    %556 = arith.select %550, %554, %555 : vector<16x128xi1>, vector<16x128xf32>
    %c1_i32_139 = arith.constant 1 : i32
    %557 = vector.broadcast %c1_i32_139 : i32 to vector<1x128xi32>
    %558 = arith.addi %534, %557 : vector<1x128xi32>
    %559 = vector.broadcast %558 : vector<1x128xi32> to vector<16x128xi32>
    %560 = arith.cmpi eq, %8, %559 : vector<16x128xi32>
    %cst_140 = arith.constant 0.000000e+00 : f32
    %561 = vector.shape_cast %532 : vector<1x128xf32> to vector<1x128xf32>
    %562 = vector.broadcast %561 : vector<1x128xf32> to vector<16x128xf32>
    %563 = vector.broadcast %cst_140 : f32 to vector<16x128xf32>
    %564 = arith.select %560, %562, %563 : vector<16x128xi1>, vector<16x128xf32>
    %565 = arith.addf %556, %564 : vector<16x128xf32>
    %566 = vector.broadcast %535 : vector<1x128xi32> to vector<16x128xi32>
    %567 = arith.cmpi eq, %9, %566 : vector<16x128xi32>
    %cst_141 = arith.constant 1.000000e+00 : f32
    %568 = vector.broadcast %cst_141 : f32 to vector<1x128xf32>
    %569 = arith.subf %568, %533 : vector<1x128xf32>
    %cst_142 = arith.constant 0.000000e+00 : f32
    %570 = vector.shape_cast %569 : vector<1x128xf32> to vector<1x128xf32>
    %571 = vector.broadcast %570 : vector<1x128xf32> to vector<16x128xf32>
    %572 = vector.broadcast %cst_142 : f32 to vector<16x128xf32>
    %573 = arith.select %567, %571, %572 : vector<16x128xi1>, vector<16x128xf32>
    %c1_i32_143 = arith.constant 1 : i32
    %574 = vector.broadcast %c1_i32_143 : i32 to vector<1x128xi32>
    %575 = arith.addi %535, %574 : vector<1x128xi32>
    %576 = vector.broadcast %575 : vector<1x128xi32> to vector<16x128xi32>
    %577 = arith.cmpi eq, %9, %576 : vector<16x128xi32>
    %cst_144 = arith.constant 0.000000e+00 : f32
    %578 = vector.shape_cast %533 : vector<1x128xf32> to vector<1x128xf32>
    %579 = vector.broadcast %578 : vector<1x128xf32> to vector<16x128xf32>
    %580 = vector.broadcast %cst_144 : f32 to vector<16x128xf32>
    %581 = arith.select %577, %579, %580 : vector<16x128xi1>, vector<16x128xf32>
    %582 = arith.addf %573, %581 : vector<16x128xf32>
    %583 = vector.broadcast %548 : vector<1x128xf32> to vector<16x128xf32>
    %584 = arith.mulf %582, %583 : vector<16x128xf32>
    %585 = vector.shape_cast %565 : vector<16x128xf32> to vector<16x1x128xf32>
    %586 = vector.shape_cast %584 : vector<16x128xf32> to vector<1x16x128xf32>
    %587 = vector.broadcast %585 : vector<16x1x128xf32> to vector<16x16x128xf32>
    %588 = vector.broadcast %586 : vector<1x16x128xf32> to vector<16x16x128xf32>
    %589 = arith.mulf %587, %588 : vector<16x16x128xf32>
    %590 = vector.shape_cast %589 : vector<16x16x128xf32> to vector<256x128xf32>
    %591 = arith.truncf %590 : vector<256x128xf32> to vector<256x128xbf16>
    %cst_145 = arith.constant dense<0.000000e+00> : vector<4x128xf32>
    %592 = tpu.matmul %1, %591, %cst_145 {dimension_numbers = #tpu.dot_dimension_numbers<[1], [0], [0], [1], [0, 0, 1, 1], [], []>} : vector<4x256xbf16>, vector<256x128xbf16>, vector<4x128xf32> -> vector<4x128xf32>
    %c28 = arith.constant 28 : index
    %c0_146 = arith.constant 0 : index
    %593 = vector.load %arg10[%c28, %c0_146] : memref<36x128xf32, #tpu.memory_space<vmem>>, vector<4x128xf32>
    tpu.vector_store %arg10[%c28, %c0_146], %592 {strides = array<i32>} : memref<36x128xf32, #tpu.memory_space<vmem>>, vector<4x128xf32>,
    %594 = vector.extract_strided_slice %3 {offsets = [16, 0], sizes = [1, 128], strides = [1, 1]} : vector<18x128xf32> to vector<1x128xf32>
    %595 = vector.extract_strided_slice %3 {offsets = [17, 0], sizes = [1, 128], strides = [1, 1]} : vector<18x128xf32> to vector<1x128xf32>
    %596 = vector.extract_strided_slice %5 {offsets = [8, 0], sizes = [1, 128], strides = [1, 1]} : vector<9x128xf32> to vector<1x128xf32>
    %cst_147 = arith.constant 2.000000e+00 : f32
    %597 = vector.broadcast %cst_147 : f32 to vector<1x128xf32>
    %598 = arith.addf %6, %597 : vector<1x128xf32>
    %599 = arith.addf %598, %594 : vector<1x128xf32>
    %cst_148 = arith.constant 2.000000e+00 : f32
    %600 = vector.broadcast %cst_148 : f32 to vector<1x128xf32>
    %601 = arith.addf %7, %600 : vector<1x128xf32>
    %602 = arith.addf %601, %595 : vector<1x128xf32>
    %603 = math.floor %599 : vector<1x128xf32>
    %604 = math.floor %602 : vector<1x128xf32>
    %605 = arith.subf %599, %603 : vector<1x128xf32>
    %606 = arith.subf %602, %604 : vector<1x128xf32>
    %607 = arith.fptosi %603 : vector<1x128xf32> to vector<1x128xi32>
    %608 = arith.fptosi %604 : vector<1x128xf32> to vector<1x128xi32>
    %cst_149 = arith.constant -1.000000e+00 : f32
    %609 = vector.broadcast %cst_149 : f32 to vector<1x128xf32>
    %610 = arith.cmpf ogt, %599, %609 : vector<1x128xf32>
    %cst_150 = arith.constant -1.000000e+00 : f32
    %611 = vector.broadcast %cst_150 : f32 to vector<1x128xf32>
    %612 = arith.cmpf ogt, %602, %611 : vector<1x128xf32>
    %613 = arith.andi %610, %612 : vector<1x128xi1>
    %cst_151 = arith.constant 1.600000e+01 : f32
    %614 = vector.broadcast %cst_151 : f32 to vector<1x128xf32>
    %615 = arith.cmpf olt, %599, %614 : vector<1x128xf32>
    %616 = arith.andi %613, %615 : vector<1x128xi1>
    %cst_152 = arith.constant 1.600000e+01 : f32
    %617 = vector.broadcast %cst_152 : f32 to vector<1x128xf32>
    %618 = arith.cmpf olt, %602, %617 : vector<1x128xf32>
    %619 = arith.andi %616, %618 : vector<1x128xi1>
    %cst_153 = arith.constant 0.000000e+00 : f32
    %620 = vector.broadcast %cst_153 : f32 to vector<1x128xf32>
    %621 = arith.select %619, %596, %620 : vector<1x128xi1>, vector<1x128xf32>
    %622 = vector.broadcast %607 : vector<1x128xi32> to vector<16x128xi32>
    %623 = arith.cmpi eq, %8, %622 : vector<16x128xi32>
    %cst_154 = arith.constant 1.000000e+00 : f32
    %624 = vector.broadcast %cst_154 : f32 to vector<1x128xf32>
    %625 = arith.subf %624, %605 : vector<1x128xf32>
    %cst_155 = arith.constant 0.000000e+00 : f32
    %626 = vector.shape_cast %625 : vector<1x128xf32> to vector<1x128xf32>
    %627 = vector.broadcast %626 : vector<1x128xf32> to vector<16x128xf32>
    %628 = vector.broadcast %cst_155 : f32 to vector<16x128xf32>
    %629 = arith.select %623, %627, %628 : vector<16x128xi1>, vector<16x128xf32>
    %c1_i32_156 = arith.constant 1 : i32
    %630 = vector.broadcast %c1_i32_156 : i32 to vector<1x128xi32>
    %631 = arith.addi %607, %630 : vector<1x128xi32>
    %632 = vector.broadcast %631 : vector<1x128xi32> to vector<16x128xi32>
    %633 = arith.cmpi eq, %8, %632 : vector<16x128xi32>
    %cst_157 = arith.constant 0.000000e+00 : f32
    %634 = vector.shape_cast %605 : vector<1x128xf32> to vector<1x128xf32>
    %635 = vector.broadcast %634 : vector<1x128xf32> to vector<16x128xf32>
    %636 = vector.broadcast %cst_157 : f32 to vector<16x128xf32>
    %637 = arith.select %633, %635, %636 : vector<16x128xi1>, vector<16x128xf32>
    %638 = arith.addf %629, %637 : vector<16x128xf32>
    %639 = vector.broadcast %608 : vector<1x128xi32> to vector<16x128xi32>
    %640 = arith.cmpi eq, %9, %639 : vector<16x128xi32>
    %cst_158 = arith.constant 1.000000e+00 : f32
    %641 = vector.broadcast %cst_158 : f32 to vector<1x128xf32>
    %642 = arith.subf %641, %606 : vector<1x128xf32>
    %cst_159 = arith.constant 0.000000e+00 : f32
    %643 = vector.shape_cast %642 : vector<1x128xf32> to vector<1x128xf32>
    %644 = vector.broadcast %643 : vector<1x128xf32> to vector<16x128xf32>
    %645 = vector.broadcast %cst_159 : f32 to vector<16x128xf32>
    %646 = arith.select %640, %644, %645 : vector<16x128xi1>, vector<16x128xf32>
    %c1_i32_160 = arith.constant 1 : i32
    %647 = vector.broadcast %c1_i32_160 : i32 to vector<1x128xi32>
    %648 = arith.addi %608, %647 : vector<1x128xi32>
    %649 = vector.broadcast %648 : vector<1x128xi32> to vector<16x128xi32>
    %650 = arith.cmpi eq, %9, %649 : vector<16x128xi32>
    %cst_161 = arith.constant 0.000000e+00 : f32
    %651 = vector.shape_cast %606 : vector<1x128xf32> to vector<1x128xf32>
    %652 = vector.broadcast %651 : vector<1x128xf32> to vector<16x128xf32>
    %653 = vector.broadcast %cst_161 : f32 to vector<16x128xf32>
    %654 = arith.select %650, %652, %653 : vector<16x128xi1>, vector<16x128xf32>
    %655 = arith.addf %646, %654 : vector<16x128xf32>
    %656 = vector.broadcast %621 : vector<1x128xf32> to vector<16x128xf32>
    %657 = arith.mulf %655, %656 : vector<16x128xf32>
    %658 = vector.shape_cast %638 : vector<16x128xf32> to vector<16x1x128xf32>
    %659 = vector.shape_cast %657 : vector<16x128xf32> to vector<1x16x128xf32>
    %660 = vector.broadcast %658 : vector<16x1x128xf32> to vector<16x16x128xf32>
    %661 = vector.broadcast %659 : vector<1x16x128xf32> to vector<16x16x128xf32>
    %662 = arith.mulf %660, %661 : vector<16x16x128xf32>
    %663 = vector.shape_cast %662 : vector<16x16x128xf32> to vector<256x128xf32>
    %664 = arith.truncf %663 : vector<256x128xf32> to vector<256x128xbf16>
    %cst_162 = arith.constant dense<0.000000e+00> : vector<4x128xf32>
    %665 = tpu.matmul %1, %664, %cst_162 {dimension_numbers = #tpu.dot_dimension_numbers<[1], [0], [0], [1], [0, 0, 1, 1], [], []>} : vector<4x256xbf16>, vector<256x128xbf16>, vector<4x128xf32> -> vector<4x128xf32>
    %c32 = arith.constant 32 : index
    %c0_163 = arith.constant 0 : index
    %666 = vector.load %arg10[%c32, %c0_163] : memref<36x128xf32, #tpu.memory_space<vmem>>, vector<4x128xf32>
    tpu.vector_store %arg10[%c32, %c0_163], %665 {strides = array<i32>} : memref<36x128xf32, #tpu.memory_space<vmem>>, vector<4x128xf32>,
    %c0_164 = arith.constant 0 : index
    %c0_165 = arith.constant 0 : index
    %667 = vector.load %arg5[%c0_164, %c0_165] : memref<8x36xf32, #tpu.memory_space<vmem>>, vector<8x36xf32>
    %c0_166 = arith.constant 0 : index
    %c0_167 = arith.constant 0 : index
    %668 = vector.load %arg10[%c0_166, %c0_167] : memref<36x128xf32, #tpu.memory_space<vmem>>, vector<36x128xf32>
    %cst_168 = arith.constant dense<0.000000e+00> : vector<8x128xf32>
    %669 = tpu.matmul %667, %668, %cst_168 {dimension_numbers = #tpu.dot_dimension_numbers<[1], [0], [0], [1], [0, 0, 1, 1], [], []>} : vector<8x36xf32>, vector<36x128xf32>, vector<8x128xf32> -> vector<8x128xf32>
    %c0_169 = arith.constant 0 : index
    %c0_170 = arith.constant 0 : index
    %670 = vector.load %arg6[%c0_169, %c0_170] : memref<8x1xf32, #tpu.memory_space<vmem>>, vector<8x1xf32>
    %671 = vector.broadcast %670 : vector<8x1xf32> to vector<8x128xf32>
    %672 = arith.addf %669, %671 : vector<8x128xf32>
    %c0_171 = arith.constant 0 : index
    %c0_172 = arith.constant 0 : index
    %c0_173 = arith.constant 0 : index
    %673 = vector.load %arg9[%c0_171, %c0_172, %c0_173] : memref<1x8x128xf32, #tpu.memory_space<vmem>>, vector<1x8x128xf32>
    %674 = vector.shape_cast %673 : vector<1x8x128xf32> to vector<8x128xf32>
    %675 = vector.shape_cast %672 : vector<8x128xf32> to vector<1x8x128xf32>
    tpu.vector_store %arg9[%c0_171, %c0_172, %c0_173], %675 {strides = array<i32>} : memref<1x8x128xf32, #tpu.memory_space<vmem>>, vector<1x8x128xf32>,
    return
  }
  func.func @transform_0(%arg0: i32, %arg1: i32) -> (i32, i32, i32) {
    %c0_i32 = arith.constant 0 : i32
    %c0_i32_0 = arith.constant 0 : i32
    %c0_i32_1 = arith.constant 0 : i32
    return %arg0, %c0_i32, %c0_i32_0 : i32, i32, i32
  }
  func.func @transform_1(%arg0: i32, %arg1: i32) -> (i32, i32, i32) {
    %c0_i32 = arith.constant 0 : i32
    %c0_i32_0 = arith.constant 0 : i32
    return %arg0, %c0_i32, %arg1 : i32, i32, i32
  }
  func.func @transform_2(%arg0: i32, %arg1: i32) -> (i32, i32, i32) {
    %c0_i32 = arith.constant 0 : i32
    %c0_i32_0 = arith.constant 0 : i32
    return %arg0, %c0_i32, %arg1 : i32, i32, i32
  }
  func.func @transform_3(%arg0: i32, %arg1: i32) -> (i32, i32) {
    %c0_i32 = arith.constant 0 : i32
    %c0_i32_0 = arith.constant 0 : i32
    %c0_i32_1 = arith.constant 0 : i32
    return %c0_i32, %c0_i32_0 : i32, i32
  }
  func.func @transform_4(%arg0: i32, %arg1: i32) -> (i32, i32) {
    %c0_i32 = arith.constant 0 : i32
    %c0_i32_0 = arith.constant 0 : i32
    %c0_i32_1 = arith.constant 0 : i32
    return %c0_i32, %c0_i32_0 : i32, i32
  }
  func.func @transform_5(%arg0: i32, %arg1: i32) -> (i32, i32) {
    %c0_i32 = arith.constant 0 : i32
    %c0_i32_0 = arith.constant 0 : i32
    return %c0_i32, %arg1 : i32, i32
  }
  func.func @transform_6(%arg0: i32, %arg1: i32) -> (i32, i32) {
    %c0_i32 = arith.constant 0 : i32
    %c0_i32_0 = arith.constant 0 : i32
    return %c0_i32, %arg1 : i32, i32
  }
  func.func @transform_7(%arg0: i32, %arg1: i32) -> (i32, i32, i32) {
    %c0_i32 = arith.constant 0 : i32
    %c0_i32_0 = arith.constant 0 : i32
    return %arg0, %c0_i32, %arg1 : i32, i32, i32
  }
}

</mosaic_0001>

<bundles_post_ra>
// kernel: tpu_custom_call.1
= control target key start
LH: loop header
LB: loop body
LE: loop exit
PB: predicated region body
PF: predicated region fallthrough
CT: control target
= control target key end

     0   :  { %s3953_s0 = inlined_call_operand.vmem [shape: bf16[2,4,256], index: 0, kind: input, shape index: {}]   ;;  %s3954_s1 = inlined_call_operand.vmem [shape: f32[2,18,256], index: 1, kind: input, shape index: {}]   ;;  %s3955_s2 = inlined_call_operand.vmem [shape: f32[2,9,256], index: 2, kind: input, shape index: {}]   ;;  %s3956_s3 = inlined_call_operand.vmem [shape: f32[8,36], index: 3, kind: input, shape index: {}]   ;;  %s3957_s4 = inlined_call_operand.vmem [shape: f32[8,1], index: 4, kind: input, shape index: {}]   ;;  %s3958_s5 = inlined_call_operand.vmem [shape: f32[1,256], index: 5, kind: input, shape index: {}]   ;;  %s3959_s6 = inlined_call_operand.vmem [shape: f32[1,256], index: 6, kind: input, shape index: {}]   ;;  %s3960_s7 = inlined_call_operand.hbm [shape: f32[2,8,256], index: 7, kind: output, shape index: {}]  }
   0x1   :  { %3963 = sst [smem:[#allocation10_spill]] %s3954_s1 }
   0x2   :  { %3964 = sst [smem:[#allocation11_spill]] %s3955_s2 }
   0x3   :  { %12 = vsyncpa [#allocation6], 0 }
   0x4   :  { %14 = vsyncpa [#allocation6 + $0x1], 0  ;;  %s2720_s24 = smov 0   ;;  %s2722_s25 = smov 0  }
   0x5   :  { %s2724_s26 = smov 0   ;;  %s2726_s27 = smov 0  }
   0x6   :  { %s2728_s28 = smov 0   ;;  %s2730_s29 = smov 0  }
   0x7   :  { %s2732_s30 = smov 0   ;;  %s2734_s8 = smov 0  }
   0x8 LB: > { %s2449_s9 = sadd.s32 4294967295, %s2677_s8   ;;  %s2450_s10 = sadd.s32 4294967294, %s2677_s8   ;;  %s2677_s8 = sphi %s2734_s8, %s20_s8   ;;  %s2673_s30 = sphi %s2732_s30, %s4054_s30   ;;  %s2669_s29 = sphi %s2730_s29, %s4053_s29   ;;  %s2665_s28 = sphi %s2728_s28, %s4052_s28   ;;  %s2661_s27 = sphi %s2726_s27, %s4051_s27   ;;  %s2657_s26 = sphi %s2724_s26, %s4050_s26   ;;  %s2653_s25 = sphi %s2722_s25, %s4049_s25   ;;  %s2649_s24 = sphi %s2720_s24, %s4048_s24  }
   0x9   : > { %s29_s11 = sadd.s32 1, %s2669_s29  ;;  %s32_s12 = sadd.s32 1, %s2673_s30 }
   0xa   : > { %p30_p0 = scmp.ge.s32.totalorder %s29_s11, 2  ;;  %p74_p1 = scmp.ne.s32.totalorder %s2657_s26, %s2653_s25 }
   0xb   : > { %p75_p2 = scmp.eq.s32.totalorder %s2677_s8, 0  ;;  %p228_p5 = scmp.eq.s32.totalorder %s2449_s9, 3 }
   0xc   : > { %s4056_s11 = smov (%p30_p0, %s29_s11), 0  ;;  %s4058_s12 = smov (!%p30_p0, %s32_s12), %s2673_s30 }
   0xd   : > { %3965 = sst [smem:[#allocation8_spill]] %s4056_s11  ;;  %s63_s13 = ssub.s32 %s2669_s29, %s4056_s11 }
   0xe   : > { %p2772_p3 = por %p75_p2, %p74_p1  ;;  %p34_p4 = scmp.ge.s32.totalorder %s4058_s12, 2 }
   0xf   : > { %p233_p6 = scmp.ne.s32.totalorder %s2653_s25, %s2649_s24  ;;  %p234_p7 = scmp.eq.s32.totalorder %s2450_s10, 3 }
  0x10   : > { %s4060_s12 = smov (%p34_p4, %s4058_s12), 0  ;;  %p2780_p8 = por %p228_p5, %p74_p1 }
  0x11   : > { %3967 = sst [smem:[#allocation9_spill]] %s4060_s12  ;;  %p2784_p9 = por %p234_p7, %p233_p6 }
  0x12   : > { %s62_s17 = ssub.s32 %s2673_s30, %s4060_s12  ;;  %s67_s19 = sadd.s32 1, %s2657_s26 }
  0x13   : > { %s64_s18 = sor.u32 %s63_s13, %s62_s17  ;;  %p2452_p11 = scmp.ge.s32.totalorder %s2677_s8, 4 }
  0x14   : > { %p65_p10 = scmp.eq.s32.totalorder %s64_s18, 0 }
  0x15   : > { %256 = sbr.rel (%p2452_p11) target bundleno = 50 (0x32), region = 24 }
  0x16   : > { %s2792_s20 = scalar_select %p65_p10, %s2657_s26, %s67_s19  }
  0x1a   : > { %267 = sbr.rel (!%p2772_p3) target bundleno = 38 (0x26), region = 32  ;;  %s269_s21 = sand.u32 (%p2772_p3), 1, %s2657_s26  }
  0x1b   : > { %s2471_s22 = smul.u32 (%p2772_p3), 6, %s2673_s30  ;;  %s3970_s1 = sld [smem:[#allocation10_spill]] (%p2772_p3) }
  0x1c   : > { %s2470_s23 = smul.u32 (%p2772_p3), 24, %s269_s21 }
  0x1d   : > { %s273_s9 = sadd.s32 (%p2772_p3), %s2669_s29, %s2471_s22 }
  0x1e   : > { %s2453_s10 = sshll.u32 (%p2772_p3), %s273_s9, 3  ;;  %s271_s18 = scalar_lea.vmem (%p2772_p3), [#allocation3], %s2470_s23 }
  0x21   : > { %s275_s17 = scalar_lea.vmem %s3970_s1, %s2453_s10 }
  0x22   : > { %v308_v0 = vld [vmem:[%s275_s17] sm:$0xff]  ;;  %v310_v1 = vld [vmem:[%s275_s17 + $0x10] sm:$0xff] }
  0x23   : > { %v312_v2 = vld [vmem:[%s275_s17 + $0x20] sm:$0xff]  ;;  %309 = vst [vmem:[%s271_s18] sm:$0xff] %v308_v0 }
  0x24   : > { %311 = vst [vmem:[%s271_s18 + $0x8] sm:$0xff] %v310_v1 }
  0x25   : > { %313 = vst [vmem:[%s271_s18 + $0x10] sm:$0xff] %v312_v2 }
  0x26 PF: > { %319 = sbr.rel (!%p2772_p3) target bundleno = 50 (0x32), region = 70  ;;  %s321_s19 = sand.u32 (%p2772_p3), 1, %s2657_s26  }
  0x27   : > { %s2455_s21 = sshll.u32 (%p2772_p3), %s2673_s30, 2  ;;  %s2454_s22 = sshll.u32 (%p2772_p3), %s321_s19, 4 }
  0x28   : > { %s325_s9 = sadd.s32 (%p2772_p3), %s2669_s29, %s2455_s21  ;;  %s3971_s2 = sld [smem:[#allocation11_spill]] (%p2772_p3) }
  0x29   : > { %s2456_s12 = sshll.u32 (%p2772_p3), %s325_s9, 3  ;;  %s323_s23 = scalar_lea.vmem (%p2772_p3), [#allocation4], %s2454_s22 }
  0x2e   : > { %s327_s17 = scalar_lea.vmem %s3971_s2, %s2456_s12 }
  0x2f   : > { %v358_v3 = vld [vmem:[%s327_s17] sm:$0xff]  ;;  %v360_v4 = vld [vmem:[%s327_s17 + $0x10] sm:$0xff] }
  0x30   : > { %359 = vst [vmem:[%s323_s23] sm:$0xff] %v358_v3 }
  0x31   : > { %361 = vst [vmem:[%s323_s23 + $0x8] sm:$0xff] %v360_v4 }
  0x32 PF: > { %p2457_p12 = scmp.ge.s32.totalorder %s2677_s8, 1  ;;  %p378_p13 = scmp.lt.s32.totalorder %s2677_s8, 5 }
  0x34   : > { %p379_p0 = pnand %p2457_p12, %p378_p13 }
  0x35   : > { %s2814_s14 = sand.u32 (!%p379_p0), 1, %s2653_s25   ;;  %p438_p1 = scmp.lt.s32.totalorder (!%p379_p0), %s2665_s28, 1 }
  0x36   : > { %382 = sbr.rel (%p379_p0) target bundleno = 719 (0x2cf), region = 116  ;;  %p443_p2 = scmp.lt.s32.totalorder (!%p379_p0), %s2661_s27, 1 }
  0x37   : > { %s2472_s18 = smul.u32 (!%p379_p0), 24, %s2814_s14  ;;  %s2459_s10 = sshll.u32 (!%p379_p0), %s2814_s14, 3 }
  0x38   : > { %s2302_s11 = scalar_lea.sflag (!%p379_p0), [#allocation6], %s2814_s14 }
  0x39   : > { %s2820_s21 = scalar_lea.vmem (!%p379_p0), [#allocation3], %s2472_s18 }
  0x3b   : > { %s439_s19 = scalar_select %p438_p1, %s2665_s28, 1  ;;  %v2823_v5 = vld [vmem:[%s2820_s21] sm:$0xff]  ;;  %v457_v10 = vlaneseq }
  0x3c   : > { %s444_s22 = scalar_select %p443_p2, %s2661_s27, 1  ;;  %464 = vst [vmem:[#allocation1] sm:$0xff] %v2823_v5 }
  0x3d   : > { %s2469_s9 = sshll.u32 %s439_s19, 2  ;;  %s2458_s19 = sshll.u32 %s2814_s14, 4  ;;  %v2854_v16 = vshrl.u32 %v457_v10, 7 }
  0x3e   : > { %s442_s13 = scalar_lea.vmem %s3953_s0, %s2469_s9  ;;  %s2833_s1 = scalar_lea.vmem %s3958_s5, %s444_s22 }
  0x3f   : > { %s448_s18 = scalar_lea.vmem %s3959_s6, %s444_s22  ;;  %v2839_v6 = vld [vmem:[%s2833_s1] sm:$0x1]  ;;  %s2876_s2 = scalar_lea.vmem [#allocation4], %s2458_s19  ;;  %v2882_v29 = vadd.s32 8, %v2854_v16 }
  0x40   : > { %v461_v7 = vadd.f32 %v2839_v6, %v2823_v5  ;;  %v2843_v8 = vld [vmem:[%s442_s13] sm:$0xf]  ;;  %s2465_s9 = sshll.u32 %s2665_s28, 1  ;;  %s437_s19 = scalar_lea.vmem [#allocation5], %s2459_s10 }
  0x41   : > { %v2845_v9 = vld [vmem:[%s448_s18] sm:$0x1]  ;;  %s2312_s12 = sadd.s32 %s2661_s27, %s2465_s9  ;;  %s2603_s9 = scalar_lea.hbm %s3960_s7, 32 }
  0x42   : > { %v469_v11 = vfloor.f32 %v461_v7  ;;  %vm475_vm0 = vcmp.gt.f32.partialorder %v461_v7, -1.0  ;;  %vm478_vm1 = vcmp.lt.f32.partialorder %v461_v7, 16.0  ;;  %v2879_v28 = vld [vmem:[%s2876_s2] sm:$0xff]  ;;  %v2936_v2 = vadd.f32 1.0, %v2845_v9  ;;  %s2466_s13 = sshll.u32 %s2312_s12, 3 }
  0x43   : > { %v466_v12 = vld [vmem:[#allocation1 + $0x1] ss:$9 sm:$0xff]  ;;  %s2314_s18 = scalar_lea.hbm %s3960_s7, %s2466_s13 }
  0x44   : > { %v468_v13 = vadd.f32 %v466_v12, %v2845_v9  ;;  %v2849_v14 = vsub.f32 %v461_v7, %v469_v11  ;;  %v2851_v15 = vcvt.f32.s32 %v469_v11  ;;  %625 = vst [vmem:[#allocation1] ss:$4 sm:$0xff] %v2843_v8 }
  0x46   : > { %v470_v17 = vfloor.f32 %v468_v13  ;;  %vm476_vm2 = vcmp.gt.f32.partialorder %v468_v13, -1.0  ;;  %vm480_vm3 = vcmp.lt.f32.partialorder %v468_v13, 16.0  ;;  %v483_v18 = vperm.slane %v2851_v15, 0 }
  0x47   : > { %vm477_vm4 = vmand %vm475_vm0, %vm476_vm2  ;;  %v486_v19 = vsub.f32 1.0, %v2849_v14  ;;  %v2859_v20 = vadd.s32 1, %v2851_v15  ;;  %v497_v24 = vperm.slane %v2849_v14, 0 }
  0x48   : > { %v472_v21 = vsub.f32 %v468_v13, %v470_v17  ;;  %v2476_v22 = vcvt.f32.s32 %v470_v17  ;;  %vm479_vm5 = vmand %vm477_vm4, %vm478_vm1  ;;  %vm2864_vm6 = vcmp.eq.s32.totalorder %v2854_v16, %v483_v18  ;;  %vm485_vm13 = vcmp.eq.s32.totalorder %v2882_v29, %v483_v18 }
  0x49   : > { %vm2869_vm7 = vmand %vm479_vm5, %vm480_vm3  ;;  %v2873_v26 = vperm.slane %v486_v19, 0  ;;  %v493_v27 = vperm.slane %v2859_v20, 0 }
  0x4a   : > { %v503_v30 = vperm.slane %v2476_v22, 0  ;;  %v506_v31 = vsub.f32 1.0, %v472_v21  ;;  %v512_v32 = vadd.s32 1, %v2476_v22  ;;  %v482_v33 = vsel %vm2869_vm7, %v2879_v28, 0.0 }
  0x4b   : > { %v490_v34 = vsel %vm2864_vm6, %v2873_v26, 0.0  ;;  %vm494_vm8 = vcmp.eq.s32.totalorder %v2854_v16, %v493_v27  ;;  %v517_v35 = vperm.slane %v472_v21, 0  ;;  %v2891_v36 = vld.sshfl [vmem:[#allocation1] sm:$0xff pattern:$0x73625140]  ;;  %v524_v43 = vperm.slane %v482_v33, 0 }
  0x4c   : > { %v499_v37 = vsel %vm494_vm8, %v497_v24, 0.0  ;;  %vm504_vm9 = vcmp.eq.s32.totalorder %v2854_v16, %v503_v30  ;;  %vm505_vm10 = vcmp.eq.s32.totalorder %v2882_v29, %v503_v30  ;;  %v508_v38 = vperm.slane %v506_v31, 0  ;;  %657 = vst [vmem:[#allocation1] sm:$0xff] %v2823_v5  ;;  %v2911_v57 = vld.sshfl [vmem:[#allocation1 + $0x8] sm:$0xff pattern:$0x73625140] }
  0x4d   : > { %v2898_v39 = vadd.f32 %v499_v37, %v490_v34  ;;  %v513_v40 = vperm.slane %v512_v32, 0  ;;  %vm495_vm14 = vcmp.eq.s32.totalorder %v2882_v29, %v493_v27  ;;  %v491_v10 = vsel %vm485_vm13, %v2873_v26, 0.0 }
  0x4e   : > { %v510_v41 = vsel %vm504_vm9, %v508_v38, 0.0  ;;  %v511_v42 = vsel %vm505_vm10, %v508_v38, 0.0  ;;  %v500_v11 = vsel %vm495_vm14, %v497_v24, 0.0 }
  0x4f   : > { %vm514_vm11 = vcmp.eq.s32.totalorder %v2854_v16, %v513_v40  ;;  %vm515_vm12 = vcmp.eq.s32.totalorder %v2882_v29, %v513_v40  ;;  %v536_v44 = vrot.slane %v2898_v39, 7  ;;  %v535_v34 = vrot.slane %v2898_v39, 6 }
  0x50   : > { %v519_v45 = vsel %vm514_vm11, %v517_v35, 0.0  ;;  %v520_v46 = vsel %vm515_vm12, %v517_v35, 0.0 }
  0x51   : > { %v521_v47 = vadd.f32 %v519_v45, %v510_v41  ;;  %v522_v48 = vadd.f32 %v520_v46, %v511_v42  ;;  %v551_v49 = vperm.slane %v536_v44, 0 }
  0x53   : > { %v2903_v50 = vmul.f32 %v524_v43, %v521_v47  ;;  %v2905_v51 = vmul.f32 %v524_v43, %v522_v48  ;;  %v659_v52 = vld [vmem:[#allocation1 + $0x2] ss:$9 sm:$0xff]  ;;  %v550_v43 = vperm.slane %v535_v34, 0 }
  0x54   : > { %663 = vst [vmem:[#allocation1] sm:$0xff] %v2823_v5  ;;  %v661_v3 = vadd.f32 %v659_v52, %v2839_v6 }
  0x55   : > { %v590_v53 = vmul.f32 %v551_v49, %v2903_v50  ;;  %v591_v54 = vmul.f32 %v551_v49, %v2905_v51  ;;  %v588_v52 = vmul.f32 %v550_v43, %v2903_v50 }
  0x56   : > { %v668_v7 = vfloor.f32 %v661_v3  ;;  %vm674_vm15 = vcmp.gt.f32.partialorder %v661_v3, -1.0  ;;  %vm677_vm2 = vcmp.lt.f32.partialorder %v661_v3, 16.0 }
  0x57   : > { %v615_v55 = vpack.c.bf16 %v591_v54, %v590_v53  ;;  %v589_v53 = vmul.f32 %v550_v43, %v2905_v51 }
  0x58   : > { %v2478_v13 = vcvt.f32.s32 %v668_v7  ;;  %v2952_v19 = vsub.f32 %v661_v3, %v668_v7 }
  0x59   : > { %630 = vmatpush.bf16.msra.mxu0 %v615_v55  ;;  %v614_v7 = vpack.c.bf16 %v589_v53, %v588_v52 }
  0x5a   : > { %v2955_v20 = vadd.s32 1, %v2478_v13  ;;  %v690_v21 = vsub.f32 1.0, %v2952_v19  ;;  %v687_v14 = vperm.slane %v2478_v13, 0  ;;  %v701_v30 = vperm.slane %v2952_v19, 0 }
  0x5b   : > { %v665_v56 = vld [vmem:[#allocation1 + $0x3] ss:$9 sm:$0xff] }
  0x5c   : > { %682 = vst [vmem:[#allocation1] sm:$0xff] %v2879_v28  ;;  %v667_v4 = vadd.f32 %v665_v56, %v2936_v2  ;;  %v697_v23 = vperm.slane %v2955_v20, 0  ;;  %v692_v26 = vperm.slane %v690_v21, 0  ;;  %vm2961_vm3 = vcmp.eq.s32.totalorder %v2854_v16, %v687_v14 }
  0x5d   : > { %vm2997_vm10 = vcmp.eq.s32.totalorder %v2882_v29, %v687_v14  ;;  %631 = vmatpush.bf16.msra.mxu0 %v614_v7 }
  0x5e   : > { %v669_v12 = vfloor.f32 %v667_v4  ;;  %vm675_vm0 = vcmp.gt.f32.partialorder %v667_v4, -1.0  ;;  %vm698_vm4 = vcmp.eq.s32.totalorder %v2854_v16, %v697_v23  ;;  %vm679_vm6 = vcmp.lt.f32.partialorder %v667_v4, 16.0 }
  0x5f   : > { %vm676_vm1 = vmand %vm674_vm15, %vm675_vm0  ;;  %v694_v37 = vsel %vm2961_vm3, %v692_v26, 0.0  ;;  %v703_v38 = vsel %vm698_vm4, %v701_v30, 0.0  ;;  %vm699_vm13 = vcmp.eq.s32.totalorder %v2882_v29, %v697_v23  ;;  %v533_v23 = vrot.slane %v2898_v39, 4 }
  0x60   : > { %v2480_v15 = vcvt.f32.s32 %v669_v12  ;;  %v671_v22 = vsub.f32 %v667_v4, %v669_v12  ;;  %vm678_vm5 = vmand %vm676_vm1, %vm677_vm2  ;;  %v2977_v45 = vadd.f32 %v703_v38, %v694_v37  ;;  %v704_v34 = vsel %vm699_vm13, %v701_v30, 0.0 }
  0x61   : > { %vm680_vm7 = vmand %vm678_vm5, %vm679_vm6  ;;  %v548_v53 = vperm.slane %v533_v23, 0 }
  0x62   : > { %v716_v24 = vadd.s32 1, %v2480_v15  ;;  %v707_v40 = vperm.slane %v2480_v15, 0  ;;  %v710_v49 = vsub.f32 1.0, %v671_v22  ;;  %v721_v3 = vperm.slane %v671_v22, 0  ;;  %v3008_v15 = vld [vmem:[%s2820_s21 + $0x8] sm:$0xff] }
  0x63   : > { %v2913_v58 = vld [vmem:[#allocation1 + $0x1] ss:$9 sm:$0xff]  ;;  %v695_v22 = vsel %vm2997_vm10, %v692_v26, 0.0  ;;  %v739_v38 = vrot.slane %v2977_v45, 6 }
  0x64   : > { %828 = vst [vmem:[#allocation1] ss:$4 sm:$0xff] %v2843_v8  ;;  %v686_v46 = vsel %vm680_vm7, %v2913_v58, 0.0  ;;  %vm2982_vm8 = vcmp.eq.s32.totalorder %v2854_v16, %v707_v40  ;;  %vm2987_vm9 = vcmp.eq.s32.totalorder %v2882_v29, %v707_v40  ;;  %v712_v56 = vperm.slane %v710_v49, 0 }
  0x65   : > { %v717_v58 = vperm.slane %v716_v24, 0  ;;  %v728_v4 = vperm.slane %v686_v46, 0  ;;  %v3021_v37 = vadd.f32 %v704_v34, %v695_v22  ;;  %v754_v47 = vperm.slane %v739_v38, 0 }
  0x66   : > { %v714_v13 = vsel %vm2982_vm8, %v712_v56, 0.0  ;;  %v715_v19 = vsel %vm2987_vm9, %v712_v56, 0.0 }
  0x67   : > { %vm718_vm11 = vcmp.eq.s32.totalorder %v2854_v16, %v717_v58  ;;  %vm719_vm12 = vcmp.eq.s32.totalorder %v2882_v29, %v717_v58  ;;  %v747_v46 = vrot.slane %v3021_v37, 7  ;;  %v746_v48 = vrot.slane %v3021_v37, 6 }
  0x68   : > { %v723_v20 = vsel %vm718_vm11, %v721_v3, 0.0 }
  0x69   : > { %v725_v14 = vadd.f32 %v723_v20, %v714_v13  ;;  %v762_v7 = vperm.slane %v746_v48, 0 }
  0x6b   : > { %v2916_v59 = vld.sshfl [vmem:[#allocation1] sm:$0xff pattern:$0x73625140]  ;;  %v2925_v62 = vld.sshfl [vmem:[#allocation1 + $0x8] sm:$0xff pattern:$0x73625140] }
  0x6c   : > { %860 = vst [vmem:[#allocation1] sm:$0xff] %v2823_v5 }
  0x73   : > { %v2919_v60 = vld [vmem:[#allocation1 + $0x4] ss:$9 sm:$0xff] }
  0x74   : > { %866 = vst [vmem:[#allocation1] sm:$0xff] %v2823_v5 }
  0x7b   : > { %v2922_v61 = vld [vmem:[#allocation1 + $0x5] ss:$9 sm:$0xff] }
  0x7c   : > { %884 = vst [vmem:[#allocation1] sm:$0xff] %v2879_v28 }
  0x83   : > { %v2927_v63 = vld [vmem:[#allocation1 + $0x2] ss:$9 sm:$0xff] }
  0x84   : > { %1030 = vst [vmem:[#allocation1] ss:$4 sm:$0xff] %v2843_v8 }
  0x8b   : > { %v2930_v0 = vld.sshfl [vmem:[#allocation1] sm:$0xff pattern:$0x73625140]  ;;  %v2967_v31 = vld.sshfl [vmem:[#allocation1 + $0x8] sm:$0xff pattern:$0x73625140] }
  0x8c   : > { %1063 = vst [vmem:[#allocation1] sm:$0xff] %v2823_v5 }
  0x93   : > { %v2933_v1 = vld [vmem:[#allocation1 + $0x6] ss:$9 sm:$0xff] }
  0x94   : > { %1068 = vst [vmem:[#allocation1] sm:$0xff] %v2823_v5  ;;  %v2950_v5 = vadd.f32 %v500_v11, %v491_v10  ;;  %v740_v11 = vrot.slane %v2977_v45, 7 }
  0x96   : > { %v543_v18 = vrot.slane %v2950_v5, 7  ;;  %v542_v35 = vrot.slane %v2950_v5, 6  ;;  %v755_v21 = vperm.slane %v740_v11, 0  ;;  %v541_v26 = vrot.slane %v2950_v5, 5 }
  0x97   : > { %v585_v11 = vmul.f32 %v548_v53, %v2905_v51 }
  0x98   : > { %v559_v25 = vperm.slane %v543_v18, 0  ;;  %v558_v44 = vperm.slane %v542_v35, 0  ;;  %v724_v18 = vsel %vm719_vm12, %v721_v3, 0.0  ;;  %v557_v30 = vperm.slane %v541_v26, 0 }
  0x99   : > { %v726_v24 = vadd.f32 %v724_v18, %v715_v19 }
  0x9a   : > { %v606_v32 = vmul.f32 %v559_v25, %v2903_v50  ;;  %v607_v33 = vmul.f32 %v559_v25, %v2905_v51  ;;  %v604_v54 = vmul.f32 %v558_v44, %v2903_v50  ;;  %v605_v55 = vmul.f32 %v558_v44, %v2905_v51 }
  0x9b   : > { %v2948_v17 = vld [vmem:[#allocation1 + $0x7] ss:$9 sm:$0xff]  ;;  %v534_v25 = vrot.slane %v2898_v39, 5  ;;  %v602_v56 = vmul.f32 %v557_v30, %v2903_v50  ;;  %v603_v58 = vmul.f32 %v557_v30, %v2905_v51  ;;  %v539_v30 = vrot.slane %v2950_v5, 3 }
  0x9c   : > { %1086 = vst [vmem:[#allocation1] sm:$0xff] %v2879_v28  ;;  %v623_v42 = vpack.c.bf16 %v607_v33, %v606_v32  ;;  %v622_v10 = vpack.c.bf16 %v605_v55, %v604_v54  ;;  %v3017_v32 = vmul.f32 %v728_v4, %v725_v14  ;;  %v3019_v33 = vmul.f32 %v728_v4, %v726_v24 }
  0x9d   : > { %v549_v35 = vperm.slane %v534_v25, 0  ;;  %v540_v54 = vrot.slane %v2950_v5, 4  ;;  %v763_v55 = vperm.slane %v747_v46, 0  ;;  %v621_v20 = vpack.c.bf16 %v603_v58, %v602_v56 }
  0x9e   : > { %643 = vmatpush.bf16.msra.mxu1 %v623_v42  ;;  %v794_v40 = vmul.f32 %v755_v21, %v3017_v32  ;;  %v795_v42 = vmul.f32 %v755_v21, %v3019_v33  ;;  %v792_v3 = vmul.f32 %v754_v47, %v3017_v32  ;;  %v793_v4 = vmul.f32 %v754_v47, %v3019_v33 }
  0x9f   : > { %v586_v43 = vmul.f32 %v549_v35, %v2903_v50  ;;  %v587_v44 = vmul.f32 %v549_v35, %v2905_v51  ;;  %v810_v13 = vmul.f32 %v763_v55, %v3017_v32  ;;  %v811_v19 = vmul.f32 %v763_v55, %v3019_v33 }
  0xa0   : > { %v819_v49 = vpack.c.bf16 %v795_v42, %v794_v40  ;;  %v556_v18 = vperm.slane %v540_v54, 0  ;;  %v3044_v21 = vadd.f32 2.0, %v2845_v9  ;;  %v818_v22 = vpack.c.bf16 %v793_v4, %v792_v3 }
  0xa1   : > { %v613_v52 = vpack.c.bf16 %v587_v44, %v586_v43  ;;  %v808_v14 = vmul.f32 %v762_v7, %v3017_v32  ;;  %v809_v24 = vmul.f32 %v762_v7, %v3019_v33  ;;  %v827_v25 = vpack.c.bf16 %v811_v19, %v810_v13 }
  0xa2   : > { %644 = vmatpush.bf16.msra.mxu1 %v622_v10  ;;  %833 = vmatpush.bf16.msra.mxu2 %v819_v49  ;;  %v584_v10 = vmul.f32 %v548_v53, %v2903_v50  ;;  %v600_v35 = vmul.f32 %v556_v18, %v2903_v50  ;;  %v601_v26 = vmul.f32 %v556_v18, %v2905_v51  ;;  %v738_v40 = vrot.slane %v2977_v45, 5 }
  0xa3   : > { %v2975_v41 = vld [vmem:[#allocation1 + $0x3] ss:$9 sm:$0xff]  ;;  %632 = vmatpush.bf16.msra.mxu0 %v613_v52  ;;  %v3053_v38 = vadd.f32 %v2948_v17, %v2845_v9  ;;  %v826_v23 = vpack.c.bf16 %v809_v24, %v808_v14  ;;  %v745_v42 = vrot.slane %v3021_v37, 5  ;;  %846 = vmatpush.bf16.msra.mxu3 %v827_v25  ;;  %v532_v46 = vrot.slane %v2898_v39, 3 }
  0xa4   : > { %1232 = vst [vmem:[#allocation1] ss:$4 sm:$0xff] %v2843_v8  ;;  %v612_v34 = vpack.c.bf16 %v585_v11, %v584_v10  ;;  %v620_v44 = vpack.c.bf16 %v601_v26, %v600_v35  ;;  %v737_v47 = vrot.slane %v2977_v45, 4  ;;  %v753_v48 = vperm.slane %v738_v40, 0 }
  0xa5   : > { %v761_v17 = vperm.slane %v745_v42, 0  ;;  %v744_v49 = vrot.slane %v3021_v37, 4  ;;  %v531_v52 = vrot.slane %v2898_v39, 2  ;;  %v547_v53 = vperm.slane %v532_v46, 0 }
  0xa6   : > { %645 = vmatpush.bf16.msra.mxu1 %v621_v20  ;;  %834 = vmatpush.bf16.msra.mxu2 %v818_v22  ;;  %v555_v54 = vperm.slane %v539_v30, 0  ;;  %v752_v55 = vperm.slane %v737_v47, 0  ;;  %v538_v56 = vrot.slane %v2950_v5, 2  ;;  %v790_v58 = vmul.f32 %v753_v48, %v3017_v32 }
  0xa7   : > { %633 = vmatpush.bf16.msra.mxu0 %v612_v34  ;;  %v791_v3 = vmul.f32 %v753_v48, %v3019_v33  ;;  %v806_v4 = vmul.f32 %v761_v17, %v3017_v32  ;;  %v807_v7 = vmul.f32 %v761_v17, %v3019_v33  ;;  %847 = vmatpush.bf16.msra.mxu3 %v826_v23  ;;  %v760_v35 = vperm.slane %v744_v49, 0 }
  0xa8   : > { %v582_v11 = vmul.f32 %v547_v53, %v2903_v50  ;;  %v583_v13 = vmul.f32 %v547_v53, %v2905_v51  ;;  %v598_v19 = vmul.f32 %v555_v54, %v2903_v50  ;;  %v599_v20 = vmul.f32 %v555_v54, %v2905_v51 }
  0xa9   : > { %v817_v18 = vpack.c.bf16 %v791_v3, %v790_v58  ;;  %v825_v22 = vpack.c.bf16 %v807_v7, %v806_v4  ;;  %v788_v14 = vmul.f32 %v752_v55, %v3017_v32  ;;  %v789_v24 = vmul.f32 %v752_v55, %v3019_v33 }
  0xaa   : > { %646 = vmatpush.bf16.msra.mxu1 %v620_v44  ;;  %v611_v25 = vpack.c.bf16 %v583_v13, %v582_v11  ;;  %v619_v34 = vpack.c.bf16 %v599_v20, %v598_v19  ;;  %v546_v26 = vperm.slane %v531_v52, 0  ;;  %v554_v40 = vperm.slane %v538_v56, 0 }
  0xab   : > { %v3014_v27 = vld.sshfl [vmem:[#allocation1] sm:$0xff pattern:$0x73625140]  ;;  %v3057_v43 = vld.sshfl [vmem:[#allocation1 + $0x8] sm:$0xff pattern:$0x73625140]  ;;  %835 = vmatpush.bf16.msra.mxu2 %v817_v18  ;;  %v816_v23 = vpack.c.bf16 %v789_v24, %v788_v14  ;;  %848 = vmatpush.bf16.msra.mxu3 %v825_v22  ;;  %v804_v46 = vmul.f32 %v760_v35, %v3017_v32  ;;  %v805_v30 = vmul.f32 %v760_v35, %v3019_v33 }
  0xac   : > { %1266 = vst [vmem:[#allocation1] sm:$0xff] %v3008_v15  ;;  %v736_v42 = vrot.slane %v2977_v45, 3  ;;  %v743_v44 = vrot.slane %v3021_v37, 3  ;;  %634 = vmatpush.bf16.msra.mxu0 %v611_v25  ;;  %v580_v47 = vmul.f32 %v546_v26, %v2903_v50  ;;  %v530_v48 = vrot.slane %v2898_v39, 1 }
  0xad   : > { %v581_v17 = vmul.f32 %v546_v26, %v2905_v51  ;;  %v596_v49 = vmul.f32 %v554_v40, %v2903_v50  ;;  %v597_v52 = vmul.f32 %v554_v40, %v2905_v51  ;;  %v824_v54 = vpack.c.bf16 %v805_v30, %v804_v46 }
  0xae   : > { %647 = vmatpush.bf16.msra.mxu1 %v619_v34  ;;  %v751_v53 = vperm.slane %v736_v42, 0  ;;  %v759_v55 = vperm.slane %v743_v44, 0  ;;  %v545_v56 = vperm.slane %v530_v48, 0  ;;  %v537_v58 = vrot.slane %v2950_v5, 1 }
  0xaf   : > { %836 = vmatpush.bf16.msra.mxu2 %v816_v23  ;;  %v610_v3 = vpack.c.bf16 %v581_v17, %v580_v47  ;;  %v618_v4 = vpack.c.bf16 %v597_v52, %v596_v49  ;;  %849 = vmatpush.bf16.msra.mxu3 %v824_v54  ;;  %v735_v25 = vrot.slane %v2977_v45, 2  ;;  %v742_v34 = vrot.slane %v3021_v37, 2 }
  0xb0   : > { %v786_v7 = vmul.f32 %v751_v53, %v3017_v32  ;;  %v787_v11 = vmul.f32 %v751_v53, %v3019_v33  ;;  %v802_v19 = vmul.f32 %v759_v55, %v3017_v32  ;;  %v803_v20 = vmul.f32 %v759_v55, %v3019_v33 }
  0xb1   : > { %v578_v18 = vmul.f32 %v545_v56, %v2903_v50  ;;  %v579_v22 = vmul.f32 %v545_v56, %v2905_v51  ;;  %635 = vmatpush.bf16.msra.mxu0 %v610_v3  ;;  %v553_v24 = vperm.slane %v537_v58, 0  ;;  %v544_v23 = vperm.slane %v2898_v39, 0 }
  0xb2   : > { %648 = vmatpush.bf16.msra.mxu1 %v618_v4  ;;  %v815_v14 = vpack.c.bf16 %v787_v11, %v786_v7  ;;  %v823_v35 = vpack.c.bf16 %v803_v20, %v802_v19  ;;  %v552_v40 = vperm.slane %v2950_v5, 0  ;;  %v750_v46 = vperm.slane %v735_v25, 0 }
  0xb3   : > { %v3039_v12 = vld [vmem:[#allocation1 + $0x1] ss:$9 sm:$0xff]  ;;  %v609_v26 = vpack.c.bf16 %v579_v22, %v578_v18  ;;  %v594_v42 = vmul.f32 %v553_v24, %v2903_v50  ;;  %v595_v44 = vmul.f32 %v553_v24, %v2905_v51  ;;  %v758_v30 = vperm.slane %v742_v34, 0 }
  0xb4   : > { %1284 = vst [vmem:[#allocation1] sm:$0xff] %v2879_v28  ;;  %837 = vmatpush.bf16.msra.mxu2 %v815_v14  ;;  %850 = vmatpush.bf16.msra.mxu3 %v823_v35  ;;  %v576_v47 = vmul.f32 %v544_v23, %v2903_v50  ;;  %v577_v48 = vmul.f32 %v544_v23, %v2905_v51  ;;  %v741_v4 = vrot.slane %v3021_v37, 1  ;;  %v748_v35 = vperm.slane %v2977_v45, 0 }
  0xb5   : > { %v592_v17 = vmul.f32 %v552_v40, %v2903_v50  ;;  %v593_v49 = vmul.f32 %v552_v40, %v2905_v51  ;;  %636 = vmatpush.bf16.msra.mxu0 %v609_v26  ;;  %v617_v39 = vpack.c.bf16 %v595_v44, %v594_v42  ;;  %v784_v5 = vmul.f32 %v750_v46, %v3017_v32 }
  0xb6   : > { %v785_v52 = vmul.f32 %v750_v46, %v3019_v33  ;;  %v800_v53 = vmul.f32 %v758_v30, %v3017_v32  ;;  %v801_v54 = vmul.f32 %v758_v30, %v3019_v33  ;;  %v608_v55 = vpack.c.bf16 %v577_v48, %v576_v47 }
  0xb7   : > { %v616_v56 = vpack.c.bf16 %v593_v49, %v592_v17  ;;  %v864_v58 = vadd.f32 %v2919_v60, %v2839_v6  ;;  %649 = vmatpush.bf16.msra.mxu1 %v617_v39  ;;  %v870_v50 = vadd.f32 %v2922_v61, %v3044_v21  ;;  %v734_v51 = vrot.slane %v2977_v45, 1 }
  0xb8   : > { %v814_v3 = vpack.c.bf16 %v785_v52, %v784_v5  ;;  %v822_v11 = vpack.c.bf16 %v801_v54, %v800_v53  ;;  %v3122_v61 = vadd.f32 %v3039_v12, %v2936_v2  ;;  %v757_v14 = vperm.slane %v741_v4, 0 }
  0xb9   : > { %v871_v19 = vfloor.f32 %v864_v58  ;;  %vm877_vm14 = vcmp.gt.f32.partialorder %v864_v58, -1.0  ;;  %vm880_vm15 = vcmp.lt.f32.partialorder %v864_v58, 16.0  ;;  %637 = vmatpush.bf16.msra.mxu0 %v608_v55  ;;  %v872_v60 = vfloor.f32 %v870_v50 }
  0xba   : > { %838 = vmatpush.bf16.msra.mxu2 %v814_v3  ;;  %vm878_vm0 = vcmp.gt.f32.partialorder %v870_v50, -1.0  ;;  %vm882_vm1 = vcmp.lt.f32.partialorder %v870_v50, 16.0  ;;  %v749_v20 = vperm.slane %v734_v51, 0  ;;  %851 = vmatpush.bf16.msra.mxu3 %v822_v11  ;;  %vm1080_vm13 = vcmp.gt.f32.partialorder %v3053_v38, -1.0 }
  0xbb   : > { %v3069_v10 = vld [vmem:[#allocation1 + $0x4] ss:$9 sm:$0xff]  ;;  %v873_v18 = vsub.f32 %v864_v58, %v871_v19  ;;  %v2482_v22 = vcvt.f32.s32 %v871_v19  ;;  %vm879_vm2 = vmand %vm877_vm14, %vm878_vm0  ;;  %650 = vmatpush.bf16.msra.mxu1 %v616_v56  ;;  %v874_v24 = vsub.f32 %v870_v50, %v872_v60  ;;  %v2484_v25 = vcvt.f32.s32 %v872_v60 }
  0xbc   : > { %1430 = vst [vmem:[#allocation1] ss:$4 sm:$0xff] %v2843_v8  ;;  %vm881_vm3 = vmand %vm879_vm2, %vm880_vm15  ;;  %v782_v34 = vmul.f32 %v749_v20, %v3017_v32  ;;  %638 = vmatmul.bf16.vlgmr.msra.gmra.mxu0 %v2891_v36  ;;  %v783_v55 = vmul.f32 %v749_v20, %v3019_v33  ;;  %v781_v36 = vmul.f32 %v748_v35, %v3019_v33  ;;  %vm1084_vm14 = vcmp.lt.f32.partialorder %v3053_v38, 16.0 }
  0xbd   : > { %vm3127_vm4 = vmand %vm881_vm3, %vm882_vm1  ;;  %v889_v12 = vperm.slane %v2482_v22, 0  ;;  %v892_v23 = vsub.f32 1.0, %v873_v18  ;;  %v898_v40 = vadd.s32 1, %v2482_v22  ;;  %v903_v42 = vperm.slane %v873_v18, 0 }
  0xbe   : > { %v888_v44 = vsel %vm3127_vm4, %v2927_v63, 0.0  ;;  %v909_v46 = vperm.slane %v2484_v25, 0  ;;  %v912_v30 = vsub.f32 1.0, %v874_v24  ;;  %v918_v47 = vadd.s32 1, %v2484_v25  ;;  %651 = vmatmul.bf16.vlgmr.msra.gmra.mxu1 %v2911_v57 }
  0xbf   : > { %vm3136_vm5 = vcmp.eq.s32.totalorder %v2854_v16, %v889_v12  ;;  %v894_v48 = vperm.slane %v892_v23, 0  ;;  %v899_v17 = vperm.slane %v898_v40, 0  ;;  %v923_v49 = vperm.slane %v874_v24, 0 }
  0xc0   : > { %vm3144_vm6 = vcmp.eq.s32.totalorder %v2854_v16, %v909_v46  ;;  %vm3149_vm7 = vcmp.eq.s32.totalorder %v2882_v29, %v909_v46  ;;  %v914_v5 = vperm.slane %v912_v30, 0  ;;  %v919_v52 = vperm.slane %v918_v47, 0 }
  0xc1   : > { %v896_v54 = vsel %vm3136_vm5, %v894_v48, 0.0  ;;  %vm900_vm8 = vcmp.eq.s32.totalorder %v2854_v16, %v899_v17  ;;  %vm3157_vm9 = vcmp.eq.s32.totalorder %v2882_v29, %v889_v12  ;;  %v930_v50 = vperm.slane %v888_v44, 0 }
  0xc2   : > { %v905_v56 = vsel %vm900_vm8, %v903_v42, 0.0  ;;  %v916_v58 = vsel %vm3144_vm6, %v914_v5, 0.0  ;;  %v917_v3 = vsel %vm3149_vm7, %v914_v5, 0.0  ;;  %vm920_vm10 = vcmp.eq.s32.totalorder %v2854_v16, %v919_v52 }
  0xc3   : > { %v3090_v13 = vld.sshfl [vmem:[#allocation1] sm:$0xff pattern:$0x73625140]  ;;  %v3141_v39 = vld.sshfl [vmem:[#allocation1 + $0x8] sm:$0xff pattern:$0x73625140]  ;;  %v3168_v51 = vadd.f32 %v905_v56, %v896_v54  ;;  %vm921_vm11 = vcmp.eq.s32.totalorder %v2882_v29, %v919_v52  ;;  %vm901_vm12 = vcmp.eq.s32.totalorder %v2882_v29, %v899_v17  ;;  %v813_v26 = vpack.c.bf16 %v783_v55, %v782_v34 }
  0xc4   : > { %1462 = vst [vmem:[#allocation1] sm:$0xff] %v3008_v15  ;;  %v897_v4 = vsel %vm3157_vm9, %v894_v48, 0.0  ;;  %v925_v19 = vsel %vm920_vm10, %v923_v49, 0.0  ;;  %v926_v60 = vsel %vm921_vm11, %v923_v49, 0.0  ;;  %v906_v24 = vsel %vm901_vm12, %v903_v42, 0.0 }
  0xc5   : > { %v927_v20 = vadd.f32 %v925_v19, %v916_v58  ;;  %v928_v18 = vadd.f32 %v926_v60, %v917_v3  ;;  %v942_v22 = vrot.slane %v3168_v51, 7  ;;  %v3179_v25 = vadd.f32 %v906_v24, %v897_v4  ;;  %839 = vmatpush.bf16.msra.mxu2 %v813_v26 }
  0xc6   : > { %v798_v12 = vmul.f32 %v757_v14, %v3017_v32  ;;  %v799_v23 = vmul.f32 %v757_v14, %v3019_v33  ;;  %v941_v30 = vrot.slane %v3168_v51, 6  ;;  %v780_v48 = vmul.f32 %v748_v35, %v3017_v32 }
  0xc7   : > { %v3183_v40 = vmul.f32 %v930_v50, %v927_v20  ;;  %v3185_v44 = vmul.f32 %v930_v50, %v928_v18  ;;  %v957_v46 = vperm.slane %v942_v22, 0  ;;  %v949_v47 = vrot.slane %v3179_v25, 7 }
  0xc8   : > { %v821_v45 = vpack.c.bf16 %v799_v23, %v798_v12  ;;  %v948_v42 = vrot.slane %v3179_v25, 6  ;;  %v956_v49 = vperm.slane %v941_v30, 0  ;;  %v1272_v63 = vfloor.f32 %v3122_v61 }
  0xc9   : > { %v996_v17 = vmul.f32 %v957_v46, %v3183_v40  ;;  %v997_v14 = vmul.f32 %v957_v46, %v3185_v44  ;;  %v965_v57 = vperm.slane %v949_v47, 0  ;;  %v812_v3 = vpack.c.bf16 %v781_v36, %v780_v48 }
  0xca   : > { %852 = vmatpush.bf16.msra.mxu3 %v821_v45  ;;  %v994_v55 = vmul.f32 %v956_v49, %v3183_v40  ;;  %v995_v56 = vmul.f32 %v956_v49, %v3185_v44  ;;  %v964_v58 = vperm.slane %v948_v42, 0  ;;  %v756_v35 = vperm.slane %v3021_v37, 0 }
  0xcb   : > { %v3117_v7 = vld [vmem:[#allocation1 + $0x2] ss:$9 sm:$0xff]  ;;  %v1021_v54 = vpack.c.bf16 %v997_v14, %v996_v17  ;;  %v3206_v50 = vadd.f32 1.0, %v2839_v6  ;;  %v1012_v4 = vmul.f32 %v965_v57, %v3183_v40  ;;  %v1013_v19 = vmul.f32 %v965_v57, %v3185_v44  ;;  %840 = vmatpush.bf16.msra.mxu2 %v812_v3 }
  0xcc   : > { %1467 = vst [vmem:[#allocation1] sm:$0xff] %v3008_v15  ;;  %v1020_v60 = vpack.c.bf16 %v995_v56, %v994_v55  ;;  %v1010_v18 = vmul.f32 %v964_v58, %v3183_v40  ;;  %v1011_v22 = vmul.f32 %v964_v58, %v3185_v44  ;;  %v796_v24 = vmul.f32 %v756_v35, %v3017_v32 }
  0xcd   : > { %1035 = vmatpush.bf16.msrb.mxu0 %v1021_v54  ;;  %v797_v37 = vmul.f32 %v756_v35, %v3019_v33  ;;  %v1029_v26 = vpack.c.bf16 %v1013_v19, %v1012_v4  ;;  %v1067_v6 = vadd.f32 %v2933_v1, %v3206_v50  ;;  %v940_v48 = vrot.slane %v3168_v51, 5 }
  0xce   : > { %v1028_v23 = vpack.c.bf16 %v1011_v22, %v1010_v18  ;;  %841 = vmatmul.bf16.vlgmr.msra.gmra.mxu2 %v2916_v59  ;;  %v946_v36 = vrot.slane %v3179_v25, 4 }
  0xcf   : > { %v820_v46 = vpack.c.bf16 %v797_v37, %v796_v24  ;;  %1048 = vmatpush.bf16.msrb.mxu1 %v1029_v26  ;;  %v1073_v47 = vfloor.f32 %v1067_v6  ;;  %vm1079_vm15 = vcmp.gt.f32.partialorder %v1067_v6, -1.0  ;;  %vm1082_vm0 = vcmp.lt.f32.partialorder %v1067_v6, 16.0 }
  0xd0   : > { %vm1081_vm1 = vmand %vm1079_vm15, %vm1080_vm13  ;;  %v955_v57 = vperm.slane %v940_v48, 0  ;;  %v947_v48 = vrot.slane %v3179_v25, 5  ;;  %vm1278_vm13 = vcmp.gt.f32.partialorder %v3122_v61, -1.0 }
  0xd1   : > { %1036 = vmatpush.bf16.msrb.mxu0 %v1020_v60  ;;  %853 = vmatpush.bf16.msra.mxu3 %v820_v46  ;;  %v1075_v17 = vsub.f32 %v1067_v6, %v1073_v47  ;;  %v2486_v14 = vcvt.f32.s32 %v1073_v47  ;;  %vm1083_vm2 = vmand %vm1081_vm1, %vm1082_vm0  ;;  %vm1282_vm0 = vcmp.lt.f32.partialorder %v3122_v61, 16.0 }
  0xd2   : > { %vm1085_vm5 = vmand %vm1083_vm2, %vm1084_vm14  ;;  %v993_v46 = vmul.f32 %v955_v57, %v3185_v44 }
  0xd3   : > { %v1469_v53 = vld [vmem:[#allocation1 + $0x3] ss:$9 sm:$0xff]  ;;  %1049 = vmatpush.bf16.msrb.mxu1 %v1028_v23  ;;  %v1090_v55 = vsel %vm1085_vm5, %v2975_v41, 0.0  ;;  %v1091_v56 = vperm.slane %v2486_v14, 0  ;;  %v1094_v58 = vsub.f32 1.0, %v1075_v17  ;;  %v1100_v3 = vadd.s32 1, %v2486_v14 }
  0xd4   : > { %1485 = vst [vmem:[#allocation1] sm:$0xff] %v2879_v28  ;;  %v3175_v11 = vadd.f32 %v1469_v53, %v3044_v21  ;;  %v1074_v53 = vfloor.f32 %v3053_v38  ;;  %854 = vmatmul.bf16.vlgmr.msra.gmra.mxu3 %v2925_v62  ;;  %v1105_v35 = vperm.slane %v1075_v17, 0  ;;  %v992_v62 = vmul.f32 %v955_v57, %v3183_v40 }
  0xd5   : > { %1631 = vst [vmem:[#allocation1] ss:$4 sm:$0xff] %v2843_v8  ;;  %vm3245_vm8 = vcmp.eq.s32.totalorder %v2854_v16, %v1091_v56  ;;  %v1096_v19 = vperm.slane %v1094_v58, 0  ;;  %v1101_v60 = vperm.slane %v1100_v3, 0  ;;  %vm3250_vm9 = vcmp.eq.s32.totalorder %v2882_v29, %v1091_v56 }
  0xd6   : > { %v1473_v5 = vfloor.f32 %v3175_v11  ;;  %v1076_v20 = vsub.f32 %v3053_v38, %v1074_v53  ;;  %v2488_v12 = vcvt.f32.s32 %v1074_v53  ;;  %v1132_v38 = vperm.slane %v1090_v55, 0 }
  0xd7   : > { %v1098_v24 = vsel %vm3245_vm8, %v1096_v19, 0.0  ;;  %vm1102_vm10 = vcmp.eq.s32.totalorder %v2854_v16, %v1101_v60  ;;  %v1099_v26 = vsel %vm3250_vm9, %v1096_v19, 0.0  ;;  %vm1103_vm11 = vcmp.eq.s32.totalorder %v2882_v29, %v1101_v60 }
  0xd8   : > { %v1114_v30 = vsub.f32 1.0, %v1076_v20  ;;  %v1111_v32 = vperm.slane %v2488_v12, 0  ;;  %v1120_v1 = vadd.s32 1, %v2488_v12  ;;  %v1125_v42 = vperm.slane %v1076_v20, 0 }
  0xd9   : > { %v1107_v12 = vsel %vm1102_vm10, %v1105_v35, 0.0  ;;  %v939_v17 = vrot.slane %v3168_v51, 4 }
  0xda   : > { %v1116_v33 = vperm.slane %v1114_v30, 0  ;;  %vm3225_vm3 = vcmp.eq.s32.totalorder %v2854_v16, %v1111_v32  ;;  %vm3230_vm4 = vcmp.eq.s32.totalorder %v2882_v29, %v1111_v32  ;;  %v1121_v54 = vperm.slane %v1120_v1, 0 }
  0xdb   : > { %v3191_v34 = vld [vmem:[#allocation1 + $0x5] ss:$9 sm:$0xff]  ;;  %v3268_v47 = vadd.f32 %v1107_v12, %v1098_v24  ;;  %v954_v57 = vperm.slane %v939_v17, 0 }
  0xdc   : > { %v3198_v52 = vld.sshfl [vmem:[#allocation1] sm:$0xff pattern:$0x73625140]  ;;  %v1118_v59 = vsel %vm3225_vm3, %v1116_v33, 0.0  ;;  %v1119_v53 = vsel %vm3230_vm4, %v1116_v33, 0.0  ;;  %vm1122_vm6 = vcmp.eq.s32.totalorder %v2854_v16, %v1121_v54  ;;  %vm1123_vm7 = vcmp.eq.s32.totalorder %v2882_v29, %v1121_v54 }
  0xdd   : > { %1664 = vst [vmem:[#allocation1] sm:$0xff] %v3008_v15  ;;  %v1127_v20 = vsel %vm1122_vm6, %v1125_v42, 0.0  ;;  %v1128_v41 = vsel %vm1123_vm7, %v1125_v42, 0.0  ;;  %v1108_v33 = vsel %vm1103_vm11, %v1105_v35, 0.0  ;;  %v1019_v42 = vpack.c.bf16 %v993_v46, %v992_v62 }
  0xde   : > { %v1129_v18 = vadd.f32 %v1127_v20, %v1118_v59  ;;  %v1130_v37 = vadd.f32 %v1128_v41, %v1119_v53  ;;  %v3272_v1 = vadd.f32 %v1108_v33, %v1099_v26  ;;  %v1144_v49 = vrot.slane %v3268_v47, 7  ;;  %v3287_v35 = vld.sshfl [vmem:[#allocation1 + $0x8] sm:$0xff pattern:$0x73625140] }
  0xdf   : > { %1037 = vmatpush.bf16.msrb.mxu0 %v1019_v42  ;;  %v963_v53 = vperm.slane %v947_v48, 0  ;;  %v990_v42 = vmul.f32 %v954_v57, %v3183_v40  ;;  %v991_v17 = vmul.f32 %v954_v57, %v3185_v44 }
  0xe0   : > { %v3260_v23 = vmul.f32 %v1132_v38, %v1129_v18  ;;  %v3270_v32 = vmul.f32 %v1132_v38, %v1130_v37  ;;  %v1151_v59 = vrot.slane %v3272_v1, 7  ;;  %v1150_v54 = vrot.slane %v3272_v1, 6 }
  0xe1   : > { %v1159_v58 = vperm.slane %v1144_v49, 0  ;;  %v1008_v4 = vmul.f32 %v963_v53, %v3183_v40  ;;  %v1009_v19 = vmul.f32 %v963_v53, %v3185_v44  ;;  %v1142_v49 = vrot.slane %v3268_v47, 5 }
  0xe2   : > { %v1167_v38 = vperm.slane %v1151_v59, 0  ;;  %v1166_v60 = vperm.slane %v1150_v54, 0  ;;  %v1149_v59 = vrot.slane %v3272_v1, 5  ;;  %v938_v53 = vrot.slane %v3168_v51, 3 }
  0xe3   : > { %v1198_v20 = vmul.f32 %v1159_v58, %v3260_v23  ;;  %v1199_v41 = vmul.f32 %v1159_v58, %v3270_v32  ;;  %v1027_v26 = vpack.c.bf16 %v1009_v19, %v1008_v4  ;;  %v945_v54 = vrot.slane %v3179_v25, 3 }
  0xe4   : > { %v3219_v45 = vld [vmem:[#allocation1 + $0x4] ss:$9 sm:$0xff]  ;;  %v1214_v24 = vmul.f32 %v1167_v38, %v3260_v23  ;;  %v1215_v37 = vmul.f32 %v1167_v38, %v3270_v32  ;;  %v1213_v33 = vmul.f32 %v1166_v60, %v3270_v32  ;;  %v1018_v58 = vpack.c.bf16 %v991_v17, %v990_v42 }
  0xe5   : > { %1669 = vst [vmem:[#allocation1] sm:$0xff] %v3008_v15  ;;  %v1223_v12 = vpack.c.bf16 %v1199_v41, %v1198_v20  ;;  %1050 = vmatpush.bf16.msrb.mxu1 %v1027_v26  ;;  %v1157_v4 = vperm.slane %v1142_v49, 0  ;;  %v1165_v19 = vperm.slane %v1149_v59, 0  ;;  %v953_v57 = vperm.slane %v938_v53, 0 }
  0xe6   : > { %v1231_v48 = vpack.c.bf16 %v1215_v37, %v1214_v24  ;;  %1038 = vmatpush.bf16.msrb.mxu0 %v1018_v58  ;;  %v944_v58 = vrot.slane %v3179_v25, 2 }
  0xe7   : > { %1237 = vmatpush.bf16.msrb.mxu2 %v1223_v12  ;;  %v1194_v41 = vmul.f32 %v1157_v4, %v3260_v23  ;;  %v1210_v24 = vmul.f32 %v1165_v19, %v3260_v23  ;;  %v1211_v37 = vmul.f32 %v1165_v19, %v3270_v32  ;;  %v988_v26 = vmul.f32 %v953_v57, %v3183_v40 }
  0xe8   : > { %1250 = vmatpush.bf16.msrb.mxu3 %v1231_v48 }
  0xe9   : > { %v1229_v17 = vpack.c.bf16 %v1211_v37, %v1210_v24 }
  0xec   : > { %v1671_v6 = vld [vmem:[#allocation1 + $0x5] ss:$9 sm:$0xff] }
  0xed   : > { %v3265_v30 = vadd.f32 %v1671_v6, %v2845_v9  ;;  %1687 = vst [vmem:[#allocation1] sm:$0xff] %v2879_v28  ;;  %v1143_v9 = vrot.slane %v3268_v47, 6  ;;  %v1212_v6 = vmul.f32 %v1166_v60, %v3260_v23  ;;  %v1141_v60 = vrot.slane %v3268_v47, 4 }
  0xef   : > { %v1675_v14 = vfloor.f32 %v3265_v30  ;;  %v1158_v3 = vperm.slane %v1143_v9, 0  ;;  %v1230_v9 = vpack.c.bf16 %v1213_v33, %v1212_v6  ;;  %v989_v6 = vmul.f32 %v953_v57, %v3185_v44 }
  0xf0   : > { %v1156_v48 = vperm.slane %v1141_v60, 0  ;;  %v960_v57 = vperm.slane %v944_v58, 0  ;;  %v936_v60 = vrot.slane %v3168_v51, 1  ;;  %v1139_v58 = vrot.slane %v3268_v47, 2 }
  0xf1   : > { %v3283_v55 = vsub.f32 %v3265_v30, %v1675_v14  ;;  %v3285_v56 = vcvt.f32.s32 %v1675_v14  ;;  %v1196_v18 = vmul.f32 %v1158_v3, %v3260_v23  ;;  %v1197_v22 = vmul.f32 %v1158_v3, %v3270_v32  ;;  %1251 = vmatpush.bf16.msrb.mxu3 %v1230_v9 }
  0xf2   : > { %v962_v14 = vperm.slane %v946_v36, 0  ;;  %v961_v36 = vperm.slane %v945_v54, 0  ;;  %v1192_v53 = vmul.f32 %v1156_v48, %v3260_v23  ;;  %v1193_v54 = vmul.f32 %v1156_v48, %v3270_v32 }
  0xf3   : > { %v1222_v46 = vpack.c.bf16 %v1197_v22, %v1196_v18  ;;  %v1195_v18 = vmul.f32 %v1157_v4, %v3270_v32  ;;  %v1148_v22 = vrot.slane %v3272_v1, 4  ;;  %v1140_v4 = vrot.slane %v3268_v47, 3 }
  0xf4   : > { %v3295_v62 = vld [vmem:[#allocation1 + $0x6] ss:$9 sm:$0xff]  ;;  %v1006_v3 = vmul.f32 %v962_v14, %v3183_v40  ;;  %v1007_v38 = vmul.f32 %v962_v14, %v3185_v44  ;;  %v1004_v33 = vmul.f32 %v961_v36, %v3183_v40  ;;  %v1005_v42 = vmul.f32 %v961_v36, %v3185_v44 }
  0xf5   : > { %1833 = vst [vmem:[#allocation1] ss:$4 sm:$0xff] %v2843_v8  ;;  %1238 = vmatpush.bf16.msrb.mxu2 %v1222_v46  ;;  %v1221_v12 = vpack.c.bf16 %v1195_v18, %v1194_v41  ;;  %v1017_v14 = vpack.c.bf16 %v989_v6, %v988_v26  ;;  %v1164_v49 = vperm.slane %v1148_v22, 0  ;;  %v937_v46 = vrot.slane %v3168_v51, 2  ;;  %1252 = vmatpush.bf16.msrb.mxu3 %v1229_v17 }
  0xf6   : > { %v1026_v20 = vpack.c.bf16 %v1007_v38, %v1006_v3  ;;  %v1025_v59 = vpack.c.bf16 %v1005_v42, %v1004_v33  ;;  %v1220_v19 = vpack.c.bf16 %v1193_v54, %v1192_v53  ;;  %v1147_v36 = vrot.slane %v3272_v1, 3 }
  0xf7   : > { %1039 = vmatpush.bf16.msrb.mxu0 %v1017_v14  ;;  %v1208_v9 = vmul.f32 %v1164_v49, %v3260_v23  ;;  %v1209_v3 = vmul.f32 %v1164_v49, %v3270_v32  ;;  %v952_v38 = vperm.slane %v937_v46, 0  ;;  %v1155_v22 = vperm.slane %v1140_v4, 0 }
  0xf8   : > { %1051 = vmatpush.bf16.msrb.mxu1 %v1026_v20  ;;  %v1002_v24 = vmul.f32 %v960_v57, %v3183_v40  ;;  %v1003_v37 = vmul.f32 %v960_v57, %v3185_v44  ;;  %v1163_v26 = vperm.slane %v1147_v36, 0  ;;  %v951_v6 = vperm.slane %v936_v60, 0 }
  0xf9   : > { %1239 = vmatpush.bf16.msrb.mxu2 %v1221_v12  ;;  %v1228_v20 = vpack.c.bf16 %v1209_v3, %v1208_v9  ;;  %v986_v41 = vmul.f32 %v952_v38, %v3183_v40  ;;  %v987_v18 = vmul.f32 %v952_v38, %v3185_v44  ;;  %v1190_v33 = vmul.f32 %v1155_v22, %v3260_v23 }
  0xfa   : > { %v1191_v42 = vmul.f32 %v1155_v22, %v3270_v32  ;;  %v943_v48 = vrot.slane %v3179_v25, 1  ;;  %v1024_v17 = vpack.c.bf16 %v1003_v37, %v1002_v24  ;;  %v1206_v14 = vmul.f32 %v1163_v26, %v3260_v23 }
  0xfb   : > { %v1016_v12 = vpack.c.bf16 %v987_v18, %v986_v41  ;;  %1253 = vmatpush.bf16.msrb.mxu3 %v1228_v20  ;;  %v1207_v49 = vmul.f32 %v1163_v26, %v3270_v32  ;;  %v984_v46 = vmul.f32 %v951_v6, %v3183_v40  ;;  %v985_v53 = vmul.f32 %v951_v6, %v3185_v44 }
  0xfc   : > { %1052 = vmatpush.bf16.msrb.mxu1 %v1025_v59  ;;  %v1219_v59 = vpack.c.bf16 %v1191_v42, %v1190_v33  ;;  %v959_v54 = vperm.slane %v943_v48, 0  ;;  %v1146_v3 = vrot.slane %v3272_v1, 2  ;;  %v950_v38 = vperm.slane %v3168_v51, 0 }
  0xfd   : > { %1240 = vmatpush.bf16.msrb.mxu2 %v1220_v19  ;;  %1040 = vmatpush.bf16.msrb.mxu0 %v1016_v12  ;;  %v1227_v9 = vpack.c.bf16 %v1207_v49, %v1206_v14  ;;  %v958_v4 = vperm.slane %v3179_v25, 0  ;;  %v1015_v19 = vpack.c.bf16 %v985_v53, %v984_v46  ;;  %v1154_v60 = vperm.slane %v1139_v58, 0 }
  0xfe   : > { %v1000_v57 = vmul.f32 %v959_v54, %v3183_v40  ;;  %v1001_v36 = vmul.f32 %v959_v54, %v3185_v44  ;;  %v1162_v20 = vperm.slane %v1146_v3, 0  ;;  %v982_v41 = vmul.f32 %v950_v38, %v3183_v40 }
  0xff   : > { %1254 = vmatpush.bf16.msrb.mxu3 %v1227_v9  ;;  %v983_v18 = vmul.f32 %v950_v38, %v3185_v44  ;;  %v998_v22 = vmul.f32 %v958_v4, %v3183_v40  ;;  %v1188_v51 = vmul.f32 %v1154_v60, %v3260_v23  ;;  %v1189_v25 = vmul.f32 %v1154_v60, %v3270_v32 }
 0x100   : > { %1053 = vmatpush.bf16.msrb.mxu1 %v1024_v17  ;;  %v1023_v24 = vpack.c.bf16 %v1001_v36, %v1000_v57  ;;  %v999_v37 = vmul.f32 %v958_v4, %v3185_v44  ;;  %v1204_v26 = vmul.f32 %v1162_v20, %v3260_v23  ;;  %v1205_v6 = vmul.f32 %v1162_v20, %v3270_v32 }
 0x101   : > { %1241 = vmatpush.bf16.msrb.mxu2 %v1219_v59  ;;  %1041 = vmatpush.bf16.msrb.mxu0 %v1015_v19  ;;  %v1014_v12 = vpack.c.bf16 %v983_v18, %v982_v41  ;;  %v1264_v33 = vadd.f32 %v3206_v50, %v3008_v15  ;;  %v1218_v42 = vpack.c.bf16 %v1189_v25, %v1188_v51  ;;  %v2492_v17 = vcvt.f32.s32 %v1272_v63 }
 0x102   : > { %v1022_v48 = vpack.c.bf16 %v999_v37, %v998_v22  ;;  %v1274_v40 = vsub.f32 %v3122_v61, %v1272_v63  ;;  %v1226_v14 = vpack.c.bf16 %v1205_v6, %v1204_v26  ;;  %v1138_v38 = vrot.slane %v3268_v47, 1 }
 0x103   : > { %v1271_v44 = vfloor.f32 %v1264_v33  ;;  %vm1277_vm12 = vcmp.gt.f32.partialorder %v1264_v33, -1.0  ;;  %vm1280_vm15 = vcmp.lt.f32.partialorder %v1264_v33, 16.0  ;;  %v1309_v49 = vperm.slane %v2492_v17, 0 }
 0x104   : > { %1054 = vmatpush.bf16.msrb.mxu1 %v1023_v24  ;;  %vm1279_vm14 = vmand %vm1277_vm12, %vm1278_vm13  ;;  %v1312_v46 = vsub.f32 1.0, %v1274_v40  ;;  %1255 = vmatpush.bf16.msrb.mxu3 %v1226_v14  ;;  %v1318_v54 = vadd.s32 1, %v2492_v17  ;;  %v1323_v58 = vperm.slane %v1274_v40, 0  ;;  %v1153_v25 = vperm.slane %v1138_v38, 0 }
 0x105   : > { %1242 = vmatpush.bf16.msrb.mxu2 %v1218_v42  ;;  %1042 = vmatpush.bf16.msrb.mxu0 %v1014_v12  ;;  %v1273_v59 = vsub.f32 %v1264_v33, %v1271_v44  ;;  %v2490_v53 = vcvt.f32.s32 %v1271_v44  ;;  %vm1281_vm1 = vmand %vm1279_vm14, %vm1280_vm15  ;;  %vm3368_vm3 = vcmp.eq.s32.totalorder %v2854_v16, %v1309_v49  ;;  %vm3373_vm4 = vcmp.eq.s32.totalorder %v2882_v29, %v1309_v49 }
 0x106   : > { %vm3363_vm2 = vmand %vm1281_vm1, %vm1282_vm0  ;;  %v1314_v3 = vperm.slane %v1312_v46, 0  ;;  %v1319_v18 = vperm.slane %v1318_v54, 0  ;;  %v1186_v40 = vmul.f32 %v1153_v25, %v3260_v23  ;;  %v1187_v17 = vmul.f32 %v1153_v25, %v3270_v32 }
 0x107   : > { %v1288_v4 = vsel %vm3363_vm2, %v3069_v10, 0.0  ;;  %v1289_v19 = vperm.slane %v2490_v53, 0  ;;  %v1292_v57 = vsub.f32 1.0, %v1273_v59  ;;  %v1298_v36 = vadd.s32 1, %v2490_v53 }
 0x108   : > { %1055 = vmatpush.bf16.msrb.mxu1 %v1022_v48  ;;  %1043 = vmatmul.bf16.vlgmr.msrb.gmra.mxu0 %v2930_v0  ;;  %v1303_v60 = vperm.slane %v1273_v59, 0  ;;  %v1316_v20 = vsel %vm3368_vm3, %v1314_v3, 0.0  ;;  %v1317_v41 = vsel %vm3373_vm4, %v1314_v3, 0.0  ;;  %v1330_v51 = vperm.slane %v1288_v4, 0 }
 0x109   : > { %vm3387_vm5 = vcmp.eq.s32.totalorder %v2854_v16, %v1289_v19  ;;  %v1294_v24 = vperm.slane %v1292_v57, 0  ;;  %v1299_v10 = vperm.slane %v1298_v36, 0  ;;  %vm1320_vm6 = vcmp.eq.s32.totalorder %v2854_v16, %v1319_v18 }
 0x10a   : > { %vm1321_vm7 = vcmp.eq.s32.totalorder %v2882_v29, %v1319_v18  ;;  %vm3395_vm8 = vcmp.eq.s32.totalorder %v2882_v29, %v1289_v19  ;;  %v1325_v26 = vsel %vm1320_vm6, %v1323_v58, 0.0  ;;  %v1145_v46 = vrot.slane %v3272_v1, 1 }
 0x10b   : > { %1056 = vmatmul.bf16.vlgmr.msrb.gmra.mxu1 %v2967_v31  ;;  %v1296_v37 = vsel %vm3387_vm5, %v1294_v24, 0.0  ;;  %vm1300_vm9 = vcmp.eq.s32.totalorder %v2854_v16, %v1299_v10  ;;  %v1326_v6 = vsel %vm1321_vm7, %v1323_v58, 0.0  ;;  %v1327_v33 = vadd.f32 %v1325_v26, %v1316_v20 }
 0x10c   : > { %v1305_v12 = vsel %vm1300_vm9, %v1303_v60, 0.0  ;;  %v1328_v31 = vadd.f32 %v1326_v6, %v1317_v41  ;;  %v1297_v42 = vsel %vm3395_vm8, %v1294_v24, 0.0  ;;  %vm1301_vm10 = vcmp.eq.s32.totalorder %v2882_v29, %v1299_v10 }
 0x10d   : > { %v3404_v48 = vadd.f32 %v1305_v12, %v1296_v37  ;;  %v3409_v14 = vmul.f32 %v1330_v51, %v1327_v33  ;;  %v1306_v49 = vsel %vm1301_vm10, %v1303_v60, 0.0  ;;  %v1217_v54 = vpack.c.bf16 %v1187_v17, %v1186_v40 }
 0x10e   : > { %v3411_v44 = vmul.f32 %v1330_v51, %v1328_v31  ;;  %v3415_v53 = vadd.f32 %v1306_v49, %v1297_v42  ;;  %v1161_v63 = vperm.slane %v1145_v46, 0  ;;  %v1152_v9 = vperm.slane %v3268_v47, 0  ;;  %v3437_v31 = vld.sshfl [vmem:[#allocation1] sm:$0xff pattern:$0x73625140] }
 0x10f   : > { %v1342_v59 = vrot.slane %v3404_v48, 7  ;;  %v1341_v58 = vrot.slane %v3404_v48, 6  ;;  %v1160_v61 = vperm.slane %v3272_v1, 0  ;;  %v1466_v3 = vadd.f32 %v3117_v7, %v3206_v50  ;;  %1243 = vmatpush.bf16.msrb.mxu2 %v1217_v54  ;;  %1865 = vst [vmem:[#allocation1] sm:$0xff] %v3008_v15 }
 0x110   : > { %v1349_v4 = vrot.slane %v3415_v53, 7  ;;  %v1348_v57 = vrot.slane %v3415_v53, 6  ;;  %v1202_v36 = vmul.f32 %v1161_v63, %v3260_v23  ;;  %v1203_v60 = vmul.f32 %v1161_v63, %v3270_v32 }
 0x111   : > { %v1357_v38 = vperm.slane %v1342_v59, 0  ;;  %v1356_v19 = vperm.slane %v1341_v58, 0  ;;  %v1184_v20 = vmul.f32 %v1152_v9, %v3260_v23  ;;  %v1185_v47 = vmul.f32 %v1152_v9, %v3270_v32 }
 0x112   : > { %v1365_v7 = vperm.slane %v1349_v4, 0  ;;  %v1225_v18 = vpack.c.bf16 %v1203_v60, %v1202_v36  ;;  %v1364_v24 = vperm.slane %v1348_v57, 0  ;;  %v1200_v37 = vmul.f32 %v1160_v61, %v3260_v23 }
 0x113   : > { %v1396_v1 = vmul.f32 %v1357_v38, %v3409_v14  ;;  %v1397_v41 = vmul.f32 %v1357_v38, %v3411_v44  ;;  %v1394_v50 = vmul.f32 %v1356_v19, %v3409_v14  ;;  %v1395_v22 = vmul.f32 %v1356_v19, %v3411_v44 }
 0x114   : > { %v1216_v10 = vpack.c.bf16 %v1185_v47, %v1184_v20  ;;  %v1412_v0 = vmul.f32 %v1365_v7, %v3409_v14  ;;  %v1413_v25 = vmul.f32 %v1365_v7, %v3411_v44  ;;  %1256 = vmatpush.bf16.msrb.mxu3 %v1225_v18  ;;  %v1410_v6 = vmul.f32 %v1364_v24, %v3409_v14 }
 0x115   : > { %v1421_v51 = vpack.c.bf16 %v1397_v41, %v1396_v1  ;;  %v1420_v26 = vpack.c.bf16 %v1395_v22, %v1394_v50  ;;  %v1411_v12 = vmul.f32 %v1364_v24, %v3411_v44  ;;  %v1472_v33 = vfloor.f32 %v1466_v3 }
 0x116   : > { %1244 = vmatpush.bf16.msrb.mxu2 %v1216_v10  ;;  %v1429_v42 = vpack.c.bf16 %v1413_v25, %v1412_v0  ;;  %v1201_v40 = vmul.f32 %v1160_v61, %v3270_v32  ;;  %v1475_v17 = vsub.f32 %v3175_v11, %v1473_v5  ;;  %v2496_v23 = vcvt.f32.s32 %v1473_v5  ;;  %v3480_v22 = vld [vmem:[#allocation1 + $0x6] ss:$9 sm:$0xff] }
 0x117   : > { %1435 = vmatpush.bf16.msra.mxu0 %v1421_v51  ;;  %v1428_v49 = vpack.c.bf16 %v1411_v12, %v1410_v6  ;;  %v1474_v46 = vsub.f32 %v1466_v3, %v1472_v33  ;;  %v2494_v59 = vcvt.f32.s32 %v1472_v33  ;;  %vm1478_vm11 = vcmp.gt.f32.partialorder %v1466_v3, -1.0  ;;  %1870 = vst [vmem:[#allocation1] sm:$0xff] %v3008_v15 }
 0x118   : > { %1448 = vmatpush.bf16.msra.mxu1 %v1429_v42  ;;  %v1224_v54 = vpack.c.bf16 %v1201_v40, %v1200_v37  ;;  %vm1479_vm12 = vcmp.gt.f32.partialorder %v3175_v11, -1.0  ;;  %vm1481_vm13 = vcmp.lt.f32.partialorder %v1466_v3, 16.0  ;;  %vm1483_vm14 = vcmp.lt.f32.partialorder %v3175_v11, 16.0 }
 0x119   : > { %1245 = vmatmul.bf16.vlgmr.msrb.gmra.mxu2 %v3014_v27  ;;  %vm1480_vm15 = vmand %vm1478_vm11, %vm1479_vm12  ;;  %v1490_v32 = vperm.slane %v2494_v59, 0  ;;  %v1493_v58 = vsub.f32 1.0, %v1474_v46  ;;  %v1499_v63 = vadd.s32 1, %v2494_v59  ;;  %v1504_v5 = vperm.slane %v1474_v46, 0 }
 0x11a   : > { %1257 = vmatpush.bf16.msrb.mxu3 %v1224_v54  ;;  %vm1482_vm0 = vmand %vm1480_vm15, %vm1481_vm13  ;;  %v1510_v9 = vperm.slane %v2496_v23, 0  ;;  %v1513_v61 = vsub.f32 1.0, %v1475_v17  ;;  %v1519_v38 = vadd.s32 1, %v2496_v23  ;;  %v1524_v4 = vperm.slane %v1475_v17, 0 }
 0x11b   : > { %1436 = vmatpush.bf16.msra.mxu0 %v1420_v26  ;;  %vm1484_vm1 = vmand %vm1482_vm0, %vm1483_vm14  ;;  %vm3450_vm2 = vcmp.eq.s32.totalorder %v2854_v16, %v1490_v32  ;;  %v1495_v11 = vperm.slane %v1493_v58, 0  ;;  %v1500_v27 = vperm.slane %v1499_v63, 0  ;;  %vm3455_vm3 = vcmp.eq.s32.totalorder %v2882_v29, %v1490_v32 }
 0x11c   : > { %1449 = vmatpush.bf16.msra.mxu1 %v1428_v49  ;;  %v1489_v57 = vsel %vm1484_vm1, %v3191_v34, 0.0  ;;  %vm3461_vm4 = vcmp.eq.s32.totalorder %v2854_v16, %v1510_v9  ;;  %vm3466_vm5 = vcmp.eq.s32.totalorder %v2882_v29, %v1510_v9  ;;  %v1515_v20 = vperm.slane %v1513_v61, 0 }
 0x11d   : > { %v1497_v47 = vsel %vm3450_vm2, %v1495_v11, 0.0  ;;  %vm1501_vm6 = vcmp.eq.s32.totalorder %v2854_v16, %v1500_v27  ;;  %v1520_v1 = vperm.slane %v1519_v38, 0  ;;  %v1531_v41 = vperm.slane %v1489_v57, 0  ;;  %1258 = vmatmul.bf16.vlgmr.msrb.gmra.mxu3 %v3057_v43 }
 0x11e   : > { %v1506_v34 = vsel %vm1501_vm6, %v1504_v5, 0.0  ;;  %v1517_v7 = vsel %vm3461_vm4, %v1515_v20, 0.0  ;;  %v1518_v50 = vsel %vm3466_vm5, %v1515_v20, 0.0  ;;  %v1498_v18 = vsel %vm3455_vm3, %v1495_v11, 0.0 }
 0x11f   : > { %v3482_v24 = vadd.f32 %v1506_v34, %v1497_v47  ;;  %vm1521_vm7 = vcmp.eq.s32.totalorder %v2854_v16, %v1520_v1  ;;  %vm1522_vm8 = vcmp.eq.s32.totalorder %v2882_v29, %v1520_v1  ;;  %vm1502_vm9 = vcmp.eq.s32.totalorder %v2882_v29, %v1500_v27 }
 0x120   : > { %v1526_v43 = vsel %vm1521_vm7, %v1524_v4, 0.0  ;;  %v1527_v10 = vsel %vm1522_vm8, %v1524_v4, 0.0  ;;  %v1507_v51 = vsel %vm1502_vm9, %v1504_v5, 0.0  ;;  %v1340_v0 = vrot.slane %v3404_v48, 5 }
 0x121   : > { %v1528_v25 = vadd.f32 %v1526_v43, %v1517_v7  ;;  %v1529_v37 = vadd.f32 %v1527_v10, %v1518_v50  ;;  %v1543_v26 = vrot.slane %v3482_v24, 7  ;;  %v3490_v6 = vadd.f32 %v1507_v51, %v1498_v18 }
 0x122   : > { %v1355_v12 = vperm.slane %v1340_v0, 0  ;;  %v1347_v33 = vrot.slane %v3415_v53, 5  ;;  %v1542_v42 = vrot.slane %v3482_v24, 6  ;;  %v1339_v40 = vrot.slane %v3404_v48, 4 }
 0x123   : > { %v3495_v17 = vmul.f32 %v1531_v41, %v1528_v25  ;;  %v3497_v15 = vmul.f32 %v1531_v41, %v1529_v37  ;;  %v1558_v23 = vperm.slane %v1543_v26, 0  ;;  %v1550_v49 = vrot.slane %v3490_v6, 7  ;;  %v3519_v26 = vld [vmem:[#allocation1 + $0x7] ss:$9 sm:$0xff] }
 0x124   : > { %v1392_v46 = vmul.f32 %v1355_v12, %v3409_v14  ;;  %v1393_v59 = vmul.f32 %v1355_v12, %v3411_v44  ;;  %v1363_v54 = vperm.slane %v1347_v33, 0  ;;  %v1557_v32 = vperm.slane %v1542_v42, 0  ;;  %1888 = vst [vmem:[#allocation1] sm:$0xff] %v2879_v28 }
 0x125   : > { %v1597_v58 = vmul.f32 %v1558_v23, %v3495_v17  ;;  %v1598_v63 = vmul.f32 %v1558_v23, %v3497_v15  ;;  %v1566_v5 = vperm.slane %v1550_v49, 0  ;;  %v1549_v9 = vrot.slane %v3490_v6, 6 }
 0x126   : > { %v1419_v61 = vpack.c.bf16 %v1393_v59, %v1392_v46  ;;  %v1408_v38 = vmul.f32 %v1363_v54, %v3409_v14  ;;  %v1409_v4 = vmul.f32 %v1363_v54, %v3411_v44  ;;  %v1595_v3 = vmul.f32 %v1557_v32, %v3495_v17 }
 0x127   : > { %v1622_v11 = vpack.c.bf16 %v1598_v63, %v1597_v58  ;;  %v1613_v27 = vmul.f32 %v1566_v5, %v3495_v17  ;;  %v1614_v19 = vmul.f32 %v1566_v5, %v3497_v15  ;;  %v1596_v57 = vmul.f32 %v1557_v32, %v3497_v15 }
 0x128   : > { %1437 = vmatpush.bf16.msra.mxu0 %v1419_v61  ;;  %v1427_v36 = vpack.c.bf16 %v1409_v4, %v1408_v38  ;;  %v1565_v60 = vperm.slane %v1549_v9, 0  ;;  %v1354_v20 = vperm.slane %v1339_v40, 0  ;;  %v1346_v47 = vrot.slane %v3415_v53, 4 }
 0x129   : > { %1636 = vmatpush.bf16.msra.mxu2 %v1622_v11  ;;  %v1630_v1 = vpack.c.bf16 %v1614_v19, %v1613_v27  ;;  %v1621_v41 = vpack.c.bf16 %v1596_v57, %v1595_v3  ;;  %v1541_v34 = vrot.slane %v3482_v24, 5  ;;  %v1548_v7 = vrot.slane %v3490_v6, 5 }
 0x12a   : > { %1450 = vmatpush.bf16.msra.mxu1 %v1427_v36  ;;  %v1611_v50 = vmul.f32 %v1565_v60, %v3495_v17  ;;  %v1612_v18 = vmul.f32 %v1565_v60, %v3497_v15  ;;  %v1390_v43 = vmul.f32 %v1354_v20, %v3409_v14  ;;  %v1391_v10 = vmul.f32 %v1354_v20, %v3411_v44 }
 0x12b   : > { %1649 = vmatpush.bf16.msra.mxu3 %v1630_v1  ;;  %v1362_v51 = vperm.slane %v1346_v47, 0  ;;  %v1556_v0 = vperm.slane %v1541_v34, 0  ;;  %v1564_v25 = vperm.slane %v1548_v7, 0  ;;  %v1338_v37 = vrot.slane %v3404_v48, 3 }
 0x12c   : > { %v1629_v12 = vpack.c.bf16 %v1612_v18, %v1611_v50  ;;  %v1418_v33 = vpack.c.bf16 %v1391_v10, %v1390_v43  ;;  %v1345_v42 = vrot.slane %v3415_v53, 3  ;;  %v1540_v40 = vrot.slane %v3482_v24, 4 }
 0x12d   : > { %1637 = vmatpush.bf16.msra.mxu2 %v1621_v41  ;;  %v1406_v23 = vmul.f32 %v1362_v51, %v3409_v14  ;;  %v1407_v49 = vmul.f32 %v1362_v51, %v3411_v44  ;;  %v1593_v46 = vmul.f32 %v1556_v0, %v3495_v17  ;;  %v1594_v59 = vmul.f32 %v1556_v0, %v3497_v15 }
 0x12e   : > { %1438 = vmatpush.bf16.msra.mxu0 %v1418_v33  ;;  %v1609_v54 = vmul.f32 %v1564_v25, %v3495_v17  ;;  %v1610_v32 = vmul.f32 %v1564_v25, %v3497_v15  ;;  %v1353_v58 = vperm.slane %v1338_v37, 0  ;;  %v1361_v63 = vperm.slane %v1345_v42, 0 }
 0x12f   : > { %1650 = vmatpush.bf16.msra.mxu3 %v1629_v12  ;;  %v1426_v5 = vpack.c.bf16 %v1407_v49, %v1406_v23  ;;  %v1620_v9 = vpack.c.bf16 %v1594_v59, %v1593_v46  ;;  %v1555_v28 = vperm.slane %v1540_v40, 0  ;;  %v1547_v61 = vrot.slane %v3490_v6, 4 }
 0x130   : > { %v1628_v38 = vpack.c.bf16 %v1610_v32, %v1609_v54  ;;  %v1388_v4 = vmul.f32 %v1353_v58, %v3409_v14  ;;  %v1389_v3 = vmul.f32 %v1353_v58, %v3411_v44  ;;  %v1404_v11 = vmul.f32 %v1361_v63, %v3409_v14  ;;  %v3552_v32 = vld.sshfl [vmem:[#allocation1 + $0x8] sm:$0xff pattern:$0x73625140] }
 0x131   : > { %1451 = vmatpush.bf16.msra.mxu1 %v1426_v5  ;;  %1638 = vmatpush.bf16.msra.mxu2 %v1620_v9  ;;  %v1405_v27 = vmul.f32 %v1361_v63, %v3411_v44  ;;  %v1591_v19 = vmul.f32 %v1555_v28, %v3495_v17  ;;  %v1592_v57 = vmul.f32 %v1555_v28, %v3497_v15  ;;  %v1563_v36 = vperm.slane %v1547_v61, 0 }
 0x132   : > { %v1417_v60 = vpack.c.bf16 %v1389_v3, %v1388_v4  ;;  %v1337_v20 = vrot.slane %v3404_v48, 2  ;;  %v1344_v47 = vrot.slane %v3415_v53, 2  ;;  %v1539_v1 = vrot.slane %v3482_v24, 3  ;;  %v3557_v3 = vld [vmem:[#allocation1 + $0x7] ss:$9 sm:$0xff] }
 0x133   : > { %1651 = vmatpush.bf16.msra.mxu3 %v1628_v38  ;;  %v1425_v41 = vpack.c.bf16 %v1405_v27, %v1404_v11  ;;  %v1619_v34 = vpack.c.bf16 %v1592_v57, %v1591_v19  ;;  %v1607_v7 = vmul.f32 %v1563_v36, %v3495_v17  ;;  %v1608_v50 = vmul.f32 %v1563_v36, %v3497_v15 }
 0x134   : > { %1439 = vmatpush.bf16.msra.mxu0 %v1417_v60  ;;  %v1352_v18 = vperm.slane %v1337_v20, 0  ;;  %v1360_v43 = vperm.slane %v1344_v47, 0  ;;  %v1554_v10 = vperm.slane %v1539_v1, 0  ;;  %v1546_v51 = vrot.slane %v3490_v6, 3  ;;  %2034 = vst [vmem:[#allocation1] ss:$4 sm:$0xff] %v2843_v8 }
 0x135   : > { %1452 = vmatpush.bf16.msra.mxu1 %v1425_v41  ;;  %1639 = vmatpush.bf16.msra.mxu2 %v1619_v34  ;;  %v1627_v0 = vpack.c.bf16 %v1608_v50, %v1607_v7  ;;  %v1336_v25 = vrot.slane %v3404_v48, 1  ;;  %v1343_v37 = vrot.slane %v3415_v53, 1  ;;  %v1538_v12 = vrot.slane %v3482_v24, 2 }
 0x136   : > { %v1386_v33 = vmul.f32 %v1352_v18, %v3409_v14  ;;  %v1387_v42 = vmul.f32 %v1352_v18, %v3411_v44  ;;  %v1402_v40 = vmul.f32 %v1360_v43, %v3409_v14  ;;  %v1403_v23 = vmul.f32 %v1360_v43, %v3411_v44 }
 0x137   : > { %1652 = vmatpush.bf16.msra.mxu3 %v1627_v0  ;;  %v1589_v49 = vmul.f32 %v1554_v10, %v3495_v17  ;;  %v1590_v46 = vmul.f32 %v1554_v10, %v3497_v15  ;;  %v1562_v59 = vperm.slane %v1546_v51, 0  ;;  %v1351_v54 = vperm.slane %v1336_v25, 0  ;;  %v2582_v10 = vld [vmem:[%s2833_s1] sm:$0x1]  ;;  %s2318_s1 = sshll.u32 %s2314_s18, 4  ;;  %s2319_s1 = int_to_ptr.hbm [resolvable:$true] %s2318_s1 }
 0x138   : > { %v1416_v58 = vpack.c.bf16 %v1387_v42, %v1386_v33  ;;  %v1424_v63 = vpack.c.bf16 %v1403_v23, %v1402_v40  ;;  %v1359_v5 = vperm.slane %v1343_v37, 0  ;;  %v1553_v9 = vperm.slane %v1538_v12, 0 }
 0x139   : > { %v1618_v28 = vpack.c.bf16 %v1590_v46, %v1589_v49  ;;  %v1605_v61 = vmul.f32 %v1562_v59, %v3495_v17  ;;  %v1606_v38 = vmul.f32 %v1562_v59, %v3497_v15  ;;  %v1384_v4 = vmul.f32 %v1351_v54, %v3409_v14 }
 0x13a   : > { %1440 = vmatpush.bf16.msra.mxu0 %v1416_v58  ;;  %1453 = vmatpush.bf16.msra.mxu1 %v1424_v63  ;;  %v1385_v11 = vmul.f32 %v1351_v54, %v3411_v44  ;;  %v1400_v27 = vmul.f32 %v1359_v5, %v3409_v14  ;;  %v1401_v19 = vmul.f32 %v1359_v5, %v3411_v44  ;;  %v1545_v57 = vrot.slane %v3490_v6, 2 }
 0x13b   : > { %1640 = vmatpush.bf16.msra.mxu2 %v1618_v28  ;;  %v1626_v36 = vpack.c.bf16 %v1606_v38, %v1605_v61  ;;  %v1587_v60 = vmul.f32 %v1553_v9, %v3495_v17  ;;  %v1588_v20 = vmul.f32 %v1553_v9, %v3497_v15  ;;  %v1350_v47 = vperm.slane %v3404_v48, 0  ;;  %v3598_v5 = vld.sshfl [vmem:[#allocation1] sm:$0xff pattern:$0x73625140] }
 0x13c   : > { %v1415_v1 = vpack.c.bf16 %v1385_v11, %v1384_v4  ;;  %v1423_v41 = vpack.c.bf16 %v1401_v19, %v1400_v27  ;;  %v1561_v34 = vperm.slane %v1545_v57, 0  ;;  %v1358_v7 = vperm.slane %v3415_v53, 0  ;;  %v3611_v11 = vld [vmem:[%s2820_s21 + $0x10] sm:$0x3]  ;;  %s2597_s21 = sshra.s32 %s2319_s1, 4  ;;  %s2598_s21 = int_to_ptr.hbm [resolvable:$true] %s2597_s21 }
 0x13d   : > { %1653 = vmatpush.bf16.msra.mxu3 %v1626_v36  ;;  %v1617_v50 = vpack.c.bf16 %v1588_v20, %v1587_v60  ;;  %v1382_v18 = vmul.f32 %v1350_v47, %v3409_v14  ;;  %v1383_v43 = vmul.f32 %v1350_v47, %v3411_v44  ;;  %v3571_v51 = vadd.f32 2.0, %v2582_v10  ;;  %2068 = vst [vmem:[#allocation1] sm:$0xff] %v3611_v11  ;;  %s2599_s27 = scalar_lea.hbm %s2598_s21, 8  ;;  %p2604_p6 = scmp.lt.s32.totalorder %s2598_s21, %s3960_s7 }
 0x13e   : > { %1441 = vmatpush.bf16.msra.mxu0 %v1415_v1  ;;  %1454 = vmatpush.bf16.msra.mxu1 %v1423_v41  ;;  %v1603_v48 = vmul.f32 %v1561_v34, %v3495_v17  ;;  %v1604_v0 = vmul.f32 %v1561_v34, %v3497_v15  ;;  %v1398_v25 = vmul.f32 %v1358_v7, %v3409_v14  ;;  %vm1681_vm10 = vcmp.gt.f32.partialorder %v3265_v30, -1.0  ;;  %p2600_p3 = scmp.ne.s32.totalorder %s2598_s21, %s2599_s27  ;;  %p2605_p7 = scmp.lt.s32.totalorder %s2603_s9, %s2599_s27 }
 0x13f   : > { %1641 = vmatpush.bf16.msra.mxu2 %v1617_v50  ;;  %v1414_v53 = vpack.c.bf16 %v1383_v43, %v1382_v18  ;;  %v1399_v37 = vmul.f32 %v1358_v7, %v3411_v44  ;;  %v1668_v12 = vadd.f32 %v3219_v45, %v3571_v51  ;;  %vm1685_vm11 = vcmp.lt.f32.partialorder %v3265_v30, 16.0 }
 0x140   : > { %v1625_v33 = vpack.c.bf16 %v1604_v0, %v1603_v48  ;;  %v1712_v42 = vperm.slane %v3285_v56, 0  ;;  %v1715_v40 = vsub.f32 1.0, %v3283_v55  ;;  %v1721_v23 = vadd.s32 1, %v3285_v56  ;;  %p2601_p4 = pnand %p2600_p3, %p2780_p8  ;;  %p2606_p10 = por %p2605_p7, %p2604_p6 }
 0x141   : > { %v1422_v49 = vpack.c.bf16 %v1399_v37, %v1398_v25  ;;  %v1674_v14 = vfloor.f32 %v1668_v12  ;;  %vm1680_vm12 = vcmp.gt.f32.partialorder %v1668_v12, -1.0  ;;  %vm1683_vm13 = vcmp.lt.f32.partialorder %v1668_v12, 16.0 }
 0x142   : > { %1654 = vmatpush.bf16.msra.mxu3 %v1625_v33  ;;  %1442 = vmatpush.bf16.msra.mxu0 %v1414_v53  ;;  %vm1682_vm14 = vmand %vm1680_vm12, %vm1681_vm10  ;;  %vm3587_vm15 = vcmp.eq.s32.totalorder %v2854_v16, %v1712_v42  ;;  %vm3592_vm0 = vcmp.eq.s32.totalorder %v2882_v29, %v1712_v42  ;;  %v1717_v56 = vperm.slane %v1715_v40, 0  ;;  %v1722_v46 = vperm.slane %v1721_v23, 0  ;;  %p2602_p5 = pneg %p2601_p4 }
 0x143   : > { %1455 = vmatpush.bf16.msra.mxu1 %v1422_v49  ;;  %v1676_v59 = vsub.f32 %v1668_v12, %v1674_v14  ;;  %v2498_v54 = vcvt.f32.s32 %v1674_v14  ;;  %vm1684_vm1 = vmand %vm1682_vm14, %vm1683_vm13  ;;  %v1726_v58 = vperm.slane %v3283_v55, 0  ;;  %v1537_v63 = vrot.slane %v3482_v24, 1 }
 0x144   : > { %vm1686_vm2 = vmand %vm1684_vm1, %vm1685_vm11  ;;  %v1719_v9 = vsel %vm3587_vm15, %v1717_v56, 0.0  ;;  %v1720_v28 = vsel %vm3592_vm0, %v1717_v56, 0.0  ;;  %vm1723_vm3 = vcmp.eq.s32.totalorder %v2854_v16, %v1722_v46  ;;  %vm1724_vm4 = vcmp.eq.s32.totalorder %v2882_v29, %v1722_v46  ;;  %p2607_p11 = pnand %p2606_p10, %p2602_p5 }
 0x145   : > { %v1691_v61 = vsel %vm1686_vm2, %v3295_v62, 0.0  ;;  %v1692_v55 = vperm.slane %v2498_v54, 0  ;;  %v1695_v38 = vsub.f32 1.0, %v1676_v59  ;;  %v1701_v4 = vadd.s32 1, %v2498_v54  ;;  %1443 = vmatmul.bf16.vlgmr.msra.gmra.mxu0 %v3090_v13 }
 0x146   : > { %v1706_v30 = vperm.slane %v1676_v59, 0  ;;  %v1728_v27 = vsel %vm1723_vm3, %v1726_v58, 0.0  ;;  %v1729_v19 = vsel %vm1724_vm4, %v1726_v58, 0.0  ;;  %v1733_v57 = vperm.slane %v1691_v61, 0  ;;  %1456 = vmatmul.bf16.vlgmr.msra.gmra.mxu1 %v3141_v39 }
 0x147   : > { %vm3616_vm5 = vcmp.eq.s32.totalorder %v2854_v16, %v1692_v55  ;;  %v1697_v62 = vperm.slane %v1695_v38, 0  ;;  %v1702_v60 = vperm.slane %v1701_v4, 0  ;;  %v1730_v20 = vadd.f32 %v1728_v27, %v1719_v9 }
 0x148   : > { %v1731_v47 = vadd.f32 %v1729_v19, %v1720_v28  ;;  %vm1694_vm6 = vcmp.eq.s32.totalorder %v2882_v29, %v1692_v55  ;;  %v1552_v13 = vperm.slane %v1537_v63, 0  ;;  %v1544_v1 = vrot.slane %v3490_v6, 1 }
 0x149   : > { %v1699_v41 = vsel %vm3616_vm5, %v1697_v62, 0.0  ;;  %vm1703_vm7 = vcmp.eq.s32.totalorder %v2854_v16, %v1702_v60  ;;  %v3625_v39 = vmul.f32 %v1733_v57, %v1730_v20  ;;  %v1700_v34 = vsel %vm1694_vm6, %v1697_v62, 0.0 }
 0x14a   : > { %v1708_v7 = vsel %vm1703_vm7, %v1706_v30, 0.0  ;;  %v3627_v50 = vmul.f32 %v1733_v57, %v1731_v47  ;;  %vm1704_vm8 = vcmp.eq.s32.totalorder %v2882_v29, %v1702_v60  ;;  %v1585_v18 = vmul.f32 %v1552_v13, %v3495_v17 }
 0x14b   : > { %v3631_v43 = vadd.f32 %v1708_v7, %v1699_v41  ;;  %v1709_v10 = vsel %vm1704_vm8, %v1706_v30, 0.0  ;;  %v1586_v48 = vmul.f32 %v1552_v13, %v3497_v15  ;;  %v1560_v0 = vperm.slane %v1544_v1, 0 }
 0x14c   : > { %v3634_v25 = vadd.f32 %v1709_v10, %v1700_v34  ;;  %v1551_v53 = vperm.slane %v3482_v24, 0  ;;  %v1559_v37 = vperm.slane %v3490_v6, 0  ;;  %v1869_v12 = vadd.f32 %v3480_v22, %v3571_v51 }
 0x14d   : > { %v1745_v33 = vrot.slane %v3631_v43, 7  ;;  %v1616_v42 = vpack.c.bf16 %v1586_v48, %v1585_v18  ;;  %v1601_v40 = vmul.f32 %v1560_v0, %v3495_v17  ;;  %v1602_v23 = vmul.f32 %v1560_v0, %v3497_v15 }
 0x14e   : > { %v1752_v49 = vrot.slane %v3634_v25, 7  ;;  %v1744_v14 = vrot.slane %v3631_v43, 6  ;;  %v1751_v45 = vrot.slane %v3634_v25, 6  ;;  %v1583_v24 = vmul.f32 %v1551_v53, %v3495_v17 }
 0x14f   : > { %v1760_v44 = vperm.slane %v1745_v33, 0  ;;  %1642 = vmatpush.bf16.msra.mxu2 %v1616_v42  ;;  %v1624_v6 = vpack.c.bf16 %v1602_v23, %v1601_v40  ;;  %v1584_v22 = vmul.f32 %v1551_v53, %v3497_v15  ;;  %v1599_v56 = vmul.f32 %v1559_v37, %v3495_v17 }
 0x150   : > { %v1768_v46 = vperm.slane %v1752_v49, 0  ;;  %v1759_v59 = vperm.slane %v1744_v14, 0  ;;  %v1767_v54 = vperm.slane %v1751_v45, 0  ;;  %v1600_v58 = vmul.f32 %v1559_v37, %v3497_v15 }
 0x151   : > { %v1799_v63 = vmul.f32 %v1760_v44, %v3625_v39  ;;  %v1800_v9 = vmul.f32 %v1760_v44, %v3627_v50  ;;  %1655 = vmatpush.bf16.msra.mxu3 %v1624_v6  ;;  %v1615_v28 = vpack.c.bf16 %v1584_v22, %v1583_v24  ;;  %v1874_v61 = vadd.f32 %v3519_v26, %v2936_v2 }
 0x152   : > { %v1815_v55 = vmul.f32 %v1768_v46, %v3625_v39  ;;  %v1816_v38 = vmul.f32 %v1768_v46, %v3627_v50  ;;  %v1797_v17 = vmul.f32 %v1759_v59, %v3625_v39  ;;  %v1798_v4 = vmul.f32 %v1759_v59, %v3627_v50 }
 0x153   : > { %v1824_v30 = vpack.c.bf16 %v1800_v9, %v1799_v63  ;;  %v1813_v15 = vmul.f32 %v1767_v54, %v3625_v39  ;;  %v1814_v27 = vmul.f32 %v1767_v54, %v3627_v50  ;;  %1643 = vmatpush.bf16.msra.mxu2 %v1615_v28  ;;  %v1623_v19 = vpack.c.bf16 %v1600_v58, %v1599_v56 }
 0x154   : > { %v1832_v57 = vpack.c.bf16 %v1816_v38, %v1815_v55  ;;  %v1823_v36 = vpack.c.bf16 %v1798_v4, %v1797_v17  ;;  %v1875_v62 = vfloor.f32 %v1869_v12  ;;  %v1876_v60 = vfloor.f32 %v1874_v61 }
 0x155   : > { %1838 = vmatpush.bf16.msrb.mxu0 %v1824_v30  ;;  %v1831_v2 = vpack.c.bf16 %v1814_v27, %v1813_v15  ;;  %1656 = vmatpush.bf16.msra.mxu3 %v1623_v19  ;;  %vm1881_vm9 = vcmp.gt.f32.partialorder %v1869_v12, -1.0  ;;  %vm1882_vm10 = vcmp.gt.f32.partialorder %v1874_v61, -1.0  ;;  %vm1884_vm11 = vcmp.lt.f32.partialorder %v1869_v12, 16.0 }
 0x156   : > { %1851 = vmatpush.bf16.msrb.mxu1 %v1832_v57  ;;  %v1877_v26 = vsub.f32 %v1869_v12, %v1875_v62  ;;  %v1878_v20 = vsub.f32 %v1874_v61, %v1876_v60  ;;  %v2502_v47 = vcvt.f32.s32 %v1875_v62  ;;  %v2504_v13 = vcvt.f32.s32 %v1876_v60  ;;  %vm1883_vm12 = vmand %vm1881_vm9, %vm1882_vm10  ;;  %1644 = vmatmul.bf16.vlgmr.msra.gmra.mxu2 %v3198_v52 }
 0x157   : > { %vm1885_vm13 = vmand %vm1883_vm12, %vm1884_vm11  ;;  %vm1886_vm14 = vcmp.lt.f32.partialorder %v1874_v61, 16.0  ;;  %v1743_v1 = vrot.slane %v3631_v43, 5  ;;  %v1750_v41 = vrot.slane %v3634_v25, 5  ;;  %v1742_v34 = vrot.slane %v3631_v43, 4 }
 0x158   : > { %vm3664_vm15 = vmand %vm1885_vm13, %vm1886_vm14  ;;  %v1893_v18 = vperm.slane %v2502_v47, 0  ;;  %v1896_v10 = vsub.f32 1.0, %v1877_v26  ;;  %v1902_v48 = vadd.s32 1, %v2502_v47  ;;  %v1907_v0 = vperm.slane %v1877_v26, 0  ;;  %1657 = vmatmul.bf16.vlgmr.msra.gmra.mxu3 %v3287_v35 }
 0x159   : > { %1839 = vmatpush.bf16.msrb.mxu0 %v1823_v36  ;;  %v1892_v52 = vsel %vm3664_vm15, %v3557_v3, 0.0  ;;  %v1913_v53 = vperm.slane %v2504_v13, 0  ;;  %v1916_v37 = vsub.f32 1.0, %v1878_v20  ;;  %v1922_v12 = vadd.s32 1, %v2504_v13 }
 0x15a   : > { %1852 = vmatpush.bf16.msrb.mxu1 %v1831_v2  ;;  %vm3673_vm0 = vcmp.eq.s32.totalorder %v2854_v16, %v1893_v18  ;;  %v1898_v42 = vperm.slane %v1896_v10, 0  ;;  %v1903_v40 = vperm.slane %v1902_v48, 0  ;;  %v1927_v23 = vperm.slane %v1878_v20, 0 }
 0x15b   : > { %vm3678_vm1 = vcmp.eq.s32.totalorder %v2854_v16, %v1913_v53  ;;  %vm3683_vm2 = vcmp.eq.s32.totalorder %v2882_v29, %v1913_v53  ;;  %v1918_v49 = vperm.slane %v1916_v37, 0  ;;  %v1923_v14 = vperm.slane %v1922_v12, 0 }
 0x15c   : > { %v1900_v45 = vsel %vm3673_vm0, %v1898_v42, 0.0  ;;  %vm1904_vm3 = vcmp.eq.s32.totalorder %v2854_v16, %v1903_v40  ;;  %v1934_v24 = vperm.slane %v1892_v52, 0  ;;  %vm3691_vm4 = vcmp.eq.s32.totalorder %v2882_v29, %v1893_v18 }
 0x15d   : > { %v1909_v6 = vsel %vm1904_vm3, %v1907_v0, 0.0  ;;  %v1920_v22 = vsel %vm3678_vm1, %v1918_v49, 0.0  ;;  %v1921_v56 = vsel %vm3683_vm2, %v1918_v49, 0.0  ;;  %vm1924_vm5 = vcmp.eq.s32.totalorder %v2854_v16, %v1923_v14 }
 0x15e   : > { %v3700_v46 = vadd.f32 %v1909_v6, %v1900_v45  ;;  %vm1925_vm6 = vcmp.eq.s32.totalorder %v2882_v29, %v1923_v14  ;;  %v1929_v59 = vsel %vm1924_vm5, %v1927_v23, 0.0  ;;  %v1901_v54 = vsel %vm3691_vm4, %v1898_v42, 0.0 }
 0x15f   : > { %v1930_v58 = vsel %vm1925_vm6, %v1927_v23, 0.0  ;;  %v1931_v63 = vadd.f32 %v1929_v59, %v1920_v22  ;;  %vm1905_vm7 = vcmp.eq.s32.totalorder %v2882_v29, %v1903_v40  ;;  %v1758_v9 = vperm.slane %v1743_v1, 0 }
 0x160   : > { %v1932_v28 = vadd.f32 %v1930_v58, %v1921_v56  ;;  %v1946_v61 = vrot.slane %v3700_v46, 7  ;;  %v1910_v55 = vsel %vm1905_vm7, %v1907_v0, 0.0  ;;  %v1766_v38 = vperm.slane %v1750_v41, 0 }
 0x161   : > { %v3707_v17 = vmul.f32 %v1934_v24, %v1931_v63  ;;  %v3709_v4 = vadd.f32 %v1910_v55, %v1901_v54  ;;  %v1795_v30 = vmul.f32 %v1758_v9, %v3625_v39  ;;  %v1796_v15 = vmul.f32 %v1758_v9, %v3627_v50 }
 0x162   : > { %v3713_v27 = vmul.f32 %v1934_v24, %v1932_v28  ;;  %v1961_v19 = vperm.slane %v1946_v61, 0  ;;  %v1811_v57 = vmul.f32 %v1766_v38, %v3625_v39  ;;  %v1812_v36 = vmul.f32 %v1766_v38, %v3627_v50 }
 0x163   : > { %v1953_v62 = vrot.slane %v3709_v4, 7  ;;  %v1822_v60 = vpack.c.bf16 %v1796_v15, %v1795_v30  ;;  %v1945_v2 = vrot.slane %v3700_v46, 6  ;;  %v1952_v26 = vrot.slane %v3709_v4, 6 }
 0x164   : > { %v2000_v20 = vmul.f32 %v1961_v19, %v3707_v17  ;;  %v2001_v47 = vmul.f32 %v1961_v19, %v3713_v27  ;;  %v1830_v13 = vpack.c.bf16 %v1812_v36, %v1811_v57  ;;  %v1757_v1 = vperm.slane %v1742_v34, 0 }
 0x165   : > { %v1969_v41 = vperm.slane %v1953_v62, 0  ;;  %1840 = vmatpush.bf16.msrb.mxu0 %v1822_v60  ;;  %v1960_v7 = vperm.slane %v1945_v2, 0  ;;  %v1968_v18 = vperm.slane %v1952_v26, 0  ;;  %v1749_v10 = vrot.slane %v3634_v25, 4 }
 0x166   : > { %v2025_v48 = vpack.c.bf16 %v2001_v47, %v2000_v20  ;;  %1853 = vmatpush.bf16.msrb.mxu1 %v1830_v13  ;;  %v1793_v0 = vmul.f32 %v1757_v1, %v3625_v39  ;;  %v1794_v52 = vmul.f32 %v1757_v1, %v3627_v50  ;;  %v1944_v53 = vrot.slane %v3700_v46, 5 }
 0x167   : > { %v2016_v37 = vmul.f32 %v1969_v41, %v3707_v17  ;;  %v2017_v12 = vmul.f32 %v1969_v41, %v3713_v27  ;;  %v1998_v34 = vmul.f32 %v1960_v7, %v3707_v17  ;;  %v1999_v33 = vmul.f32 %v1960_v7, %v3713_v27 }
 0x168   : > { %2039 = vmatpush.bf16.msrb.mxu2 %v2025_v48  ;;  %v2014_v42 = vmul.f32 %v1968_v18, %v3707_v17  ;;  %v2015_v40 = vmul.f32 %v1968_v18, %v3713_v27  ;;  %v1821_v23 = vpack.c.bf16 %v1794_v52, %v1793_v0  ;;  %v1765_v35 = vperm.slane %v1749_v10, 0 }
 0x169   : > { %v2033_v3 = vpack.c.bf16 %v2017_v12, %v2016_v37  ;;  %v2024_v49 = vpack.c.bf16 %v1999_v33, %v1998_v34  ;;  %v1959_v14 = vperm.slane %v1944_v53, 0  ;;  %v1951_v45 = vrot.slane %v3709_v4, 5 }
 0x16a   : > { %v2032_v24 = vpack.c.bf16 %v2015_v40, %v2014_v42  ;;  %1841 = vmatpush.bf16.msrb.mxu0 %v1821_v23  ;;  %v1809_v44 = vmul.f32 %v1765_v35, %v3625_v39  ;;  %v1810_v6 = vmul.f32 %v1765_v35, %v3627_v50  ;;  %v1741_v22 = vrot.slane %v3631_v43, 3 }
 0x16b   : > { %2052 = vmatpush.bf16.msrb.mxu3 %v2033_v3  ;;  %v1996_v56 = vmul.f32 %v1959_v14, %v3707_v17  ;;  %v1997_v59 = vmul.f32 %v1959_v14, %v3713_v27  ;;  %v1967_v54 = vperm.slane %v1951_v45, 0  ;;  %v1748_v58 = vrot.slane %v3634_v25, 3 }
 0x16c   : > { %2040 = vmatpush.bf16.msrb.mxu2 %v2024_v49  ;;  %v1829_v63 = vpack.c.bf16 %v1810_v6, %v1809_v44  ;;  %v1756_v9 = vperm.slane %v1741_v22, 0  ;;  %v1943_v28 = vrot.slane %v3700_v46, 4  ;;  %v1950_v61 = vrot.slane %v3709_v4, 4 }
 0x16d   : > { %v2023_v55 = vpack.c.bf16 %v1997_v59, %v1996_v56  ;;  %v2012_v38 = vmul.f32 %v1967_v54, %v3707_v17  ;;  %v2013_v30 = vmul.f32 %v1967_v54, %v3713_v27  ;;  %v1764_v15 = vperm.slane %v1748_v58, 0 }
 0x16e   : > { %1854 = vmatpush.bf16.msrb.mxu1 %v1829_v63  ;;  %v1791_v19 = vmul.f32 %v1756_v9, %v3625_v39  ;;  %v1792_v57 = vmul.f32 %v1756_v9, %v3627_v50  ;;  %v1958_v36 = vperm.slane %v1943_v28, 0  ;;  %v1966_v62 = vperm.slane %v1950_v61, 0 }
 0x16f   : > { %2053 = vmatpush.bf16.msrb.mxu3 %v2032_v24  ;;  %v2031_v60 = vpack.c.bf16 %v2013_v30, %v2012_v38  ;;  %v1807_v2 = vmul.f32 %v1764_v15, %v3625_v39  ;;  %v1808_v26 = vmul.f32 %v1764_v15, %v3627_v50  ;;  %v1740_v20 = vrot.slane %v3631_v43, 2 }
 0x170   : > { %2041 = vmatpush.bf16.msrb.mxu2 %v2023_v55  ;;  %v1820_v47 = vpack.c.bf16 %v1792_v57, %v1791_v19  ;;  %v1994_v13 = vmul.f32 %v1958_v36, %v3707_v17  ;;  %v1995_v1 = vmul.f32 %v1958_v36, %v3713_v27  ;;  %v2010_v41 = vmul.f32 %v1966_v62, %v3707_v17 }
 0x171   : > { %v1828_v7 = vpack.c.bf16 %v1808_v26, %v1807_v2  ;;  %v2011_v18 = vmul.f32 %v1966_v62, %v3713_v27  ;;  %v1755_v10 = vperm.slane %v1740_v20, 0  ;;  %v1747_v48 = vrot.slane %v3634_v25, 2  ;;  %v2070_v2 = vld [vmem:[#allocation1 + $0x1] ss:$9 sm:$0xff] }
 0x172   : > { %1842 = vmatpush.bf16.msrb.mxu0 %v1820_v47  ;;  %v2022_v0 = vpack.c.bf16 %v1995_v1, %v1994_v13  ;;  %v1942_v52 = vrot.slane %v3700_v46, 3  ;;  %v1949_v53 = vrot.slane %v3709_v4, 3  ;;  %v1739_v37 = vrot.slane %v3631_v43, 1 }
 0x173   : > { %2054 = vmatpush.bf16.msrb.mxu3 %v2031_v60  ;;  %1855 = vmatpush.bf16.msrb.mxu1 %v1828_v7  ;;  %v2030_v12 = vpack.c.bf16 %v2011_v18, %v2010_v41  ;;  %v1789_v34 = vmul.f32 %v1755_v10, %v3625_v39  ;;  %v1790_v33 = vmul.f32 %v1755_v10, %v3627_v50  ;;  %v1763_v42 = vperm.slane %v1747_v48, 0 }
 0x174   : > { %2042 = vmatpush.bf16.msrb.mxu2 %v2022_v0  ;;  %v1957_v40 = vperm.slane %v1942_v52, 0  ;;  %v1965_v23 = vperm.slane %v1949_v53, 0  ;;  %v1754_v35 = vperm.slane %v1739_v37, 0  ;;  %v1746_v3 = vrot.slane %v3634_v25, 1 }
 0x175   : > { %v1819_v49 = vpack.c.bf16 %v1790_v33, %v1789_v34  ;;  %v1805_v14 = vmul.f32 %v1763_v42, %v3625_v39  ;;  %v1806_v45 = vmul.f32 %v1763_v42, %v3627_v50  ;;  %v1941_v24 = vrot.slane %v3700_v46, 2 }
 0x176   : > { %v1992_v44 = vmul.f32 %v1957_v40, %v3707_v17  ;;  %v1993_v6 = vmul.f32 %v1957_v40, %v3713_v27  ;;  %v2008_v22 = vmul.f32 %v1965_v23, %v3707_v17  ;;  %v2009_v56 = vmul.f32 %v1965_v23, %v3713_v27 }
 0x177   : > { %2055 = vmatpush.bf16.msrb.mxu3 %v2030_v12  ;;  %1843 = vmatpush.bf16.msrb.mxu0 %v1819_v49  ;;  %v1827_v59 = vpack.c.bf16 %v1806_v45, %v1805_v14  ;;  %v1787_v54 = vmul.f32 %v1754_v35, %v3625_v39  ;;  %v1788_v58 = vmul.f32 %v1754_v35, %v3627_v50  ;;  %v1762_v63 = vperm.slane %v1746_v3, 0  ;;  %v3787_v12 = vld.sshfl [vmem:[#allocation1 + $0x8] sm:$0xff pattern:$0x73625140] }
 0x178   : > { %v2021_v9 = vpack.c.bf16 %v1993_v6, %v1992_v44  ;;  %v2029_v28 = vpack.c.bf16 %v2009_v56, %v2008_v22  ;;  %v1956_v61 = vperm.slane %v1941_v24, 0  ;;  %v1948_v55 = vrot.slane %v3709_v4, 2  ;;  %2228 = vst [vmem:[#allocation1] ss:$4 sm:$0xff] %v2843_v8 }
 0x179   : > { %1856 = vmatpush.bf16.msrb.mxu1 %v1827_v59  ;;  %v1818_v38 = vpack.c.bf16 %v1788_v58, %v1787_v54  ;;  %v1803_v30 = vmul.f32 %v1762_v63, %v3625_v39  ;;  %v1804_v15 = vmul.f32 %v1762_v63, %v3627_v50  ;;  %v1753_v19 = vperm.slane %v3631_v43, 0 }
 0x17a   : > { %2043 = vmatpush.bf16.msrb.mxu2 %v2021_v9  ;;  %v1990_v57 = vmul.f32 %v1956_v61, %v3707_v17  ;;  %v1991_v36 = vmul.f32 %v1956_v61, %v3713_v27  ;;  %v1964_v62 = vperm.slane %v1948_v55, 0  ;;  %v1761_v60 = vperm.slane %v3634_v25, 0 }
 0x17b   : > { %2056 = vmatpush.bf16.msrb.mxu3 %v2029_v28  ;;  %1844 = vmatpush.bf16.msrb.mxu0 %v1818_v38  ;;  %v1826_v26 = vpack.c.bf16 %v1804_v15, %v1803_v30  ;;  %v1785_v20 = vmul.f32 %v1753_v19, %v3625_v39  ;;  %v1786_v47 = vmul.f32 %v1753_v19, %v3627_v50  ;;  %v1940_v13 = vrot.slane %v3700_v46, 1 }
 0x17c   : > { %v2020_v1 = vpack.c.bf16 %v1991_v36, %v1990_v57  ;;  %v2006_v43 = vmul.f32 %v1964_v62, %v3707_v17  ;;  %v2007_v41 = vmul.f32 %v1964_v62, %v3713_v27  ;;  %v1801_v7 = vmul.f32 %v1761_v60, %v3625_v39 }
 0x17d   : > { %1857 = vmatpush.bf16.msrb.mxu1 %v1826_v26  ;;  %v1817_v18 = vpack.c.bf16 %v1786_v47, %v1785_v20  ;;  %v1802_v25 = vmul.f32 %v1761_v60, %v3627_v50  ;;  %v2066_v10 = vadd.f32 %v3571_v51, %v3611_v11  ;;  %v2072_v48 = vadd.f32 %v2070_v2, %v3044_v21  ;;  %v454_v51 = vld [vmem:[%s2876_s2 + $0x8] sm:$0x1]  ;;  %s2316_s2 = sshll.u32 %s437_s19, 4  ;;  %s2317_s2 = int_to_ptr.vmem [resolvable:$true] %s2316_s2 }
 0x17e   : > { %2044 = vmatpush.bf16.msrb.mxu2 %v2020_v1  ;;  %v2028_v0 = vpack.c.bf16 %v2007_v41, %v2006_v43  ;;  %v1955_v52 = vperm.slane %v1940_v13, 0  ;;  %v1947_v53 = vrot.slane %v3709_v4, 1  ;;  %v1954_v37 = vperm.slane %v3700_v46, 0 }
 0x17f   : > { %1845 = vmatpush.bf16.msrb.mxu0 %v1817_v18  ;;  %v1825_v39 = vpack.c.bf16 %v1802_v25, %v1801_v7  ;;  %v2073_v34 = vfloor.f32 %v2066_v10  ;;  %v2074_v33 = vfloor.f32 %v2072_v48  ;;  %vm2079_vm8 = vcmp.gt.f32.partialorder %v2066_v10, -1.0 }
 0x180   : > { %2057 = vmatpush.bf16.msrb.mxu3 %v2028_v0  ;;  %vm2080_vm9 = vcmp.gt.f32.partialorder %v2072_v48, -1.0  ;;  %vm2082_vm10 = vcmp.lt.f32.partialorder %v2066_v10, 16.0  ;;  %vm2084_vm11 = vcmp.lt.f32.partialorder %v2072_v48, 16.0  ;;  %v1988_v21 = vmul.f32 %v1955_v52, %v3707_v17 }
 0x181   : > { %1858 = vmatpush.bf16.msrb.mxu1 %v1825_v39  ;;  %v2075_v11 = vsub.f32 %v2066_v10, %v2073_v34  ;;  %v2076_v50 = vsub.f32 %v2072_v48, %v2074_v33  ;;  %v2506_v46 = vcvt.f32.s32 %v2073_v34  ;;  %v2508_v42 = vcvt.f32.s32 %v2074_v33  ;;  %vm2081_vm12 = vmand %vm2079_vm8, %vm2080_vm9 }
 0x182   : > { %vm2083_vm13 = vmand %vm2081_vm12, %vm2082_vm10  ;;  %v1989_v40 = vmul.f32 %v1955_v52, %v3713_v27  ;;  %v1963_v23 = vperm.slane %v1947_v53, 0  ;;  %v3794_v35 = vmul.f32 %v1954_v37, %v3707_v17  ;;  %v1987_v8 = vmul.f32 %v1954_v37, %v3713_v27  ;;  %1846 = vmatmul.bf16.vlgmr.msrb.gmra.mxu0 %v3437_v31 }
 0x183   : > { %vm3799_vm14 = vmand %vm2083_vm13, %vm2084_vm11  ;;  %v2087_v49 = vperm.slane %v2506_v46, 0  ;;  %v2090_v14 = vsub.f32 1.0, %v2075_v11  ;;  %v2096_v45 = vadd.s32 1, %v2506_v46  ;;  %v2101_v24 = vperm.slane %v2075_v11, 0 }
 0x184   : > { %v2086_v44 = vsel %vm3799_vm14, %v454_v51, 0.0  ;;  %v2107_v6 = vperm.slane %v2508_v42, 0  ;;  %v2110_v22 = vsub.f32 1.0, %v2076_v50  ;;  %v2116_v56 = vadd.s32 1, %v2508_v42  ;;  %1859 = vmatmul.bf16.vlgmr.msrb.gmra.mxu1 %v3552_v32 }
 0x185   : > { %vm3807_vm15 = vcmp.eq.s32.totalorder %v2854_v16, %v2087_v49  ;;  %v2092_v59 = vperm.slane %v2090_v14, 0  ;;  %v2097_v54 = vperm.slane %v2096_v45, 0  ;;  %v2121_v58 = vperm.slane %v2076_v50, 0 }
 0x186   : > { %vm3812_vm0 = vcmp.eq.s32.totalorder %v2854_v16, %v2107_v6  ;;  %vm3817_vm1 = vcmp.eq.s32.totalorder %v2882_v29, %v2107_v6  ;;  %v2112_v28 = vperm.slane %v2110_v22, 0  ;;  %v2117_v32 = vperm.slane %v2116_v56, 0 }
 0x187   : > { %v2094_v61 = vsel %vm3807_vm15, %v2092_v59, 0.0  ;;  %vm2098_vm2 = vcmp.eq.s32.totalorder %v2854_v16, %v2097_v54  ;;  %v2128_v55 = vperm.slane %v2086_v44, 0  ;;  %vm3825_vm3 = vcmp.eq.s32.totalorder %v2882_v29, %v2087_v49 }
 0x188   : > { %v2103_v30 = vsel %vm2098_vm2, %v2101_v24, 0.0  ;;  %v2114_v15 = vsel %vm3812_vm0, %v2112_v28, 0.0  ;;  %v2115_v19 = vsel %vm3817_vm1, %v2112_v28, 0.0  ;;  %vm2118_vm4 = vcmp.eq.s32.totalorder %v2854_v16, %v2117_v32 }
 0x189   : > { %v3834_v57 = vadd.f32 %v2103_v30, %v2094_v61  ;;  %vm2119_vm5 = vcmp.eq.s32.totalorder %v2882_v29, %v2117_v32  ;;  %v2123_v36 = vsel %vm2118_vm4, %v2121_v58, 0.0  ;;  %v2095_v62 = vsel %vm3825_vm3, %v2092_v59, 0.0  ;;  %v842_v32 = vpop.f32.mrf.mxu2  ;;  %v855_v61 = vpop.f32.mrf.mxu3 }
 0x18a   : > { %v2124_v60 = vsel %vm2119_vm5, %v2121_v58, 0.0  ;;  %v2125_v2 = vadd.f32 %v2123_v36, %v2114_v15  ;;  %vm2099_vm6 = vcmp.eq.s32.totalorder %v2882_v29, %v2097_v54  ;;  %v2019_v26 = vpack.c.bf16 %v1989_v40, %v1988_v21  ;;  %v639_v54 = vpop.f32.mrf.mxu0  ;;  %v652_v58 = vpop.f32.mrf.mxu1 }
 0x18b   : > { %v2126_v20 = vadd.f32 %v2124_v60, %v2115_v19  ;;  %v2140_v47 = vrot.slane %v3834_v57, 7  ;;  %v2104_v13 = vsel %vm2099_vm6, %v2101_v24, 0.0  ;;  %v2004_v1 = vmul.f32 %v1963_v23, %v3707_v17 }
 0x18c   : > { %v3842_v16 = vmul.f32 %v2128_v55, %v2125_v2  ;;  %v3844_v43 = vadd.f32 %v2104_v13, %v2095_v62  ;;  %2045 = vmatpush.bf16.msrb.mxu2 %v2019_v26  ;;  %v2005_v41 = vmul.f32 %v1963_v23, %v3713_v27  ;;  %v2139_v7 = vrot.slane %v3834_v57, 6 }
 0x18d   : > { %v3848_v18 = vmul.f32 %v2128_v55, %v2126_v20  ;;  %v2155_v25 = vperm.slane %v2140_v47, 0  ;;  %v2018_v29 = vpack.c.bf16 %v1987_v8, %v3794_v35  ;;  %v1962_v10 = vperm.slane %v3709_v4, 0 }
 0x18e   : > { %v2147_v48 = vrot.slane %v3844_v43, 7  ;;  %v2027_v0 = vpack.c.bf16 %v2005_v41, %v2004_v1  ;;  %v2154_v52 = vperm.slane %v2139_v7, 0  ;;  %v2146_v53 = vrot.slane %v3844_v43, 6 }
 0x18f   : > { %v2194_v37 = vmul.f32 %v2155_v25, %v3842_v16  ;;  %v2195_v39 = vmul.f32 %v2155_v25, %v3848_v18  ;;  %v2002_v34 = vmul.f32 %v1962_v10, %v3707_v17  ;;  %v2003_v33 = vmul.f32 %v1962_v10, %v3713_v27 }
 0x190   : > { %v2163_v21 = vperm.slane %v2147_v48, 0  ;;  %2058 = vmatpush.bf16.msrb.mxu3 %v2027_v0  ;;  %v2192_v51 = vmul.f32 %v2154_v52, %v3842_v16  ;;  %v2193_v4 = vmul.f32 %v2154_v52, %v3848_v18  ;;  %v2162_v11 = vperm.slane %v2146_v53, 0  ;;  %2046 = vmatpush.bf16.msrb.mxu2 %v2018_v29 }
 0x191   : > { %v2219_v50 = vpack.c.bf16 %v2195_v39, %v2194_v37  ;;  %v2026_v46 = vpack.c.bf16 %v2003_v33, %v2002_v34  ;;  %v2138_v42 = vrot.slane %v3834_v57, 5  ;;  %v2145_v40 = vrot.slane %v3844_v43, 5  ;;  %v844_v53 = vpop.f32.mrf.mxu2  ;;  %v857_v37 = vpop.f32.mrf.mxu3 }
 0x192   : > { %v2210_v23 = vmul.f32 %v2163_v21, %v3842_v16  ;;  %v2211_v17 = vmul.f32 %v2163_v21, %v3848_v18  ;;  %v2218_v35 = vpack.c.bf16 %v2193_v4, %v2192_v51  ;;  %v2208_v27 = vmul.f32 %v2162_v11, %v3842_v16  ;;  %v641_v25 = vpop.f32.mrf.mxu0  ;;  %v654_v29 = vpop.f32.mrf.mxu1 }
 0x193   : > { %2233 = vmatpush.bf16.msra.mxu0 %v2219_v50  ;;  %v2209_v8 = vmul.f32 %v2162_v11, %v3848_v18  ;;  %v2153_v3 = vperm.slane %v2138_v42, 0  ;;  %v2161_v49 = vperm.slane %v2145_v40, 0  ;;  %2047 = vmatmul.bf16.vlgmr.msrb.gmra.mxu2 %v3598_v5  ;;  %v2137_v14 = vrot.slane %v3834_v57, 4  ;;  %v2266_v25 = vld [vmem:[%s3957_s4] sm:$0xff] }
 0x194   : > { %v2227_v45 = vpack.c.bf16 %v2211_v17, %v2210_v23  ;;  %2059 = vmatpush.bf16.msrb.mxu3 %v2026_v46  ;;  %v2144_v24 = vrot.slane %v3844_v43, 4  ;;  %v2136_v44 = vrot.slane %v3834_v57, 3  ;;  %v2143_v6 = vrot.slane %v3844_v43, 3 }
 0x195   : > { %v2226_v22 = vpack.c.bf16 %v2209_v8, %v2208_v27  ;;  %v2190_v56 = vmul.f32 %v2153_v3, %v3842_v16  ;;  %v2191_v31 = vmul.f32 %v2153_v3, %v3848_v18  ;;  %v2206_v59 = vmul.f32 %v2161_v49, %v3842_v16 }
 0x196   : > { %2246 = vmatpush.bf16.msra.mxu1 %v2227_v45  ;;  %v2207_v5 = vmul.f32 %v2161_v49, %v3848_v18  ;;  %v2152_v63 = vperm.slane %v2137_v14, 0  ;;  %v2160_v9 = vperm.slane %v2144_v24, 0  ;;  %v2151_v28 = vperm.slane %v2136_v44, 0 }
 0x197   : > { %2234 = vmatpush.bf16.msra.mxu0 %v2218_v35  ;;  %v2217_v55 = vpack.c.bf16 %v2191_v31, %v2190_v56  ;;  %2060 = vmatmul.bf16.vlgmr.msrb.gmra.mxu3 %v3787_v12  ;;  %v2135_v38 = vrot.slane %v3834_v57, 2  ;;  %v2159_v19 = vperm.slane %v2143_v6, 0  ;;  %v2142_v36 = vrot.slane %v3844_v43, 2 }
 0x198   : > { %v2188_v30 = vmul.f32 %v2152_v63, %v3842_v16  ;;  %v2189_v15 = vmul.f32 %v2152_v63, %v3848_v18  ;;  %v2225_v62 = vpack.c.bf16 %v2207_v5, %v2206_v59  ;;  %v2204_v60 = vmul.f32 %v2160_v9, %v3842_v16 }
 0x199   : > { %v2205_v2 = vmul.f32 %v2160_v9, %v3848_v18  ;;  %v2186_v26 = vmul.f32 %v2151_v28, %v3842_v16  ;;  %v2187_v12 = vmul.f32 %v2151_v28, %v3848_v18  ;;  %v2150_v47 = vperm.slane %v2135_v38, 0  ;;  %v2229_v28 = vld.sshfl [vmem:[#allocation1] sm:$0xff pattern:$0x73625140] }
 0x19a   : > { %2247 = vmatpush.bf16.msra.mxu1 %v2226_v22  ;;  %v2216_v20 = vpack.c.bf16 %v2189_v15, %v2188_v30  ;;  %v2134_v13 = vrot.slane %v3834_v57, 1  ;;  %v2202_v1 = vmul.f32 %v2159_v19, %v3842_v16  ;;  %v2203_v41 = vmul.f32 %v2159_v19, %v3848_v18  ;;  %v1044_v35 = vpop.f32.mrf.mxu0  ;;  %v1057_v27 = vpop.f32.mrf.mxu1 }
 0x19b   : > { %2235 = vmatpush.bf16.msra.mxu0 %v2217_v55  ;;  %v2158_v7 = vperm.slane %v2142_v36, 0  ;;  %v2224_v10 = vpack.c.bf16 %v2205_v2, %v2204_v60  ;;  %v2141_v48 = vrot.slane %v3844_v43, 1  ;;  %v653_v0 = vadd.f32 %v652_v58, %v639_v54 }
 0x19c   : > { %v856_v52 = vadd.f32 %v855_v61, %v842_v32  ;;  %v2215_v39 = vpack.c.bf16 %v2187_v12, %v2186_v26  ;;  %v2184_v34 = vmul.f32 %v2150_v47, %v3842_v16  ;;  %v2185_v33 = vmul.f32 %v2150_v47, %v3848_v18  ;;  %v1246_v45 = vpop.f32.mrf.mxu2  ;;  %v2230_v32 = vld.sshfl [vmem:[#allocation1 + $0x8] sm:$0xff pattern:$0x73625140] }
 0x19d   : > { %v2149_v21 = vperm.slane %v2134_v13, 0  ;;  %656 = vst [vmem:[#allocation2] sm:$0xf] %v653_v0  ;;  %v2223_v51 = vpack.c.bf16 %v2203_v41, %v2202_v1  ;;  %v2200_v4 = vmul.f32 %v2158_v7, %v3842_v16  ;;  %v2201_v11 = vmul.f32 %v2158_v7, %v3848_v18 }
 0x19e   : > { %2248 = vmatpush.bf16.msra.mxu1 %v2225_v62  ;;  %859 = vst [vmem:[#allocation2 + $0x4] sm:$0xf] %v856_v52  ;;  %v2157_v50 = vperm.slane %v2141_v48, 0  ;;  %v2214_v46 = vpack.c.bf16 %v2185_v33, %v2184_v34  ;;  %v2148_v23 = vperm.slane %v3834_v57, 0  ;;  %v2156_v17 = vperm.slane %v3844_v43, 0 }
 0x19f   : > { %2236 = vmatpush.bf16.msra.mxu0 %v2216_v20  ;;  %v2182_v42 = vmul.f32 %v2149_v21, %v3842_v16  ;;  %v2183_v40 = vmul.f32 %v2149_v21, %v3848_v18  ;;  %v2222_v8 = vpack.c.bf16 %v2201_v11, %v2200_v4  ;;  %v1058_v14 = vadd.f32 %v1057_v27, %v1044_v35  ;;  %v2260_v21 = vld [vmem:[%s3956_s3] sm:$0xff] }
 0x1a0   : > { %v2198_v3 = vmul.f32 %v2157_v50, %v3842_v16  ;;  %v2199_v49 = vmul.f32 %v2157_v50, %v3848_v18  ;;  %v1259_v24 = vpop.f32.mrf.mxu3  ;;  %v2180_v6 = vmul.f32 %v2148_v23, %v3842_v16  ;;  %v2181_v22 = vmul.f32 %v2148_v23, %v3848_v18 }
 0x1a1   : > { %v2213_v44 = vpack.c.bf16 %v2183_v40, %v2182_v42  ;;  %v1260_v57 = vadd.f32 %v1259_v24, %v1246_v45  ;;  %1061 = vst [vmem:[#allocation2 + $0x8] sm:$0xf] %v1058_v14  ;;  %v2196_v56 = vmul.f32 %v2156_v17, %v3842_v16  ;;  %v2197_v31 = vmul.f32 %v2156_v17, %v3848_v18 }
 0x1a2   : > { %2249 = vmatpush.bf16.msra.mxu1 %v2224_v10  ;;  %v2221_v43 = vpack.c.bf16 %v2199_v49, %v2198_v3  ;;  %v2212_v59 = vpack.c.bf16 %v2181_v22, %v2180_v6  ;;  %v1046_v54 = vpop.f32.mrf.mxu0  ;;  %v1059_v58 = vpop.f32.mrf.mxu1  ;;  %v2679_v29 = vmov 0   ;;  %vm2276_vm7 = vcmask 1043456  }
 0x1a3   : > { %2237 = vmatpush.bf16.msra.mxu0 %v2215_v39  ;;  %1263 = vst [vmem:[#allocation2 + $0xc] sm:$0xf] %v1260_v57  ;;  %v2220_v5 = vpack.c.bf16 %v2197_v31, %v2196_v56  ;;  %2581 = vset.pattern.permute.xlu0 %v2679_v29  ;;  %vm2272_vm8 = vcmask 293888  }
 0x1a4   : > { %v1248_v63 = vpop.f32.mrf.mxu2  ;;  %2269 = vperm.xlu0 %2581, %v2266_v25  }
 0x1a6   : > { %2250 = vmatpush.bf16.msra.mxu1 %v2223_v51  ;;  %v2261_v51 = vld [vmem:[#allocation2] sm:$0xff] }
 0x1a7   : > { %2238 = vmatpush.bf16.msra.mxu0 %v2214_v46 }
 0x1a8   : > { %v1261_v9 = vpop.f32.mrf.mxu3 }
 0x1aa   : > { %2251 = vmatpush.bf16.msra.mxu1 %v2222_v8  ;;  %v2262_v33 = vld [vmem:[#allocation2 + $0x8] sm:$0xff] }
 0x1ab   : > { %2239 = vmatpush.bf16.msra.mxu0 %v2213_v44 }
 0x1ae   : > { %2252 = vmatpush.bf16.msra.mxu1 %v2221_v43 }
 0x1af   : > { %2240 = vmatpush.bf16.msra.mxu0 %v2212_v59 }
 0x1b2   : > { %2253 = vmatpush.bf16.msra.mxu1 %v2220_v5  ;;  %2241 = vmatmul.bf16.vlgmr.msra.gmra.mxu0 %v2229_v28 }
 0x1b5   : > { %2254 = vmatmul.bf16.vlgmr.msra.gmra.mxu1 %v2230_v32 }
 0x1c2   : > { %v1444_v61 = vpop.f32.mrf.mxu0 }
 0x1c3   : > { %v1457_v55 = vpop.f32.mrf.mxu1 }
 0x1c4   : > { %v1458_v38 = vadd.f32 %v1457_v55, %v1444_v61 }
 0x1c6   : > { %1461 = vst [vmem:[#allocation2 + $0x10] sm:$0xf] %v1458_v38 }
 0x1ca   : > { %v1446_v16 = vpop.f32.mrf.mxu0 }
 0x1cb   : > { %v1459_v18 = vpop.f32.mrf.mxu1 }
 0x1d9   : > { %v1645_v30 = vpop.f32.mrf.mxu2 }
 0x1db   : > { %v1658_v15 = vpop.f32.mrf.mxu3 }
 0x1dc   : > { %v1659_v19 = vadd.f32 %v1658_v15, %v1645_v30 }
 0x1de   : > { %1662 = vst [vmem:[#allocation2 + $0x14] sm:$0xf] %v1659_v19 }
 0x1e1   : > { %v1647_v36 = vpop.f32.mrf.mxu2 }
 0x1e3   : > { %v1660_v62 = vpop.f32.mrf.mxu3 }
 0x1e5   : > { %v2263_v34 = vld [vmem:[#allocation2 + $0x10] sm:$0xff] }
 0x1ff   : > { %v1847_v60 = vpop.f32.mrf.mxu0 }
 0x201   : > { %v1860_v2 = vpop.f32.mrf.mxu1 }
 0x202   : > { %v1861_v26 = vadd.f32 %v1860_v2, %v1847_v60 }
 0x204   : > { %1864 = vst [vmem:[#allocation2 + $0x18] sm:$0xf] %v1861_v26 }
 0x207   : > { %v1849_v20 = vpop.f32.mrf.mxu0 }
 0x209   : > { %v1862_v12 = vpop.f32.mrf.mxu1 }
 0x216   : > { %v2048_v47 = vpop.f32.mrf.mxu2  ;;  %v2270_v4 = vpop.permute.xlu0 %2269 }
 0x21a   : > { %v2061_v13 = vpop.f32.mrf.mxu3 }
 0x21b   : > { %v2062_v1 = vadd.f32 %v2061_v13, %v2048_v47 }
 0x21d   : > { %2065 = vst [vmem:[#allocation2 + $0x1c] sm:$0xf] %v2062_v1 }
 0x21e   : > { %v2050_v41 = vpop.f32.mrf.mxu2 }
 0x222   : > { %v2063_v7 = vpop.f32.mrf.mxu3 }
 0x224   : > { %v2264_v39 = vld [vmem:[#allocation2 + $0x18] sm:$0xff] }
 0x22f   : > { %v2242_v10 = vpop.f32.mrf.mxu0 }
 0x232   : > { %v2255_v48 = vpop.f32.mrf.mxu1 }
 0x233   : > { %v2256_v0 = vadd.f32 %v2255_v48, %v2242_v10 }
 0x235   : > { %2259 = vst [vmem:[#allocation2 + $0x20] sm:$0xf] %v2256_v0 }
 0x237   : > { %v2244_v52 = vpop.f32.mrf.mxu0 }
 0x23a   : > { %v2257_v53 = vpop.f32.mrf.mxu1 }
 0x23c   : > { %v2265_v37 = vld [vmem:[#allocation2 + $0x20] sm:$0xf] }
 0x23d   : > { %2462 = vmatpush.msk.msra.mxu2 %vm2276_vm7, %v2265_v37 }
 0x23f   : > { %2292 = vmatpush.msra.mxu2 %v2264_v39 }
 0x241   : > { %2293 = vmatpush.msra.mxu2 %v2263_v34 }
 0x243   : > { %2294 = vmatpush.msra.mxu2 %v2262_v33 }
 0x245   : > { %2295 = vmatpush.msra.mxu2 %v2261_v51 }
 0x246   : > { %2463 = vmatmul.msk.f32.vlgmr.msra.gmra.mxu2 %vm2272_vm8, %v2260_v21 }
 0x2c9   : > { %v2297_v11 = vpop.f32.mrf.mxu2 }
 0x2ca   : > { %v2298_v50 = vadd.f32 %v2297_v11, %v2270_v4 }
 0x2cc   : > { %2300 = vst [vmem:[%s437_s19] sm:$0xff] %v2298_v50 }
 0x2cd   : > { %2610 = shalt.err (!%p2607_p11)
}
 0x2ce   : > { %2509 = dma.vmem_to_hbm [thread:$0]  (%p2780_p8), %s2317_s2, 128, %s2319_s1, %s2302_s11  }
 0x2cf PF: > { %p2515_p12 = scmp.ge.s32.totalorder %s2677_s8, 2  ;;  %s2330_s14 = sand.u32 1, %s2649_s24  }
 0x2d0   : > { %s2331_s13 = scalar_lea.sflag [#allocation6], %s2330_s14 }
 0x2d1   : > { %p2512_p13 = pnand %p2515_p12, %p2784_p9 }
 0x2d3   : > { %p2513_p0 = pneg %p2512_p13 }
 0x2d5   : > { %2644 = dma.done.wait (%p2513_p0), %s2331_s13, 128  }
 0x2d6   : > { %2646 = vsyncadd (%p2513_p0), %s2331_s13, 4294967168  ;;  %s20_s8 = sadd.s32 1, %s2677_s8   ;;  %s4046_s15 = sld [smem:[#allocation8_spill]] }
 0x2d7   : > { %p17_p1 = scmp.ge.s32.totalorder %s20_s8, 6   ;;  %s4047_s17 = sld [smem:[#allocation9_spill]] }
 0x2d8   : > { %s4048_s24 = smov %s2653_s25  ;;  %s4049_s25 = smov %s2657_s26 }
 0x2d9   : > { %s4050_s26 = smov %s2792_s20  ;;  %s4051_s27 = smov %s2669_s29 }
 0x2da   : > { %s4052_s28 = smov %s2673_s30  ;;  %19 = sbr.rel (!%p17_p1) target bundleno = 8 (0x8), region = 203 }
 0x2dc   : > { %s4053_s29 = smov %s4046_s15 }
 0x2dd   : > { %s4054_s30 = smov %s4047_s17 }
 0x2df   :  { %2337 = vsyncpa [#allocation6], 1 }
 0x2e0   :  { %2339 = vsyncpa [#allocation6 + $0x1], 1 }

</bundles_post_ra>
